<compile_context>
chip_gen: v6e
topology: v6e:2x2x1
jax: 0.10.0
libtpu: 0.0.40
codegen_flags: <defaults>
</compile_context>

<pallas_src>
import functools

import jax
import jax.numpy as jnp
from jax.experimental import pallas as pl
from jax.experimental.pallas import tpu as pltpu

LEAKY_SLOPE = 0.2
BN_EPS = 1e-5


# --------------------------------------------------------------------------
# tiling helpers
# --------------------------------------------------------------------------
def _pick_tile(dim, cap, align):
    """Largest tile <= cap that divides `dim` (multiple of `align` if possible)."""
    if dim <= cap:
        return dim
    best = 0
    for t in range(align, cap + 1, align):
        if dim % t == 0:
            best = t
    if best:
        return best
    for t in range(cap, 0, -1):
        if dim % t == 0:
            return t
    return dim


def _vmem_limit(*block_bytes):
    """Explicit scoped-VMEM budget: double-buffered blocks + headroom."""
    need = 2 * sum(block_bytes) + (4 << 20)
    return int(min(max(need, 8 << 20), 48 << 20))


# --------------------------------------------------------------------------
# Pallas kernels
# --------------------------------------------------------------------------
def _matmul_bias_act_kernel(x_ref, w_ref, b_ref, o_ref, acc_ref, *, activation):
    """out = act(x @ w + b). Grid = (M/tm, N/tn, K/tk); f32 VMEM accumulator."""
    @pl.when(pl.program_id(2) == 0)
    def _():
        acc_ref[...] = jnp.zeros_like(acc_ref)

    acc_ref[...] += jnp.dot(
        x_ref[...].astype(jnp.bfloat16),
        w_ref[...].astype(jnp.bfloat16),
        preferred_element_type=jnp.float32,
    )

    @pl.when(pl.program_id(2) == pl.num_programs(2) - 1)
    def _():
        acc = acc_ref[...] + b_ref[...]                      # (1, tn) broadcasts
        if activation == "leaky":
            acc = jnp.maximum(acc, LEAKY_SLOPE * acc)        # single VPU op
        elif activation == "sigmoid":
            acc = pl.reciprocal(1.0 + jnp.exp(-acc), approx=True)   # EUP slots
        o_ref[...] = acc.astype(o_ref.dtype)


def matmul_bias_act(x, w, b, activation="none", out_dtype=jnp.float32):
    M, K = x.shape
    K2, N = w.shape
    assert K == K2, (K, K2)
    tm = _pick_tile(M, 256, 8)
    tn = _pick_tile(N, 1024, 128)
    tk = _pick_tile(K, 512, 128)        # multiple of 128 -> fills MXU on v5e too
    grid = (M // tm, N // tn, K // tk)
    blk = (tm * tk * x.dtype.itemsize, tk * tn * w.dtype.itemsize, tn * 4,
           tm * tn * jnp.dtype(out_dtype).itemsize, tm * tn * 4)
    kern = functools.partial(_matmul_bias_act_kernel, activation=activation)
    return pl.pallas_call(
        kern,
        out_shape=jax.ShapeDtypeStruct((M, N), out_dtype),
        grid_spec=pltpu.PrefetchScalarGridSpec(
            num_scalar_prefetch=0,
            grid=grid,
            in_specs=[
                pl.BlockSpec((tm, tk), lambda i, j, k: (i, k)),
                pl.BlockSpec((tk, tn), lambda i, j, k: (k, j)),
                pl.BlockSpec((1, tn), lambda i, j, k: (0, j)),
            ],
            out_specs=pl.BlockSpec((tm, tn), lambda i, j, k: (i, j)),
            scratch_shapes=[pltpu.VMEM((tm, tn), jnp.float32)],
        ),
        compiler_params=pltpu.CompilerParams(
            dimension_semantics=("parallel", "parallel", "arbitrary"),
            vmem_limit_bytes=_vmem_limit(*blk),
        ),
    )(x, w, b.reshape(1, N).astype(jnp.float32))


def _matmul_bn_leaky_kernel(x_ref, w_ref, g_ref, beta_ref, o_ref, acc_ref):
    """out = leaky(batchnorm(x @ w)). Grid = (K/tk,); (M, N) output resident.

    BN stats (biased var, eps=1e-5) are computed in one pass over the resident
    f32 accumulator in the finalize step: var = E[x^2] - mean^2.
    """
    @pl.when(pl.program_id(0) == 0)
    def _():
        acc_ref[...] = jnp.zeros_like(acc_ref)

    acc_ref[...] += jnp.dot(
        x_ref[...].astype(jnp.bfloat16),
        w_ref[...].astype(jnp.bfloat16),
        preferred_element_type=jnp.float32,
    )

    @pl.when(pl.program_id(0) == pl.num_programs(0) - 1)
    def _():
        acc = acc_ref[...]
        inv_m = 1.0 / acc.shape[0]
        s1 = jnp.sum(acc, axis=0, keepdims=True)
        s2 = jnp.sum(acc * acc, axis=0, keepdims=True)
        mean = s1 * inv_m
        var = jnp.maximum(s2 * inv_m - mean * mean, 0.0)
        y = (acc - mean) * jax.lax.rsqrt(var + BN_EPS) * g_ref[...] + beta_ref[...]
        o_ref[...] = jnp.maximum(y, LEAKY_SLOPE * y).astype(o_ref.dtype)


def matmul_bn_leaky(x, w, gamma, beta, out_dtype=jnp.float32):
    M, K = x.shape
    K2, N = w.shape
    assert K == K2, (K, K2)
    tk = _pick_tile(K, 512, 128)
    grid = (K // tk,)
    blk = (M * tk * x.dtype.itemsize, tk * N * w.dtype.itemsize, 2 * N * 4,
           M * N * jnp.dtype(out_dtype).itemsize, M * N * 4)
    return pl.pallas_call(
        _matmul_bn_leaky_kernel,
        out_shape=jax.ShapeDtypeStruct((M, N), out_dtype),
        grid_spec=pltpu.PrefetchScalarGridSpec(
            num_scalar_prefetch=0,
            grid=grid,
            in_specs=[
                pl.BlockSpec((M, tk), lambda k: (0, k)),
                pl.BlockSpec((tk, N), lambda k: (k, 0)),
                pl.BlockSpec((1, N), lambda k: (0, 0)),
                pl.BlockSpec((1, N), lambda k: (0, 0)),
            ],
            out_specs=pl.BlockSpec((M, N), lambda k: (0, 0)),
            scratch_shapes=[pltpu.VMEM((M, N), jnp.float32)],
        ),
        compiler_params=pltpu.CompilerParams(
            dimension_semantics=("arbitrary",),
            vmem_limit_bytes=_vmem_limit(*blk),
        ),
    )(x, w, gamma.reshape(1, N), beta.reshape(1, N))


# --------------------------------------------------------------------------
# Plain-JAX glue: im2col (strided slicing / reshape only)
# --------------------------------------------------------------------------
def im2col(x, k, s, p):
    """x: (N, H, W, C) -> patches (N*Ho*Wo, k*k*C) ordered (ki, kj, c)."""
    n, h, w, c = x.shape
    xp = jnp.pad(x, ((0, 0), (p, p), (p, p), (0, 0)))
    ho = (h + 2 * p - k) // s + 1
    wo = (w + 2 * p - k) // s + 1
    cols = []
    for i in range(k):
        for j in range(k):
            cols.append(xp[:, i:i + ho * s:s, j:j + wo * s:s, :])   # (N,Ho,Wo,C)
    patches = jnp.concatenate(cols, axis=-1)                        # (N,Ho,Wo,k*k*C)
    return patches.reshape(n * ho * wo, k * k * c), ho, wo


# --------------------------------------------------------------------------
# Parameters (deterministic synthetic init)
# --------------------------------------------------------------------------
def init_params(key, dim_in, dim_out, img_size):
    ks = jax.random.split(key, 4)
    h2 = img_size // 4
    fc_in = 128 * h2 * h2
    std = 0.02
    bf16 = jnp.bfloat16
    return {
        # conv weights stored HWIO-flattened ((ki, kj, cin) rows) matching im2col.
        "w1": (std * jax.random.normal(ks[0], (4 * 4 * dim_in, 64))).astype(bf16),
        "b1": jnp.zeros((64,), jnp.float32),
        # conv2 / fc1 pre-BN biases are dropped: cancelled by BN mean subtraction.
        "w2": (std * jax.random.normal(ks[1], (4 * 4 * 64, 128))).astype(bf16),
        "bn2_g": jnp.ones((128,), jnp.float32),
        "bn2_b": jnp.zeros((128,), jnp.float32),
        # wf1 rows are in (h, w, c)-flatten order so the flatten of the NHWC
        # conv output is a plain reshape (no per-forward transpose).
        # TODO(synk): when importing real PyTorch weights, permute wf1 rows
        # from the (c, h, w)-flatten order and conv weights from OIHW.
        "wf1": (std * jax.random.normal(ks[2], (fc_in, 1024))).astype(bf16),
        "bnf_g": jnp.ones((1024,), jnp.float32),
        "bnf_b": jnp.zeros((1024,), jnp.float32),
        "wf2": (std * jax.random.normal(ks[3], (1024, dim_out))).astype(bf16),
        "bf2": jnp.zeros((dim_out,), jnp.float32),
    }


# --------------------------------------------------------------------------
# Forward pass
# --------------------------------------------------------------------------
def discriminator_forward(x_nchw, params):
    n = x_nchw.shape[0]
    x = jnp.transpose(x_nchw, (0, 2, 3, 1))                     # NCHW -> NHWC

    # conv1: 4x4 s2 p1, dim_in -> 64, fused bias + LeakyReLU(0.2); bf16 out.
    # TODO(synk): move the im2col patch unfold into the conv kernels
    # (in-VMEM shifted matmuls) to cut the k*k patch-matrix HBM traffic.
    p1, h1, w1 = im2col(x, 4, 2, 1)
    y1 = matmul_bias_act(p1, params["w1"], params["b1"], "leaky",
                         out_dtype=jnp.bfloat16)
    y1 = y1.reshape(n, h1, w1, 64)

    # conv2: 4x4 s2 p1, 64 -> 128, fused BatchNorm2d + LeakyReLU(0.2)
    p2, h2, w2 = im2col(y1, 4, 2, 1)
    y2 = matmul_bn_leaky(p2, params["w2"], params["bn2_g"], params["bn2_b"],
                         out_dtype=jnp.bfloat16)                # (n*h2*w2, 128)

    # flatten in (h, w, c) order -- wf1 rows match, so no transpose needed
    flat = y2.reshape(n, h2 * w2 * 128)

    # fc1: K-tiled matmul with fused BatchNorm1d(1024) + LeakyReLU(0.2)
    z1 = matmul_bn_leaky(flat, params["wf1"], params["bnf_g"], params["bnf_b"],
                         out_dtype=jnp.bfloat16)

    # fc2 + Sigmoid (f32 output)
    return matmul_bias_act(z1, params["wf2"], params["bf2"], "sigmoid")


# --------------------------------------------------------------------------
# Plain-JAX reference mirroring the kernel numerics (bf16 operands, f32 acc)
# --------------------------------------------------------------------------
def reference_forward(x_nchw, params):
    f32 = jnp.float32
    mm = lambda a, w: jnp.dot(a.astype(jnp.bfloat16), w.astype(jnp.bfloat16),
                              preferred_element_type=f32)
    leaky = lambda a: jnp.maximum(a, LEAKY_SLOPE * a)

    def bn(a, g, b):
        mean = jnp.mean(a, axis=0, keepdims=True)
        var = jnp.mean(jnp.square(a - mean), axis=0, keepdims=True)
        return ((a - mean) * jax.lax.rsqrt(var + BN_EPS)
                * g.reshape(1, -1) + b.reshape(1, -1))

    n = x_nchw.shape[0]
    x = jnp.transpose(x_nchw, (0, 2, 3, 1))
    p1, h1, w1 = im2col(x, 4, 2, 1)
    y1 = leaky(mm(p1, params["w1"]) + params["b1"]).astype(jnp.bfloat16)
    p2, h2, w2 = im2col(y1.reshape(n, h1, w1, 64), 4, 2, 1)
    y2 = leaky(bn(mm(p2, params["w2"]),
                  params["bn2_g"], params["bn2_b"])).astype(jnp.bfloat16)
    z1 = leaky(bn(mm(y2.reshape(n, h2 * w2 * 128), params["wf1"]),
                  params["bnf_g"], params["bnf_b"])).astype(jnp.bfloat16)
    out = mm(z1, params["wf2"]) + params["bf2"]
    return jax.nn.sigmoid(out.astype(f32))


# --------------------------------------------------------------------------
if __name__ == "__main__":
    dim_in, dim_out, img_size, batch = 4, 1, 16, 4

    key = jax.random.PRNGKey(0)
    k_x, k_p = jax.random.split(key)
    x = jax.random.normal(k_x, (batch, dim_in, img_size, img_size), jnp.float32)
    params = init_params(k_p, dim_in, dim_out, img_size)

    fwd = jax.jit(discriminator_forward)
    out = jax.block_until_ready(fwd(x, params))

    assert out.shape == (batch, dim_out), out.shape
    assert bool(jnp.all(jnp.isfinite(out)))
    assert bool(jnp.all((out >= -1e-3) & (out <= 1.0 + 1e-3)))   # sigmoid range

    ref = reference_forward(x, params)
    err = float(jnp.max(jnp.abs(out - ref)))
    assert err < 2e-2, f"mismatch vs plain-JAX reference: {err}"

    print("KERNEL_OK")
</pallas_src>

<mosaic_0001>
module attributes {stable_mosaic.version = 11 : i64} {
  func.func @_matmul_bias_act_kernel(%arg0: i32, %arg1: i32, %arg2: i32, %arg3: memref<256x64xf32, #tpu.memory_space<vmem>>, %arg4: memref<64x64xbf16, #tpu.memory_space<vmem>>, %arg5: memref<1x64xf32, #tpu.memory_space<vmem>>, %arg6: memref<256x64xbf16, #tpu.memory_space<vmem>>, %arg7: memref<256x64xf32, #tpu.memory_space<vmem>>) attributes {dimension_semantics = [#tpu.dimension_semantics<parallel>, #tpu.dimension_semantics<parallel>, #tpu.dimension_semantics<arbitrary>], iteration_bounds = array<i64: 1, 1, 1>, scalar_prefetch = 0 : i64, scratch_operands = 1 : i64, tpu.core_type = #tpu.core_type<tc>, window_params = [{transform_indices = @transform_0, window_bounds = array<i64: 256, 64>}, {transform_indices = @transform_1, window_bounds = array<i64: 64, 64>}, {transform_indices = @transform_2, window_bounds = array<i64: 1, 64>}, {transform_indices = @transform_3, window_bounds = array<i64: 256, 64>}]} {
    %c0_i32 = arith.constant 0 : i32
    %0 = arith.cmpi eq, %arg2, %c0_i32 : i32
    %1 = arith.extui %0 : i1 to i32
    %c0_i32_0 = arith.constant 0 : i32
    %2 = arith.cmpi ne, %1, %c0_i32_0 : i32
    scf.if %2 {
      %cst_10 = arith.constant 0.000000e+00 : f32
      %13 = vector.broadcast %cst_10 : f32 to vector<256x64xf32>
      %c0_11 = arith.constant 0 : index
      %c0_12 = arith.constant 0 : index
      %14 = vector.load %arg7[%c0_11, %c0_12] : memref<256x64xf32, #tpu.memory_space<vmem>>, vector<256x64xf32>
      tpu.vector_store %arg7[%c0_11, %c0_12], %13 {strides = array<i32>} : memref<256x64xf32, #tpu.memory_space<vmem>>, vector<256x64xf32>,
    } else {
    }
    %c0 = arith.constant 0 : index
    %c0_1 = arith.constant 0 : index
    %3 = vector.load %arg7[%c0, %c0_1] : memref<256x64xf32, #tpu.memory_space<vmem>>, vector<256x64xf32>
    %c0_2 = arith.constant 0 : index
    %c0_3 = arith.constant 0 : index
    %4 = vector.load %arg3[%c0_2, %c0_3] : memref<256x64xf32, #tpu.memory_space<vmem>>, vector<256x64xf32>
    %5 = arith.truncf %4 : vector<256x64xf32> to vector<256x64xbf16>
    %c0_4 = arith.constant 0 : index
    %c0_5 = arith.constant 0 : index
    %6 = vector.load %arg4[%c0_4, %c0_5] : memref<64x64xbf16, #tpu.memory_space<vmem>>, vector<64x64xbf16>
    %cst = arith.constant dense<0.000000e+00> : vector<256x64xf32>
    %7 = tpu.matmul %5, %6, %cst {dimension_numbers = #tpu.dot_dimension_numbers<[1], [0], [0], [1], [0, 0, 1, 1], [], []>} : vector<256x64xbf16>, vector<64x64xbf16>, vector<256x64xf32> -> vector<256x64xf32>
    %8 = arith.addf %3, %7 : vector<256x64xf32>
    %c0_6 = arith.constant 0 : index
    %c0_7 = arith.constant 0 : index
    %9 = vector.load %arg7[%c0_6, %c0_7] : memref<256x64xf32, #tpu.memory_space<vmem>>, vector<256x64xf32>
    tpu.vector_store %arg7[%c0_6, %c0_7], %8 {strides = array<i32>} : memref<256x64xf32, #tpu.memory_space<vmem>>, vector<256x64xf32>,
    %c0_i32_8 = arith.constant 0 : i32
    %10 = arith.cmpi eq, %arg2, %c0_i32_8 : i32
    %11 = arith.extui %10 : i1 to i32
    %c0_i32_9 = arith.constant 0 : i32
    %12 = arith.cmpi ne, %11, %c0_i32_9 : i32
    scf.if %12 {
      %c0_10 = arith.constant 0 : index
      %c0_11 = arith.constant 0 : index
      %13 = vector.load %arg7[%c0_10, %c0_11] : memref<256x64xf32, #tpu.memory_space<vmem>>, vector<256x64xf32>
      %c0_12 = arith.constant 0 : index
      %c0_13 = arith.constant 0 : index
      %14 = vector.load %arg5[%c0_12, %c0_13] : memref<1x64xf32, #tpu.memory_space<vmem>>, vector<1x64xf32>
      %15 = vector.broadcast %14 : vector<1x64xf32> to vector<256x64xf32>
      %16 = arith.addf %13, %15 : vector<256x64xf32>
      %cst_14 = arith.constant 2.000000e-01 : f32
      %17 = vector.broadcast %cst_14 : f32 to vector<256x64xf32>
      %18 = arith.mulf %17, %16 : vector<256x64xf32>
      %19 = arith.maximumf %16, %18 : vector<256x64xf32>
      %20 = arith.truncf %19 : vector<256x64xf32> to vector<256x64xbf16>
      %c0_15 = arith.constant 0 : index
      %c0_16 = arith.constant 0 : index
      %21 = vector.load %arg6[%c0_15, %c0_16] : memref<256x64xbf16, #tpu.memory_space<vmem>>, vector<256x64xbf16>
      tpu.vector_store %arg6[%c0_15, %c0_16], %20 {strides = array<i32>} : memref<256x64xbf16, #tpu.memory_space<vmem>>, vector<256x64xbf16>,
    } else {
    }
    return
  }
  func.func @transform_0(%arg0: i32, %arg1: i32, %arg2: i32) -> (i32, i32) {
    %c0_i32 = arith.constant 0 : i32
    return %arg0, %arg2 : i32, i32
  }
  func.func @transform_1(%arg0: i32, %arg1: i32, %arg2: i32) -> (i32, i32) {
    %c0_i32 = arith.constant 0 : i32
    return %arg2, %arg1 : i32, i32
  }
  func.func @transform_2(%arg0: i32, %arg1: i32, %arg2: i32) -> (i32, i32) {
    %c0_i32 = arith.constant 0 : i32
    %c0_i32_0 = arith.constant 0 : i32
    return %c0_i32, %arg1 : i32, i32
  }
  func.func @transform_3(%arg0: i32, %arg1: i32, %arg2: i32) -> (i32, i32) {
    %c0_i32 = arith.constant 0 : i32
    return %arg0, %arg1 : i32, i32
  }
}

module attributes {stable_mosaic.version = 11 : i64} {
  func.func @_matmul_bn_leaky_kernel(%arg0: i32, %arg1: memref<4x512xbf16, #tpu.memory_space<vmem>>, %arg2: memref<512x1024xbf16, #tpu.memory_space<vmem>>, %arg3: memref<1x1024xf32, #tpu.memory_space<vmem>>, %arg4: memref<1x1024xf32, #tpu.memory_space<vmem>>, %arg5: memref<4x1024xbf16, #tpu.memory_space<vmem>>, %arg6: memref<4x1024xf32, #tpu.memory_space<vmem>>) attributes {dimension_semantics = [#tpu.dimension_semantics<arbitrary>], iteration_bounds = array<i64: 4>, scalar_prefetch = 0 : i64, scratch_operands = 1 : i64, tpu.core_type = #tpu.core_type<tc>, window_params = [{transform_indices = @transform_0, window_bounds = array<i64: 4, 512>}, {transform_indices = @transform_1, window_bounds = array<i64: 512, 1024>}, {pipeline_mode = #tpu.pipeline_mode<synchronous>, transform_indices = @transform_2, window_bounds = array<i64: 1, 1024>}, {pipeline_mode = #tpu.pipeline_mode<synchronous>, transform_indices = @transform_3, window_bounds = array<i64: 1, 1024>}, {pipeline_mode = #tpu.pipeline_mode<synchronous>, transform_indices = @transform_4, window_bounds = array<i64: 4, 1024>}]} {
    %c0_i32 = arith.constant 0 : i32
    %0 = arith.cmpi eq, %arg0, %c0_i32 : i32
    %1 = arith.extui %0 : i1 to i32
    %c0_i32_0 = arith.constant 0 : i32
    %2 = arith.cmpi ne, %1, %c0_i32_0 : i32
    scf.if %2 {
      %cst_9 = arith.constant 0.000000e+00 : f32
      %12 = vector.broadcast %cst_9 : f32 to vector<4x1024xf32>
      %c0_10 = arith.constant 0 : index
      %c0_11 = arith.constant 0 : index
      %13 = vector.load %arg6[%c0_10, %c0_11] : memref<4x1024xf32, #tpu.memory_space<vmem>>, vector<4x1024xf32>
      tpu.vector_store %arg6[%c0_10, %c0_11], %12 {strides = array<i32>} : memref<4x1024xf32, #tpu.memory_space<vmem>>, vector<4x1024xf32>,
    } else {
    }
    %c0 = arith.constant 0 : index
    %c0_1 = arith.constant 0 : index
    %3 = vector.load %arg6[%c0, %c0_1] : memref<4x1024xf32, #tpu.memory_space<vmem>>, vector<4x1024xf32>
    %c0_2 = arith.constant 0 : index
    %c0_3 = arith.constant 0 : index
    %4 = vector.load %arg1[%c0_2, %c0_3] : memref<4x512xbf16, #tpu.memory_space<vmem>>, vector<4x512xbf16>
    %c0_4 = arith.constant 0 : index
    %c0_5 = arith.constant 0 : index
    %5 = vector.load %arg2[%c0_4, %c0_5] : memref<512x1024xbf16, #tpu.memory_space<vmem>>, vector<512x1024xbf16>
    %cst = arith.constant dense<0.000000e+00> : vector<4x1024xf32>
    %6 = tpu.matmul %4, %5, %cst {dimension_numbers = #tpu.dot_dimension_numbers<[1], [0], [0], [1], [0, 0, 1, 1], [], []>} : vector<4x512xbf16>, vector<512x1024xbf16>, vector<4x1024xf32> -> vector<4x1024xf32>
    %7 = arith.addf %3, %6 : vector<4x1024xf32>
    %c0_6 = arith.constant 0 : index
    %c0_7 = arith.constant 0 : index
    %8 = vector.load %arg6[%c0_6, %c0_7] : memref<4x1024xf32, #tpu.memory_space<vmem>>, vector<4x1024xf32>
    tpu.vector_store %arg6[%c0_6, %c0_7], %7 {strides = array<i32>} : memref<4x1024xf32, #tpu.memory_space<vmem>>, vector<4x1024xf32>,
    %c3_i32 = arith.constant 3 : i32
    %9 = arith.cmpi eq, %arg0, %c3_i32 : i32
    %10 = arith.extui %9 : i1 to i32
    %c0_i32_8 = arith.constant 0 : i32
    %11 = arith.cmpi ne, %10, %c0_i32_8 : i32
    scf.if %11 {
      %c0_9 = arith.constant 0 : index
      %c0_10 = arith.constant 0 : index
      %12 = vector.load %arg6[%c0_9, %c0_10] : memref<4x1024xf32, #tpu.memory_space<vmem>>, vector<4x1024xf32>
      %cst_11 = arith.constant dense<0.000000e+00> : vector<1024xf32>
      %13 = vector.multi_reduction <add>, %12, %cst_11 [0] : vector<4x1024xf32> to vector<1024xf32>
      %14 = vector.shape_cast %13 : vector<1024xf32> to vector<1x1024xf32>
      %15 = arith.mulf %12, %12 : vector<4x1024xf32>
      %cst_12 = arith.constant dense<0.000000e+00> : vector<1024xf32>
      %16 = vector.multi_reduction <add>, %15, %cst_12 [0] : vector<4x1024xf32> to vector<1024xf32>
      %17 = vector.shape_cast %16 : vector<1024xf32> to vector<1x1024xf32>
      %cst_13 = arith.constant 2.500000e-01 : f32
      %18 = vector.broadcast %cst_13 : f32 to vector<1x1024xf32>
      %19 = arith.mulf %14, %18 : vector<1x1024xf32>
      %cst_14 = arith.constant 2.500000e-01 : f32
      %20 = vector.broadcast %cst_14 : f32 to vector<1x1024xf32>
      %21 = arith.mulf %17, %20 : vector<1x1024xf32>
      %22 = arith.mulf %19, %19 : vector<1x1024xf32>
      %23 = arith.subf %21, %22 : vector<1x1024xf32>
      %cst_15 = arith.constant 0.000000e+00 : f32
      %24 = vector.broadcast %cst_15 : f32 to vector<1x1024xf32>
      %25 = arith.maximumf %23, %24 : vector<1x1024xf32>
      %26 = vector.broadcast %19 : vector<1x1024xf32> to vector<4x1024xf32>
      %27 = arith.subf %12, %26 : vector<4x1024xf32>
      %cst_16 = arith.constant 9.99999974E-6 : f32
      %28 = vector.broadcast %cst_16 : f32 to vector<1x1024xf32>
      %29 = arith.addf %25, %28 : vector<1x1024xf32>
      %30 = math.rsqrt %29 : vector<1x1024xf32>
      %31 = vector.broadcast %30 : vector<1x1024xf32> to vector<4x1024xf32>
      %32 = arith.mulf %27, %31 : vector<4x1024xf32>
      %c0_17 = arith.constant 0 : index
      %c0_18 = arith.constant 0 : index
      %33 = vector.load %arg3[%c0_17, %c0_18] : memref<1x1024xf32, #tpu.memory_space<vmem>>, vector<1x1024xf32>
      %34 = vector.broadcast %33 : vector<1x1024xf32> to vector<4x1024xf32>
      %35 = arith.mulf %32, %34 : vector<4x1024xf32>
      %c0_19 = arith.constant 0 : index
      %c0_20 = arith.constant 0 : index
      %36 = vector.load %arg4[%c0_19, %c0_20] : memref<1x1024xf32, #tpu.memory_space<vmem>>, vector<1x1024xf32>
      %37 = vector.broadcast %36 : vector<1x1024xf32> to vector<4x1024xf32>
      %38 = arith.addf %35, %37 : vector<4x1024xf32>
      %cst_21 = arith.constant 2.000000e-01 : f32
      %39 = vector.broadcast %cst_21 : f32 to vector<4x1024xf32>
      %40 = arith.mulf %39, %38 : vector<4x1024xf32>
      %41 = arith.maximumf %38, %40 : vector<4x1024xf32>
      %42 = arith.truncf %41 : vector<4x1024xf32> to vector<4x1024xbf16>
      %c0_22 = arith.constant 0 : index
      %c0_23 = arith.constant 0 : index
      %43 = vector.load %arg5[%c0_22, %c0_23] : memref<4x1024xbf16, #tpu.memory_space<vmem>>, vector<4x1024xbf16>
      tpu.vector_store %arg5[%c0_22, %c0_23], %42 {strides = array<i32>} : memref<4x1024xbf16, #tpu.memory_space<vmem>>, vector<4x1024xbf16>,
    } else {
    }
    return
  }
  func.func @transform_0(%arg0: i32) -> (i32, i32) {
    %c0_i32 = arith.constant 0 : i32
    %c0_i32_0 = arith.constant 0 : i32
    return %c0_i32, %arg0 : i32, i32
  }
  func.func @transform_1(%arg0: i32) -> (i32, i32) {
    %c0_i32 = arith.constant 0 : i32
    %c0_i32_0 = arith.constant 0 : i32
    return %arg0, %c0_i32 : i32, i32
  }
  func.func @transform_2(%arg0: i32) -> (i32, i32) {
    %c0_i32 = arith.constant 0 : i32
    %c0_i32_0 = arith.constant 0 : i32
    %c0_i32_1 = arith.constant 0 : i32
    return %c0_i32, %c0_i32_0 : i32, i32
  }
  func.func @transform_3(%arg0: i32) -> (i32, i32) {
    %c0_i32 = arith.constant 0 : i32
    %c0_i32_0 = arith.constant 0 : i32
    %c0_i32_1 = arith.constant 0 : i32
    return %c0_i32, %c0_i32_0 : i32, i32
  }
  func.func @transform_4(%arg0: i32) -> (i32, i32) {
    %c0_i32 = arith.constant 0 : i32
    %c0_i32_0 = arith.constant 0 : i32
    %c0_i32_1 = arith.constant 0 : i32
    return %c0_i32, %c0_i32_0 : i32, i32
  }
}

module attributes {stable_mosaic.version = 11 : i64} {
  func.func @_matmul_bn_leaky_kernel(%arg0: i32, %arg1: memref<64x512xbf16, #tpu.memory_space<vmem>>, %arg2: memref<512x128xbf16, #tpu.memory_space<vmem>>, %arg3: memref<1x128xf32, #tpu.memory_space<vmem>>, %arg4: memref<1x128xf32, #tpu.memory_space<vmem>>, %arg5: memref<64x128xbf16, #tpu.memory_space<vmem>>, %arg6: memref<64x128xf32, #tpu.memory_space<vmem>>) attributes {dimension_semantics = [#tpu.dimension_semantics<arbitrary>], iteration_bounds = array<i64: 2>, scalar_prefetch = 0 : i64, scratch_operands = 1 : i64, tpu.core_type = #tpu.core_type<tc>, window_params = [{transform_indices = @transform_0, window_bounds = array<i64: 64, 512>}, {transform_indices = @transform_1, window_bounds = array<i64: 512, 128>}, {pipeline_mode = #tpu.pipeline_mode<synchronous>, transform_indices = @transform_2, window_bounds = array<i64: 1, 128>}, {pipeline_mode = #tpu.pipeline_mode<synchronous>, transform_indices = @transform_3, window_bounds = array<i64: 1, 128>}, {pipeline_mode = #tpu.pipeline_mode<synchronous>, transform_indices = @transform_4, window_bounds = array<i64: 64, 128>}]} {
    %c0_i32 = arith.constant 0 : i32
    %0 = arith.cmpi eq, %arg0, %c0_i32 : i32
    %1 = arith.extui %0 : i1 to i32
    %c0_i32_0 = arith.constant 0 : i32
    %2 = arith.cmpi ne, %1, %c0_i32_0 : i32
    scf.if %2 {
      %cst_9 = arith.constant 0.000000e+00 : f32
      %12 = vector.broadcast %cst_9 : f32 to vector<64x128xf32>
      %c0_10 = arith.constant 0 : index
      %c0_11 = arith.constant 0 : index
      %13 = vector.load %arg6[%c0_10, %c0_11] : memref<64x128xf32, #tpu.memory_space<vmem>>, vector<64x128xf32>
      tpu.vector_store %arg6[%c0_10, %c0_11], %12 {strides = array<i32>} : memref<64x128xf32, #tpu.memory_space<vmem>>, vector<64x128xf32>,
    } else {
    }
    %c0 = arith.constant 0 : index
    %c0_1 = arith.constant 0 : index
    %3 = vector.load %arg6[%c0, %c0_1] : memref<64x128xf32, #tpu.memory_space<vmem>>, vector<64x128xf32>
    %c0_2 = arith.constant 0 : index
    %c0_3 = arith.constant 0 : index
    %4 = vector.load %arg1[%c0_2, %c0_3] : memref<64x512xbf16, #tpu.memory_space<vmem>>, vector<64x512xbf16>
    %c0_4 = arith.constant 0 : index
    %c0_5 = arith.constant 0 : index
    %5 = vector.load %arg2[%c0_4, %c0_5] : memref<512x128xbf16, #tpu.memory_space<vmem>>, vector<512x128xbf16>
    %cst = arith.constant dense<0.000000e+00> : vector<64x128xf32>
    %6 = tpu.matmul %4, %5, %cst {dimension_numbers = #tpu.dot_dimension_numbers<[1], [0], [0], [1], [0, 0, 1, 1], [], []>} : vector<64x512xbf16>, vector<512x128xbf16>, vector<64x128xf32> -> vector<64x128xf32>
    %7 = arith.addf %3, %6 : vector<64x128xf32>
    %c0_6 = arith.constant 0 : index
    %c0_7 = arith.constant 0 : index
    %8 = vector.load %arg6[%c0_6, %c0_7] : memref<64x128xf32, #tpu.memory_space<vmem>>, vector<64x128xf32>
    tpu.vector_store %arg6[%c0_6, %c0_7], %7 {strides = array<i32>} : memref<64x128xf32, #tpu.memory_space<vmem>>, vector<64x128xf32>,
    %c1_i32 = arith.constant 1 : i32
    %9 = arith.cmpi eq, %arg0, %c1_i32 : i32
    %10 = arith.extui %9 : i1 to i32
    %c0_i32_8 = arith.constant 0 : i32
    %11 = arith.cmpi ne, %10, %c0_i32_8 : i32
    scf.if %11 {
      %c0_9 = arith.constant 0 : index
      %c0_10 = arith.constant 0 : index
      %12 = vector.load %arg6[%c0_9, %c0_10] : memref<64x128xf32, #tpu.memory_space<vmem>>, vector<64x128xf32>
      %cst_11 = arith.constant dense<0.000000e+00> : vector<128xf32>
      %13 = vector.multi_reduction <add>, %12, %cst_11 [0] : vector<64x128xf32> to vector<128xf32>
      %14 = vector.shape_cast %13 : vector<128xf32> to vector<1x128xf32>
      %15 = arith.mulf %12, %12 : vector<64x128xf32>
      %cst_12 = arith.constant dense<0.000000e+00> : vector<128xf32>
      %16 = vector.multi_reduction <add>, %15, %cst_12 [0] : vector<64x128xf32> to vector<128xf32>
      %17 = vector.shape_cast %16 : vector<128xf32> to vector<1x128xf32>
      %cst_13 = arith.constant 1.562500e-02 : f32
      %18 = vector.broadcast %cst_13 : f32 to vector<1x128xf32>
      %19 = arith.mulf %14, %18 : vector<1x128xf32>
      %cst_14 = arith.constant 1.562500e-02 : f32
      %20 = vector.broadcast %cst_14 : f32 to vector<1x128xf32>
      %21 = arith.mulf %17, %20 : vector<1x128xf32>
      %22 = arith.mulf %19, %19 : vector<1x128xf32>
      %23 = arith.subf %21, %22 : vector<1x128xf32>
      %cst_15 = arith.constant 0.000000e+00 : f32
      %24 = vector.broadcast %cst_15 : f32 to vector<1x128xf32>
      %25 = arith.maximumf %23, %24 : vector<1x128xf32>
      %26 = vector.broadcast %19 : vector<1x128xf32> to vector<64x128xf32>
      %27 = arith.subf %12, %26 : vector<64x128xf32>
      %cst_16 = arith.constant 9.99999974E-6 : f32
      %28 = vector.broadcast %cst_16 : f32 to vector<1x128xf32>
      %29 = arith.addf %25, %28 : vector<1x128xf32>
      %30 = math.rsqrt %29 : vector<1x128xf32>
      %31 = vector.broadcast %30 : vector<1x128xf32> to vector<64x128xf32>
      %32 = arith.mulf %27, %31 : vector<64x128xf32>
      %c0_17 = arith.constant 0 : index
      %c0_18 = arith.constant 0 : index
      %33 = vector.load %arg3[%c0_17, %c0_18] : memref<1x128xf32, #tpu.memory_space<vmem>>, vector<1x128xf32>
      %34 = vector.broadcast %33 : vector<1x128xf32> to vector<64x128xf32>
      %35 = arith.mulf %32, %34 : vector<64x128xf32>
      %c0_19 = arith.constant 0 : index
      %c0_20 = arith.constant 0 : index
      %36 = vector.load %arg4[%c0_19, %c0_20] : memref<1x128xf32, #tpu.memory_space<vmem>>, vector<1x128xf32>
      %37 = vector.broadcast %36 : vector<1x128xf32> to vector<64x128xf32>
      %38 = arith.addf %35, %37 : vector<64x128xf32>
      %cst_21 = arith.constant 2.000000e-01 : f32
      %39 = vector.broadcast %cst_21 : f32 to vector<64x128xf32>
      %40 = arith.mulf %39, %38 : vector<64x128xf32>
      %41 = arith.maximumf %38, %40 : vector<64x128xf32>
      %42 = arith.truncf %41 : vector<64x128xf32> to vector<64x128xbf16>
      %c0_22 = arith.constant 0 : index
      %c0_23 = arith.constant 0 : index
      %43 = vector.load %arg5[%c0_22, %c0_23] : memref<64x128xbf16, #tpu.memory_space<vmem>>, vector<64x128xbf16>
      tpu.vector_store %arg5[%c0_22, %c0_23], %42 {strides = array<i32>} : memref<64x128xbf16, #tpu.memory_space<vmem>>, vector<64x128xbf16>,
    } else {
    }
    return
  }
  func.func @transform_0(%arg0: i32) -> (i32, i32) {
    %c0_i32 = arith.constant 0 : i32
    %c0_i32_0 = arith.constant 0 : i32
    return %c0_i32, %arg0 : i32, i32
  }
  func.func @transform_1(%arg0: i32) -> (i32, i32) {
    %c0_i32 = arith.constant 0 : i32
    %c0_i32_0 = arith.constant 0 : i32
    return %arg0, %c0_i32 : i32, i32
  }
  func.func @transform_2(%arg0: i32) -> (i32, i32) {
    %c0_i32 = arith.constant 0 : i32
    %c0_i32_0 = arith.constant 0 : i32
    %c0_i32_1 = arith.constant 0 : i32
    return %c0_i32, %c0_i32_0 : i32, i32
  }
  func.func @transform_3(%arg0: i32) -> (i32, i32) {
    %c0_i32 = arith.constant 0 : i32
    %c0_i32_0 = arith.constant 0 : i32
    %c0_i32_1 = arith.constant 0 : i32
    return %c0_i32, %c0_i32_0 : i32, i32
  }
  func.func @transform_4(%arg0: i32) -> (i32, i32) {
    %c0_i32 = arith.constant 0 : i32
    %c0_i32_0 = arith.constant 0 : i32
    %c0_i32_1 = arith.constant 0 : i32
    return %c0_i32, %c0_i32_0 : i32, i32
  }
}

module attributes {stable_mosaic.version = 11 : i64} {
  func.func @_matmul_bias_act_kernel(%arg0: i32, %arg1: i32, %arg2: i32, %arg3: memref<4x512xbf16, #tpu.memory_space<vmem>>, %arg4: memref<512x1xbf16, #tpu.memory_space<vmem>>, %arg5: memref<1x1xf32, #tpu.memory_space<vmem>>, %arg6: memref<4x1xf32, #tpu.memory_space<vmem>>, %arg7: memref<4x1xf32, #tpu.memory_space<vmem>>) attributes {dimension_semantics = [#tpu.dimension_semantics<parallel>, #tpu.dimension_semantics<parallel>, #tpu.dimension_semantics<arbitrary>], iteration_bounds = array<i64: 1, 1, 2>, scalar_prefetch = 0 : i64, scratch_operands = 1 : i64, tpu.core_type = #tpu.core_type<tc>, window_params = [{transform_indices = @transform_0, window_bounds = array<i64: 4, 512>}, {transform_indices = @transform_1, window_bounds = array<i64: 512, 1>}, {transform_indices = @transform_2, window_bounds = array<i64: 1, 1>}, {transform_indices = @transform_3, window_bounds = array<i64: 4, 1>}]} {
    %c0_i32 = arith.constant 0 : i32
    %0 = arith.cmpi eq, %arg2, %c0_i32 : i32
    %1 = arith.extui %0 : i1 to i32
    %c0_i32_0 = arith.constant 0 : i32
    %2 = arith.cmpi ne, %1, %c0_i32_0 : i32
    scf.if %2 {
      %cst_9 = arith.constant 0.000000e+00 : f32
      %12 = vector.broadcast %cst_9 : f32 to vector<4x1xf32>
      %c0_10 = arith.constant 0 : index
      %c0_11 = arith.constant 0 : index
      %13 = vector.load %arg7[%c0_10, %c0_11] : memref<4x1xf32, #tpu.memory_space<vmem>>, vector<4x1xf32>
      tpu.vector_store %arg7[%c0_10, %c0_11], %12 {strides = array<i32>} : memref<4x1xf32, #tpu.memory_space<vmem>>, vector<4x1xf32>,
    } else {
    }
    %c0 = arith.constant 0 : index
    %c0_1 = arith.constant 0 : index
    %3 = vector.load %arg7[%c0, %c0_1] : memref<4x1xf32, #tpu.memory_space<vmem>>, vector<4x1xf32>
    %c0_2 = arith.constant 0 : index
    %c0_3 = arith.constant 0 : index
    %4 = vector.load %arg3[%c0_2, %c0_3] : memref<4x512xbf16, #tpu.memory_space<vmem>>, vector<4x512xbf16>
    %c0_4 = arith.constant 0 : index
    %c0_5 = arith.constant 0 : index
    %5 = vector.load %arg4[%c0_4, %c0_5] : memref<512x1xbf16, #tpu.memory_space<vmem>>, vector<512x1xbf16>
    %cst = arith.constant dense<0.000000e+00> : vector<4x1xf32>
    %6 = tpu.matmul %4, %5, %cst {dimension_numbers = #tpu.dot_dimension_numbers<[1], [0], [0], [1], [0, 0, 1, 1], [], []>} : vector<4x512xbf16>, vector<512x1xbf16>, vector<4x1xf32> -> vector<4x1xf32>
    %7 = arith.addf %3, %6 : vector<4x1xf32>
    %c0_6 = arith.constant 0 : index
    %c0_7 = arith.constant 0 : index
    %8 = vector.load %arg7[%c0_6, %c0_7] : memref<4x1xf32, #tpu.memory_space<vmem>>, vector<4x1xf32>
    tpu.vector_store %arg7[%c0_6, %c0_7], %7 {strides = array<i32>} : memref<4x1xf32, #tpu.memory_space<vmem>>, vector<4x1xf32>,
    %c1_i32 = arith.constant 1 : i32
    %9 = arith.cmpi eq, %arg2, %c1_i32 : i32
    %10 = arith.extui %9 : i1 to i32
    %c0_i32_8 = arith.constant 0 : i32
    %11 = arith.cmpi ne, %10, %c0_i32_8 : i32
    scf.if %11 {
      %c0_9 = arith.constant 0 : index
      %c0_10 = arith.constant 0 : index
      %12 = vector.load %arg7[%c0_9, %c0_10] : memref<4x1xf32, #tpu.memory_space<vmem>>, vector<4x1xf32>
      %c0_11 = arith.constant 0 : index
      %c0_12 = arith.constant 0 : index
      %13 = vector.load %arg5[%c0_11, %c0_12] : memref<1x1xf32, #tpu.memory_space<vmem>>, vector<1x1xf32>
      %14 = vector.broadcast %13 : vector<1x1xf32> to vector<4x1xf32>
      %15 = arith.addf %12, %14 : vector<4x1xf32>
      %cst_13 = arith.constant 0.000000e+00 : f32
      %16 = vector.broadcast %cst_13 : f32 to vector<4x1xf32>
      %17 = arith.subf %16, %15 : vector<4x1xf32>
      %18 = math.exp %17 : vector<4x1xf32>
      %cst_14 = arith.constant 1.000000e+00 : f32
      %19 = vector.broadcast %cst_14 : f32 to vector<4x1xf32>
      %20 = arith.addf %19, %18 : vector<4x1xf32>
      %21 = tpu.reciprocal %20 {approx = true} : vector<4x1xf32> -> vector<4x1xf32>
      %c0_15 = arith.constant 0 : index
      %c0_16 = arith.constant 0 : index
      %22 = vector.load %arg6[%c0_15, %c0_16] : memref<4x1xf32, #tpu.memory_space<vmem>>, vector<4x1xf32>
      tpu.vector_store %arg6[%c0_15, %c0_16], %21 {strides = array<i32>} : memref<4x1xf32, #tpu.memory_space<vmem>>, vector<4x1xf32>,
    } else {
    }
    return
  }
  func.func @transform_0(%arg0: i32, %arg1: i32, %arg2: i32) -> (i32, i32) {
    %c0_i32 = arith.constant 0 : i32
    return %arg0, %arg2 : i32, i32
  }
  func.func @transform_1(%arg0: i32, %arg1: i32, %arg2: i32) -> (i32, i32) {
    %c0_i32 = arith.constant 0 : i32
    return %arg2, %arg1 : i32, i32
  }
  func.func @transform_2(%arg0: i32, %arg1: i32, %arg2: i32) -> (i32, i32) {
    %c0_i32 = arith.constant 0 : i32
    %c0_i32_0 = arith.constant 0 : i32
    return %c0_i32, %arg1 : i32, i32
  }
  func.func @transform_3(%arg0: i32, %arg1: i32, %arg2: i32) -> (i32, i32) {
    %c0_i32 = arith.constant 0 : i32
    return %arg0, %arg1 : i32, i32
  }
}

</mosaic_0001>

<bundles_post_ra>
// kernel: discriminator_forward.4
= control target key start
LH: loop header
LB: loop body
LE: loop exit
PB: predicated region body
PF: predicated region fallthrough
CT: control target
= control target key end

     0   :  { %vm19_vm0 = vcmask 523264   ;;  %v899_v1 = vmov 0.0   ;;  %vm704_vm1 = vcmask 519168   ;;  %s1297_s1 = inlined_call_operand.vmem [shape: bf16[64,64], index: 1, kind: input, shape index: {}]   ;;  %s1298_s0 = inlined_call_operand.vmem [shape: f32[256,64], index: 0, kind: input, shape index: {}]   ;;  %s1299_s2 = inlined_call_operand.vmem [shape: f32[1,64], index: 2, kind: input, shape index: {}]   ;;  %s1300_s3 = inlined_call_operand.vmem [shape: bf16[256,64], index: 3, kind: output, shape index: {}]  }
   0x1   :  { %v895_v0 = vld [vmem:[%s1297_s1 + $0x18] sm:$0xff]   ;;  %22 = vst.msk [vmem:[#allocation2 + $0x10] sm:$0xff] %vm19_vm0, %v899_v1  ;;  %20 = vst.msk [vmem:[#allocation2] sm:$0xff] %vm19_vm0, %v899_v1  ;;  %v896_v2 = vld [vmem:[%s1297_s1 + $0x10] sm:$0xff]  }
   0x2   :  { %21 = vst.msk [vmem:[#allocation2 + $0x8] sm:$0xff] %vm19_vm0, %v899_v1  ;;  %23 = vst.msk [vmem:[#allocation2 + $0x18] sm:$0xff] %vm19_vm0, %v899_v1  ;;  %846 = vmatprep.subr.bf16.mxu0 %v895_v0  ;;  %886 = vmatprep.subr.bf16.mxu1 %v895_v0  ;;  %v897_v3 = vld [vmem:[%s1297_s1 + $0x8] sm:$0xff]   ;;  %v84_v4 = vld [vmem:[%s1298_s0] sm:$0xff] }
   0x3   :  { %24 = vst.msk [vmem:[#allocation2 + $0x20] sm:$0xff] %vm19_vm0, %v899_v1  ;;  %25 = vst.msk [vmem:[#allocation2 + $0x28] sm:$0xff] %vm19_vm0, %v899_v1  ;;  %847 = vmatpush3.bf16.msra.mxu0 %v895_v0  ;;  %890 = vmatpush3.bf16.msra.mxu1 %v895_v0  ;;  %v85_v5 = vld [vmem:[%s1298_s0 + $0x8] sm:$0xff]  ;;  %v100_v6 = vld [vmem:[%s1298_s0 + $0x80] sm:$0xff] }
   0x4   :  { %26 = vst.msk [vmem:[#allocation2 + $0x30] sm:$0xff] %vm19_vm0, %v899_v1  ;;  %27 = vst.msk [vmem:[#allocation2 + $0x38] sm:$0xff] %vm19_vm0, %v899_v1  ;;  %848 = vmatprep.subr.bf16.mxu0 %v896_v2  ;;  %887 = vmatprep.subr.bf16.mxu1 %v896_v2  ;;  %v116_v7 = vpack.c.bf16 %v85_v5, %v84_v4  ;;  %v101_v8 = vld [vmem:[%s1298_s0 + $0x88] sm:$0xff]  ;;  %v898_v10 = vld [vmem:[%s1297_s1] sm:$0xff]  }
   0x5   :  { %28 = vst.msk [vmem:[#allocation2 + $0x40] sm:$0xff] %vm19_vm0, %v899_v1  ;;  %29 = vst.msk [vmem:[#allocation2 + $0x48] sm:$0xff] %vm19_vm0, %v899_v1  ;;  %v124_v9 = vpack.c.bf16 %v101_v8, %v100_v6  ;;  %v86_v11 = vld [vmem:[%s1298_s0 + $0x10] sm:$0xff]  ;;  %v87_v12 = vld [vmem:[%s1298_s0 + $0x18] sm:$0xff] }
   0x6   :  { %30 = vst.msk [vmem:[#allocation2 + $0x50] sm:$0xff] %vm19_vm0, %v899_v1  ;;  %31 = vst.msk [vmem:[#allocation2 + $0x58] sm:$0xff] %vm19_vm0, %v899_v1  ;;  %854 = vmatprep.mubr.msk.bf16.mxu0 %vm19_vm0, %v116_v7  ;;  %v102_v13 = vld [vmem:[%s1298_s0 + $0x90] sm:$0xff]  ;;  %v103_v14 = vld [vmem:[%s1298_s0 + $0x98] sm:$0xff]  ;;  %v117_v19 = vpack.c.bf16 %v87_v12, %v86_v11 }
   0x7   :  { %32 = vst.msk [vmem:[#allocation2 + $0x60] sm:$0xff] %vm19_vm0, %v899_v1  ;;  %33 = vst.msk [vmem:[#allocation2 + $0x68] sm:$0xff] %vm19_vm0, %v899_v1  ;;  %849 = vmatpush3.bf16.msra.mxu0 %v896_v2  ;;  %891 = vmatpush3.bf16.msra.mxu1 %v896_v2  ;;  %v88_v15 = vld [vmem:[%s1298_s0 + $0x20] sm:$0xff]  ;;  %v89_v16 = vld [vmem:[%s1298_s0 + $0x28] sm:$0xff]  ;;  %v125_v20 = vpack.c.bf16 %v103_v14, %v102_v13 }
   0x8   :  { %34 = vst.msk [vmem:[#allocation2 + $0x70] sm:$0xff] %vm19_vm0, %v899_v1  ;;  %35 = vst.msk [vmem:[#allocation2 + $0x78] sm:$0xff] %vm19_vm0, %v899_v1  ;;  %850 = vmatprep.subr.bf16.mxu0 %v897_v3  ;;  %888 = vmatprep.subr.bf16.mxu1 %v897_v3  ;;  %v104_v17 = vld [vmem:[%s1298_s0 + $0xa0] sm:$0xff]  ;;  %v105_v18 = vld [vmem:[%s1298_s0 + $0xa8] sm:$0xff]  ;;  %v118_v21 = vpack.c.bf16 %v89_v16, %v88_v15 }
   0x9   :  { %36 = vst.msk [vmem:[#allocation2 + $0x80] sm:$0xff] %vm19_vm0, %v899_v1  ;;  %37 = vst.msk [vmem:[#allocation2 + $0x88] sm:$0xff] %vm19_vm0, %v899_v1  ;;  %870 = vmatprep.mubr.msk.bf16.mxu1 %vm19_vm0, %v124_v9  ;;  %v126_v22 = vpack.c.bf16 %v105_v18, %v104_v17  ;;  %v90_v23 = vld [vmem:[%s1298_s0 + $0x30] sm:$0xff]  ;;  %v91_v24 = vld [vmem:[%s1298_s0 + $0x38] sm:$0xff] }
   0xa   :  { %38 = vst.msk [vmem:[#allocation2 + $0x90] sm:$0xff] %vm19_vm0, %v899_v1  ;;  %39 = vst.msk [vmem:[#allocation2 + $0x98] sm:$0xff] %vm19_vm0, %v899_v1  ;;  %v106_v25 = vld [vmem:[%s1298_s0 + $0xb0] sm:$0xff]  ;;  %v107_v26 = vld [vmem:[%s1298_s0 + $0xb8] sm:$0xff]  ;;  %v119_v31 = vpack.c.bf16 %v91_v24, %v90_v23 }
   0xb   :  { %40 = vst.msk [vmem:[#allocation2 + $0xa0] sm:$0xff] %vm19_vm0, %v899_v1  ;;  %41 = vst.msk [vmem:[#allocation2 + $0xa8] sm:$0xff] %vm19_vm0, %v899_v1  ;;  %851 = vmatpush3.bf16.msra.mxu0 %v897_v3  ;;  %892 = vmatpush3.bf16.msra.mxu1 %v897_v3  ;;  %v92_v27 = vld [vmem:[%s1298_s0 + $0x40] sm:$0xff]  ;;  %v93_v28 = vld [vmem:[%s1298_s0 + $0x48] sm:$0xff]  ;;  %v127_v32 = vpack.c.bf16 %v107_v26, %v106_v25 }
   0xc   :  { %42 = vst.msk [vmem:[#allocation2 + $0xb0] sm:$0xff] %vm19_vm0, %v899_v1  ;;  %43 = vst.msk [vmem:[#allocation2 + $0xb8] sm:$0xff] %vm19_vm0, %v899_v1  ;;  %852 = vmatprep.subr.bf16.mxu0 %v898_v10  ;;  %889 = vmatprep.subr.bf16.mxu1 %v898_v10  ;;  %v108_v29 = vld [vmem:[%s1298_s0 + $0xc0] sm:$0xff]  ;;  %v109_v30 = vld [vmem:[%s1298_s0 + $0xc8] sm:$0xff]  ;;  %v120_v33 = vpack.c.bf16 %v93_v28, %v92_v27 }
   0xd   :  { %44 = vst.msk [vmem:[#allocation2 + $0xc0] sm:$0xff] %vm19_vm0, %v899_v1  ;;  %45 = vst.msk [vmem:[#allocation2 + $0xc8] sm:$0xff] %vm19_vm0, %v899_v1  ;;  %v128_v34 = vpack.c.bf16 %v109_v30, %v108_v29  ;;  %v94_v35 = vld [vmem:[%s1298_s0 + $0x50] sm:$0xff]  ;;  %v95_v36 = vld [vmem:[%s1298_s0 + $0x58] sm:$0xff] }
   0xe   :  { %46 = vst.msk [vmem:[#allocation2 + $0xd0] sm:$0xff] %vm19_vm0, %v899_v1  ;;  %47 = vst.msk [vmem:[#allocation2 + $0xd8] sm:$0xff] %vm19_vm0, %v899_v1  ;;  %v110_v37 = vld [vmem:[%s1298_s0 + $0xd0] sm:$0xff]  ;;  %v111_v38 = vld [vmem:[%s1298_s0 + $0xd8] sm:$0xff]  ;;  %v121_v43 = vpack.c.bf16 %v95_v36, %v94_v35 }
   0xf   :  { %48 = vst.msk [vmem:[#allocation2 + $0xe0] sm:$0xff] %vm19_vm0, %v899_v1  ;;  %49 = vst.msk [vmem:[#allocation2 + $0xe8] sm:$0xff] %vm19_vm0, %v899_v1  ;;  %853 = vmatpush3.bf16.msra.mxu0 %v898_v10  ;;  %893 = vmatpush3.bf16.msra.mxu1 %v898_v10  ;;  %v96_v39 = vld [vmem:[%s1298_s0 + $0x60] sm:$0xff]  ;;  %v97_v40 = vld [vmem:[%s1298_s0 + $0x68] sm:$0xff]  ;;  %v129_v44 = vpack.c.bf16 %v111_v38, %v110_v37 }
  0x10   :  { %50 = vst.msk [vmem:[#allocation2 + $0xf0] sm:$0xff] %vm19_vm0, %v899_v1  ;;  %51 = vst.msk [vmem:[#allocation2 + $0xf8] sm:$0xff] %vm19_vm0, %v899_v1  ;;  %v112_v41 = vld [vmem:[%s1298_s0 + $0xe0] sm:$0xff]  ;;  %v113_v42 = vld [vmem:[%s1298_s0 + $0xe8] sm:$0xff]  ;;  %v122_v45 = vpack.c.bf16 %v97_v40, %v96_v39 }
  0x11   :  { %v130_v46 = vpack.c.bf16 %v113_v42, %v112_v41  ;;  %v98_v47 = vld [vmem:[%s1298_s0 + $0x70] sm:$0xff]  ;;  %v99_v48 = vld [vmem:[%s1298_s0 + $0x78] sm:$0xff]  ;;  %v52_v57 = vld [vmem:[#allocation2] sm:$0xff] }
  0x12   :  { %855 = vmatmul.mubr.msk.bf16.vlgmr.msra.gmra.mxu0 %vm19_vm0, %v117_v19  ;;  %871 = vmatmul.mubr.msk.bf16.vlgmr.msra.gmra.mxu1 %vm19_vm0, %v125_v20  ;;  %v114_v49 = vld [vmem:[%s1298_s0 + $0xf0] sm:$0xff]  ;;  %v115_v50 = vld [vmem:[%s1298_s0 + $0xf8] sm:$0xff]  ;;  %v123_v51 = vpack.c.bf16 %v99_v48, %v98_v47  ;;  %v68_v58 = vld [vmem:[#allocation2 + $0x80] sm:$0xff] }
  0x13   :  { %858 = vmatprep.mubr.msk.bf16.mxu0 %vm19_vm0, %v118_v21  ;;  %874 = vmatprep.mubr.msk.bf16.mxu1 %vm19_vm0, %v126_v22  ;;  %v131_v52 = vpack.c.bf16 %v115_v50, %v114_v49  ;;  %v54_v53 = vld [vmem:[#allocation2 + $0x10] sm:$0xff]  ;;  %v55_v63 = vld [vmem:[#allocation2 + $0x18] sm:$0xff]  ;;  %v53_v5 = vld [vmem:[#allocation2 + $0x8] sm:$0xff] }
  0x14   :  { %v70_v54 = vld [vmem:[#allocation2 + $0x90] sm:$0xff]  ;;  %v71_v0 = vld [vmem:[#allocation2 + $0x98] sm:$0xff]  ;;  %v69_v6 = vld [vmem:[#allocation2 + $0x88] sm:$0xff] }
  0x15   :  { %v58_v11 = vld [vmem:[#allocation2 + $0x30] sm:$0xff]  ;;  %v1085_v15 = vld [vmem:[%s1299_s2] ss:$0 sm:$0xff]  ;;  %v59_v30 = vld [vmem:[#allocation2 + $0x38] sm:$0xff] }
  0x16   :  { %v74_v12 = vld [vmem:[#allocation2 + $0xb0] sm:$0xff]  ;;  %v56_v18 = vld [vmem:[#allocation2 + $0x20] sm:$0xff]  ;;  %v57_v40 = vld [vmem:[#allocation2 + $0x28] sm:$0xff] }
  0x17   :  { %v72_v19 = vld [vmem:[#allocation2 + $0xa0] sm:$0xff]  ;;  %v73_v41 = vld [vmem:[#allocation2 + $0xa8] sm:$0xff] }
  0x1a   :  { %859 = vmatmul.mubr.msk.bf16.gmra.mxu0 %vm19_vm0, %v119_v31  ;;  %875 = vmatmul.mubr.msk.bf16.gmra.mxu1 %vm19_vm0, %v127_v32  ;;  %v75_v31 = vld [vmem:[#allocation2 + $0xb8] sm:$0xff] }
  0x1b   :  { %862 = vmatprep.mubr.msk.bf16.mxu0 %vm19_vm0, %v120_v33  ;;  %878 = vmatprep.mubr.msk.bf16.mxu1 %vm19_vm0, %v128_v34 }
  0x22   :  { %863 = vmatmul.mubr.msk.bf16.gmra.mxu0 %vm19_vm0, %v121_v43  ;;  %879 = vmatmul.mubr.msk.bf16.gmra.mxu1 %vm19_vm0, %v129_v44 }
  0x23   :  { %866 = vmatprep.mubr.msk.bf16.mxu0 %vm19_vm0, %v122_v45  ;;  %882 = vmatprep.mubr.msk.bf16.mxu1 %vm19_vm0, %v130_v46 }
  0x2a   :  { %867 = vmatmul.mubr.msk.bf16.gmra.mxu0 %vm19_vm0, %v123_v51  ;;  %883 = vmatmul.mubr.msk.bf16.gmra.mxu1 %vm19_vm0, %v131_v52 }
  0xd2   :  { %v856_v55 = vpop.f32.mrf.mxu0  ;;  %v872_v56 = vpop.f32.mrf.mxu1 }
  0xd3   :  { %v376_v59 = vadd.f32 %v856_v55, %v54_v53  ;;  %v392_v60 = vadd.f32 %v872_v56, %v70_v54 }
  0xd4   :  { %v247_v61 = vpop.f32.mrf.mxu0  ;;  %v311_v62 = vpop.f32.mrf.mxu1 }
  0xd5   :  { %408 = vst.msk [vmem:[#allocation2 + $0x10] sm:$0xff] %vm19_vm0, %v376_v59  ;;  %424 = vst.msk [vmem:[#allocation2 + $0x90] sm:$0xff] %vm19_vm0, %v392_v60  ;;  %v374_v1 = vadd.f32 %v247_v61, %v52_v57  ;;  %v390_v2 = vadd.f32 %v311_v62, %v68_v58 }
  0xd6   :  { %v857_v3 = vpop.f32.mrf.mxu0  ;;  %v873_v4 = vpop.f32.mrf.mxu1 }
  0xd7   :  { %406 = vst.msk [vmem:[#allocation2] sm:$0xff] %vm19_vm0, %v374_v1  ;;  %422 = vst.msk [vmem:[#allocation2 + $0x80] sm:$0xff] %vm19_vm0, %v390_v2  ;;  %v377_v7 = vadd.f32 %v857_v3, %v55_v63  ;;  %v393_v8 = vadd.f32 %v873_v4, %v71_v0 }
  0xd8   :  { %v250_v9 = vpop.f32.mrf.mxu0  ;;  %v314_v10 = vpop.f32.mrf.mxu1 }
  0xd9   :  { %409 = vst.msk [vmem:[#allocation2 + $0x18] sm:$0xff] %vm19_vm0, %v377_v7  ;;  %425 = vst.msk [vmem:[#allocation2 + $0x98] sm:$0xff] %vm19_vm0, %v393_v8  ;;  %v375_v13 = vadd.f32 %v250_v9, %v53_v5  ;;  %v391_v14 = vadd.f32 %v314_v10, %v69_v6 }
  0xda   :  { %v860_v16 = vpop.f32.mrf.mxu0  ;;  %v876_v17 = vpop.f32.mrf.mxu1 }
  0xdb   :  { %407 = vst.msk [vmem:[#allocation2 + $0x8] sm:$0xff] %vm19_vm0, %v375_v13  ;;  %423 = vst.msk [vmem:[#allocation2 + $0x88] sm:$0xff] %vm19_vm0, %v391_v14  ;;  %v380_v20 = vadd.f32 %v860_v16, %v58_v11  ;;  %v396_v21 = vadd.f32 %v876_v17, %v74_v12 }
  0xdc   :  { %v443_v22 = vld [vmem:[#allocation2 + $0x10] sm:$0xff]  ;;  %v263_v24 = vpop.f32.mrf.mxu0  ;;  %v327_v25 = vpop.f32.mrf.mxu1 }
  0xdd   :  { %v459_v23 = vld [vmem:[#allocation2 + $0x90] sm:$0xff]  ;;  %v482_v26 = vadd.f32 %v1085_v15, %v443_v22  ;;  %412 = vst.msk [vmem:[#allocation2 + $0x30] sm:$0xff] %vm19_vm0, %v380_v20  ;;  %428 = vst.msk [vmem:[#allocation2 + $0xb0] sm:$0xff] %vm19_vm0, %v396_v21  ;;  %v378_v28 = vadd.f32 %v263_v24, %v56_v18  ;;  %v394_v29 = vadd.f32 %v327_v25, %v72_v19 }
  0xde   :  { %v498_v27 = vadd.f32 %v1085_v15, %v459_v23  ;;  %v441_v32 = vld [vmem:[#allocation2] sm:$0xff]  ;;  %v861_v34 = vpop.f32.mrf.mxu0  ;;  %v877_v35 = vpop.f32.mrf.mxu1 }
  0xdf   :  { %v457_v33 = vld [vmem:[#allocation2 + $0x80] sm:$0xff]  ;;  %v514_v36 = vmul.f32 0.2, %v482_v26  ;;  %v480_v38 = vadd.f32 %v1085_v15, %v441_v32  ;;  %410 = vst.msk [vmem:[#allocation2 + $0x20] sm:$0xff] %vm19_vm0, %v378_v28  ;;  %426 = vst.msk [vmem:[#allocation2 + $0xa0] sm:$0xff] %vm19_vm0, %v394_v29  ;;  %v381_v44 = vadd.f32 %v861_v34, %v59_v30  ;;  %v397_v45 = vadd.f32 %v877_v35, %v75_v31 }
  0xe0   :  { %v530_v37 = vmul.f32 0.2, %v498_v27  ;;  %v496_v39 = vadd.f32 %v1085_v15, %v457_v33  ;;  %v444_v42 = vld [vmem:[#allocation2 + $0x18] sm:$0xff]  ;;  %v266_v46 = vpop.f32.mrf.mxu0  ;;  %v330_v47 = vpop.f32.mrf.mxu1 }
  0xe1   :  { %v460_v43 = vld [vmem:[#allocation2 + $0x98] sm:$0xff]  ;;  %v546_v48 = vmax.f32 %v482_v26, %v514_v36  ;;  %v512_v50 = vmul.f32 0.2, %v480_v38  ;;  %v483_v52 = vadd.f32 %v1085_v15, %v444_v42  ;;  %413 = vst.msk [vmem:[#allocation2 + $0x38] sm:$0xff] %vm19_vm0, %v381_v44  ;;  %429 = vst.msk [vmem:[#allocation2 + $0xb8] sm:$0xff] %vm19_vm0, %v397_v45  ;;  %v379_v56 = vadd.f32 %v266_v46, %v57_v40  ;;  %v78_v42 = vld [vmem:[#allocation2 + $0xd0] sm:$0xff] }
  0xe2   :  { %v562_v49 = vmax.f32 %v498_v27, %v530_v37  ;;  %v528_v51 = vmul.f32 0.2, %v496_v39  ;;  %v499_v53 = vadd.f32 %v1085_v15, %v460_v43  ;;  %v442_v54 = vld [vmem:[#allocation2 + $0x8] sm:$0xff]  ;;  %v395_v57 = vadd.f32 %v330_v47, %v73_v41  ;;  %v1101_v58 = vpop.f32.mrf.mxu0  ;;  %v1103_v59 = vpop.f32.mrf.mxu1  ;;  %v62_v41 = vld [vmem:[#allocation2 + $0x50] sm:$0xff]  ;;  %v60_v43 = vld [vmem:[#allocation2 + $0x40] sm:$0xff] }
  0xe3   :  { %v458_v55 = vld [vmem:[#allocation2 + $0x88] sm:$0xff]  ;;  %v796_v60 = vpack.c.bf16 %v546_v48, %v546_v48  ;;  %v544_v62 = vmax.f32 %v480_v38, %v512_v50  ;;  %v515_v0 = vmul.f32 0.2, %v483_v52  ;;  %v481_v2 = vadd.f32 %v1085_v15, %v442_v54  ;;  %411 = vst.msk [vmem:[#allocation2 + $0x28] sm:$0xff] %vm19_vm0, %v379_v56 }
  0xe4   :  { %v812_v61 = vpack.c.bf16 %v562_v49, %v562_v49  ;;  %v560_v63 = vmax.f32 %v496_v39, %v528_v51  ;;  %v531_v1 = vmul.f32 0.2, %v499_v53  ;;  %v497_v3 = vadd.f32 %v1085_v15, %v458_v55  ;;  %v447_v4 = vld [vmem:[#allocation2 + $0x30] sm:$0xff]  ;;  %427 = vst.msk [vmem:[#allocation2 + $0xa8] sm:$0xff] %vm19_vm0, %v395_v57  ;;  %v1109_v6 = vpop.f32.mrf.mxu0  ;;  %v1111_v7 = vpop.f32.mrf.mxu1  ;;  %v63_v57 = vld [vmem:[#allocation2 + $0x58] sm:$0xff] }
  0xe5   :  { %v463_v5 = vld [vmem:[#allocation2 + $0xb0] sm:$0xff]  ;;  %707 = vst.msk [vmem:[%s1300_s3 + $0x8] sm:$0xf] %vm704_vm1, %v796_v60  ;;  %v794_v8 = vpack.c.bf16 %v544_v62, %v544_v62  ;;  %v486_v10 = vadd.f32 %v1085_v15, %v447_v4  ;;  %v547_v12 = vmax.f32 %v483_v52, %v515_v0  ;;  %v513_v14 = vmul.f32 0.2, %v481_v2  ;;  %v76_v52 = vld [vmem:[#allocation2 + $0xc0] sm:$0xff] }
  0xe6   :  { %723 = vst.msk [vmem:[%s1300_s3 + $0x48] sm:$0xf] %vm704_vm1, %v812_v61  ;;  %v810_v9 = vpack.c.bf16 %v560_v63, %v560_v63  ;;  %v502_v11 = vadd.f32 %v1085_v15, %v463_v5  ;;  %v563_v13 = vmax.f32 %v499_v53, %v531_v1  ;;  %v529_v16 = vmul.f32 0.2, %v497_v3  ;;  %v445_v17 = vld [vmem:[#allocation2 + $0x20] sm:$0xff]  ;;  %v1123_v19 = vpop.f32.mrf.mxu0  ;;  %v1125_v20 = vpop.f32.mrf.mxu1  ;;  %v79_v60 = vld [vmem:[#allocation2 + $0xd8] sm:$0xff] }
  0xe7   :  { %v461_v18 = vld [vmem:[#allocation2 + $0xa0] sm:$0xff]  ;;  %705 = vst.msk [vmem:[%s1300_s3] sm:$0xf] %vm704_vm1, %v794_v8  ;;  %v518_v21 = vmul.f32 0.2, %v486_v10  ;;  %v484_v23 = vadd.f32 %v1085_v15, %v445_v17  ;;  %v797_v25 = vpack.c.bf16 %v547_v12, %v547_v12  ;;  %v545_v27 = vmax.f32 %v481_v2, %v513_v14  ;;  %v77_v4 = vld [vmem:[#allocation2 + $0xc8] sm:$0xff] }
  0xe8   :  { %721 = vst.msk [vmem:[%s1300_s3 + $0x40] sm:$0xf] %vm704_vm1, %v810_v9  ;;  %v534_v22 = vmul.f32 0.2, %v502_v11  ;;  %v500_v24 = vadd.f32 %v1085_v15, %v461_v18  ;;  %v813_v26 = vpack.c.bf16 %v563_v13, %v563_v13  ;;  %v561_v28 = vmax.f32 %v497_v3, %v529_v16  ;;  %v1137_v29 = vpop.f32.mrf.mxu0  ;;  %v1139_v30 = vpop.f32.mrf.mxu1  ;;  %v448_v35 = vld [vmem:[#allocation2 + $0x38] sm:$0xff]  ;;  %v61_v3 = vld [vmem:[#allocation2 + $0x48] sm:$0xff] }
  0xe9   :  { %v550_v31 = vmax.f32 %v486_v10, %v518_v21  ;;  %v516_v33 = vmul.f32 0.2, %v484_v23  ;;  %v464_v36 = vld [vmem:[#allocation2 + $0xb8] sm:$0xff]  ;;  %708 = vst.msk [vmem:[%s1300_s3 + $0xc] sm:$0xf] %vm704_vm1, %v797_v25  ;;  %v795_v37 = vpack.c.bf16 %v545_v27, %v545_v27  ;;  %v487_v39 = vadd.f32 %v1085_v15, %v448_v35  ;;  %v82_v12 = vld [vmem:[#allocation2 + $0xf0] sm:$0xff] }
  0xea   :  { %v566_v32 = vmax.f32 %v502_v11, %v534_v22  ;;  %v532_v34 = vmul.f32 0.2, %v500_v24  ;;  %724 = vst.msk [vmem:[%s1300_s3 + $0x4c] sm:$0xf] %vm704_vm1, %v813_v26  ;;  %v811_v38 = vpack.c.bf16 %v561_v28, %v561_v28  ;;  %v503_v40 = vadd.f32 %v1085_v15, %v464_v36  ;;  %v868_v44 = vpop.f32.mrf.mxu0  ;;  %v884_v45 = vpop.f32.mrf.mxu1  ;;  %v446_v50 = vld [vmem:[#allocation2 + $0x28] sm:$0xff]  ;;  %v66_v11 = vld [vmem:[#allocation2 + $0x70] sm:$0xff] }
  0xeb   :  { %v800_v46 = vpack.c.bf16 %v550_v31, %v550_v31  ;;  %v548_v48 = vmax.f32 %v484_v23, %v516_v33  ;;  %v462_v51 = vld [vmem:[#allocation2 + $0xa8] sm:$0xff]  ;;  %706 = vst.msk [vmem:[%s1300_s3 + $0x4] sm:$0xf] %vm704_vm1, %v795_v37  ;;  %v519_v53 = vmul.f32 0.2, %v487_v39  ;;  %v485_v55 = vadd.f32 %v1085_v15, %v446_v50  ;;  %v64_v18 = vld [vmem:[#allocation2 + $0x60] sm:$0xff] }
  0xec   :  { %v816_v47 = vpack.c.bf16 %v566_v32, %v566_v32  ;;  %v564_v49 = vmax.f32 %v500_v24, %v532_v34  ;;  %722 = vst.msk [vmem:[%s1300_s3 + $0x44] sm:$0xf] %vm704_vm1, %v811_v38  ;;  %v535_v54 = vmul.f32 0.2, %v503_v40  ;;  %v501_v56 = vadd.f32 %v1085_v15, %v462_v51  ;;  %v295_v61 = vpop.f32.mrf.mxu0  ;;  %v359_v62 = vpop.f32.mrf.mxu1  ;;  %v80_v21 = vld [vmem:[#allocation2 + $0xe0] sm:$0xff]  ;;  %v67_v22 = vld [vmem:[#allocation2 + $0x78] sm:$0xff] }
  0xed   :  { %711 = vst.msk [vmem:[%s1300_s3 + $0x18] sm:$0xf] %vm704_vm1, %v800_v46  ;;  %v798_v63 = vpack.c.bf16 %v548_v48, %v548_v48  ;;  %v384_v1 = vadd.f32 %v1101_v58, %v62_v41  ;;  %v400_v2 = vadd.f32 %v1103_v59, %v78_v42  ;;  %v551_v5 = vmax.f32 %v487_v39, %v519_v53  ;;  %v83_v27 = vld [vmem:[#allocation2 + $0xf8] sm:$0xff]  ;;  %v65_v28 = vld [vmem:[#allocation2 + $0x68] sm:$0xff] }
  0xee   :  { %727 = vst.msk [vmem:[%s1300_s3 + $0x58] sm:$0xf] %vm704_vm1, %v816_v47  ;;  %v814_v0 = vpack.c.bf16 %v564_v49, %v564_v49  ;;  %v567_v8 = vmax.f32 %v503_v40, %v535_v54  ;;  %v517_v9 = vmul.f32 0.2, %v485_v55  ;;  %v533_v10 = vmul.f32 0.2, %v501_v56  ;;  %v869_v13 = vpop.f32.mrf.mxu0  ;;  %v885_v14 = vpop.f32.mrf.mxu1 }
  0xef   :  { %709 = vst.msk [vmem:[%s1300_s3 + $0x10] sm:$0xf] %vm704_vm1, %v798_v63  ;;  %v382_v58 = vadd.f32 %v1109_v6, %v60_v43  ;;  %v398_v59 = vadd.f32 %v1111_v7, %v76_v52  ;;  %v385_v16 = vadd.f32 %v1123_v19, %v63_v57  ;;  %v401_v17 = vadd.f32 %v1125_v20, %v79_v60  ;;  %v81_v32 = vld [vmem:[#allocation2 + $0xe8] sm:$0xff] }
  0xf0   :  { %725 = vst.msk [vmem:[%s1300_s3 + $0x50] sm:$0xf] %vm704_vm1, %v814_v0  ;;  %v801_v23 = vpack.c.bf16 %v551_v5, %v551_v5  ;;  %v817_v24 = vpack.c.bf16 %v567_v8, %v567_v8  ;;  %v549_v25 = vmax.f32 %v485_v55, %v517_v9  ;;  %v565_v26 = vmax.f32 %v501_v56, %v533_v10  ;;  %v298_v31 = vpop.f32.mrf.mxu0  ;;  %v362_v33 = vpop.f32.mrf.mxu1 }
  0xf1   :  { %416 = vst.msk [vmem:[#allocation2 + $0x50] sm:$0xff] %vm19_vm0, %v384_v1  ;;  %432 = vst.msk [vmem:[#allocation2 + $0xd0] sm:$0xff] %vm19_vm0, %v400_v2  ;;  %v383_v6 = vadd.f32 %v1137_v29, %v61_v3  ;;  %v399_v7 = vadd.f32 %v1139_v30, %v77_v4  ;;  %v388_v19 = vadd.f32 %v868_v44, %v66_v11 }
  0xf2   :  { %414 = vst.msk [vmem:[#allocation2 + $0x40] sm:$0xff] %vm19_vm0, %v382_v58  ;;  %430 = vst.msk [vmem:[#allocation2 + $0xc0] sm:$0xff] %vm19_vm0, %v398_v59  ;;  %v404_v20 = vadd.f32 %v884_v45, %v82_v12  ;;  %v799_v34 = vpack.c.bf16 %v549_v25, %v549_v25  ;;  %v815_v35 = vpack.c.bf16 %v565_v26, %v565_v26 }
  0xf3   :  { %417 = vst.msk [vmem:[#allocation2 + $0x58] sm:$0xff] %vm19_vm0, %v385_v16  ;;  %433 = vst.msk [vmem:[#allocation2 + $0xd8] sm:$0xff] %vm19_vm0, %v401_v17  ;;  %v386_v36 = vadd.f32 %v295_v61, %v64_v18  ;;  %v402_v37 = vadd.f32 %v359_v62, %v80_v21  ;;  %v389_v29 = vadd.f32 %v869_v13, %v67_v22 }
  0xf4   :  { %712 = vst.msk [vmem:[%s1300_s3 + $0x1c] sm:$0xf] %vm704_vm1, %v801_v23  ;;  %728 = vst.msk [vmem:[%s1300_s3 + $0x5c] sm:$0xf] %vm704_vm1, %v817_v24  ;;  %v405_v30 = vadd.f32 %v885_v14, %v83_v27  ;;  %v387_v38 = vadd.f32 %v298_v31, %v65_v28  ;;  %v403_v39 = vadd.f32 %v362_v33, %v81_v32 }
  0xf5   :  { %415 = vst.msk [vmem:[#allocation2 + $0x48] sm:$0xff] %vm19_vm0, %v383_v6  ;;  %431 = vst.msk [vmem:[#allocation2 + $0xc8] sm:$0xff] %vm19_vm0, %v399_v7 }
  0xf6   :  { %420 = vst.msk [vmem:[#allocation2 + $0x70] sm:$0xff] %vm19_vm0, %v388_v19  ;;  %436 = vst.msk [vmem:[#allocation2 + $0xf0] sm:$0xff] %vm19_vm0, %v404_v20 }
  0xf7   :  { %710 = vst.msk [vmem:[%s1300_s3 + $0x14] sm:$0xf] %vm704_vm1, %v799_v34  ;;  %726 = vst.msk [vmem:[%s1300_s3 + $0x54] sm:$0xf] %vm704_vm1, %v815_v35 }
  0xf8   :  { %418 = vst.msk [vmem:[#allocation2 + $0x60] sm:$0xff] %vm19_vm0, %v386_v36  ;;  %434 = vst.msk [vmem:[#allocation2 + $0xe0] sm:$0xff] %vm19_vm0, %v402_v37  ;;  %v451_v40 = vld [vmem:[#allocation2 + $0x50] sm:$0xff] }
  0xf9   :  { %421 = vst.msk [vmem:[#allocation2 + $0x78] sm:$0xff] %vm19_vm0, %v389_v29  ;;  %437 = vst.msk [vmem:[#allocation2 + $0xf8] sm:$0xff] %vm19_vm0, %v405_v30  ;;  %v467_v41 = vld [vmem:[#allocation2 + $0xd0] sm:$0xff]  ;;  %v490_v42 = vadd.f32 %v1085_v15, %v451_v40  ;;  %v449_v44 = vld [vmem:[#allocation2 + $0x40] sm:$0xff] }
  0xfa   :  { %419 = vst.msk [vmem:[#allocation2 + $0x68] sm:$0xff] %vm19_vm0, %v387_v38  ;;  %435 = vst.msk [vmem:[#allocation2 + $0xe8] sm:$0xff] %vm19_vm0, %v403_v39  ;;  %v506_v43 = vadd.f32 %v1085_v15, %v467_v41  ;;  %v465_v45 = vld [vmem:[#allocation2 + $0xc0] sm:$0xff]  ;;  %v452_v46 = vld [vmem:[#allocation2 + $0x58] sm:$0xff]  ;;  %v488_v49 = vadd.f32 %v1085_v15, %v449_v44 }
  0xfb   :  { %v522_v47 = vmul.f32 0.2, %v490_v42  ;;  %v504_v50 = vadd.f32 %v1085_v15, %v465_v45  ;;  %v468_v51 = vld [vmem:[#allocation2 + $0xd8] sm:$0xff]  ;;  %v491_v52 = vadd.f32 %v1085_v15, %v452_v46 }
  0xfc   :  { %v538_v48 = vmul.f32 0.2, %v506_v43  ;;  %v507_v53 = vadd.f32 %v1085_v15, %v468_v51  ;;  %v450_v54 = vld [vmem:[#allocation2 + $0x48] sm:$0xff]  ;;  %v520_v60 = vmul.f32 0.2, %v488_v49 }
  0xfd   :  { %v466_v55 = vld [vmem:[#allocation2 + $0xc8] sm:$0xff]  ;;  %v554_v56 = vmax.f32 %v490_v42, %v522_v47  ;;  %v536_v61 = vmul.f32 0.2, %v504_v50  ;;  %v523_v62 = vmul.f32 0.2, %v491_v52  ;;  %v489_v0 = vadd.f32 %v1085_v15, %v450_v54  ;;  %v455_v2 = vld [vmem:[#allocation2 + $0x70] sm:$0xff] }
  0xfe   :  { %v570_v57 = vmax.f32 %v506_v43, %v538_v48  ;;  %v539_v63 = vmul.f32 0.2, %v507_v53  ;;  %v505_v1 = vadd.f32 %v1085_v15, %v466_v55  ;;  %v471_v3 = vld [vmem:[#allocation2 + $0xf0] sm:$0xff]  ;;  %v552_v8 = vmax.f32 %v488_v49, %v520_v60 }
  0xff   :  { %v804_v4 = vpack.c.bf16 %v554_v56, %v554_v56  ;;  %v568_v9 = vmax.f32 %v504_v50, %v536_v61  ;;  %v555_v10 = vmax.f32 %v491_v52, %v523_v62  ;;  %v521_v12 = vmul.f32 0.2, %v489_v0  ;;  %v453_v14 = vld [vmem:[#allocation2 + $0x60] sm:$0xff] }
 0x100   :  { %v820_v5 = vpack.c.bf16 %v570_v57, %v570_v57  ;;  %v571_v11 = vmax.f32 %v507_v53, %v539_v63  ;;  %v537_v13 = vmul.f32 0.2, %v505_v1  ;;  %v469_v58 = vld [vmem:[#allocation2 + $0xe0] sm:$0xff]  ;;  %v802_v59 = vpack.c.bf16 %v552_v8, %v552_v8  ;;  %v456_v21 = vld [vmem:[#allocation2 + $0x78] sm:$0xff] }
 0x101   :  { %715 = vst.msk [vmem:[%s1300_s3 + $0x28] sm:$0xf] %vm704_vm1, %v804_v4  ;;  %v818_v16 = vpack.c.bf16 %v568_v9, %v568_v9  ;;  %v494_v17 = vadd.f32 %v1085_v15, %v455_v2  ;;  %v510_v18 = vadd.f32 %v1085_v15, %v471_v3  ;;  %v472_v22 = vld [vmem:[#allocation2 + $0xf8] sm:$0xff]  ;;  %v805_v23 = vpack.c.bf16 %v555_v10, %v555_v10  ;;  %v454_v33 = vld [vmem:[#allocation2 + $0x68] sm:$0xff] }
 0x102   :  { %731 = vst.msk [vmem:[%s1300_s3 + $0x68] sm:$0xf] %vm704_vm1, %v820_v5  ;;  %v821_v24 = vpack.c.bf16 %v571_v11, %v571_v11  ;;  %v553_v25 = vmax.f32 %v489_v0, %v521_v12  ;;  %v569_v26 = vmax.f32 %v505_v1, %v537_v13  ;;  %713 = vst.msk [vmem:[%s1300_s3 + $0x20] sm:$0xf] %vm704_vm1, %v802_v59  ;;  %v470_v6 = vld [vmem:[#allocation2 + $0xe8] sm:$0xff] }
 0x103   :  { %729 = vst.msk [vmem:[%s1300_s3 + $0x60] sm:$0xf] %vm704_vm1, %v818_v16  ;;  %v526_v27 = vmul.f32 0.2, %v494_v17  ;;  %v542_v28 = vmul.f32 0.2, %v510_v18  ;;  %v492_v31 = vadd.f32 %v1085_v15, %v453_v14  ;;  %v508_v32 = vadd.f32 %v1085_v15, %v469_v58 }
 0x104   :  { %716 = vst.msk [vmem:[%s1300_s3 + $0x2c] sm:$0xf] %vm704_vm1, %v805_v23  ;;  %732 = vst.msk [vmem:[%s1300_s3 + $0x6c] sm:$0xf] %vm704_vm1, %v821_v24  ;;  %v803_v7 = vpack.c.bf16 %v553_v25, %v553_v25  ;;  %v819_v19 = vpack.c.bf16 %v569_v26, %v569_v26  ;;  %v495_v20 = vadd.f32 %v1085_v15, %v456_v21 }
 0x105   :  { %v511_v34 = vadd.f32 %v1085_v15, %v472_v22  ;;  %v558_v35 = vmax.f32 %v494_v17, %v526_v27  ;;  %v574_v36 = vmax.f32 %v510_v18, %v542_v28  ;;  %v524_v37 = vmul.f32 0.2, %v492_v31 }
 0x106   :  { %v540_v29 = vmul.f32 0.2, %v508_v32  ;;  %714 = vst.msk [vmem:[%s1300_s3 + $0x24] sm:$0xf] %vm704_vm1, %v803_v7  ;;  %730 = vst.msk [vmem:[%s1300_s3 + $0x64] sm:$0xf] %vm704_vm1, %v819_v19  ;;  %v493_v39 = vadd.f32 %v1085_v15, %v454_v33  ;;  %v509_v40 = vadd.f32 %v1085_v15, %v470_v6 }
 0x107   :  { %v527_v30 = vmul.f32 0.2, %v495_v20  ;;  %v543_v38 = vmul.f32 0.2, %v511_v34  ;;  %v808_v41 = vpack.c.bf16 %v558_v35, %v558_v35  ;;  %v824_v42 = vpack.c.bf16 %v574_v36, %v574_v36 }
 0x108   :  { %v556_v43 = vmax.f32 %v492_v31, %v524_v37  ;;  %v572_v44 = vmax.f32 %v508_v32, %v540_v29  ;;  %v525_v47 = vmul.f32 0.2, %v493_v39  ;;  %v541_v48 = vmul.f32 0.2, %v509_v40 }
 0x109   :  { %v559_v45 = vmax.f32 %v495_v20, %v527_v30  ;;  %v575_v46 = vmax.f32 %v511_v34, %v543_v38  ;;  %719 = vst.msk [vmem:[%s1300_s3 + $0x38] sm:$0xf] %vm704_vm1, %v808_v41  ;;  %735 = vst.msk [vmem:[%s1300_s3 + $0x78] sm:$0xf] %vm704_vm1, %v824_v42 }
 0x10a   :  { %v806_v49 = vpack.c.bf16 %v556_v43, %v556_v43  ;;  %v822_v15 = vpack.c.bf16 %v572_v44, %v572_v44  ;;  %v557_v52 = vmax.f32 %v493_v39, %v525_v47  ;;  %v573_v53 = vmax.f32 %v509_v40, %v541_v48 }
 0x10b   :  { %v809_v50 = vpack.c.bf16 %v559_v45, %v559_v45  ;;  %v825_v51 = vpack.c.bf16 %v575_v46, %v575_v46 }
 0x10c   :  { %717 = vst.msk [vmem:[%s1300_s3 + $0x30] sm:$0xf] %vm704_vm1, %v806_v49  ;;  %733 = vst.msk [vmem:[%s1300_s3 + $0x70] sm:$0xf] %vm704_vm1, %v822_v15  ;;  %v807_v54 = vpack.c.bf16 %v557_v52, %v557_v52  ;;  %v823_v55 = vpack.c.bf16 %v573_v53, %v573_v53 }
 0x10d   :  { %720 = vst.msk [vmem:[%s1300_s3 + $0x3c] sm:$0xf] %vm704_vm1, %v809_v50  ;;  %736 = vst.msk [vmem:[%s1300_s3 + $0x7c] sm:$0xf] %vm704_vm1, %v825_v51 }
 0x10e   :  { %718 = vst.msk [vmem:[%s1300_s3 + $0x34] sm:$0xf] %vm704_vm1, %v807_v54  ;;  %734 = vst.msk [vmem:[%s1300_s3 + $0x74] sm:$0xf] %vm704_vm1, %v823_v55 }

// kernel: discriminator_forward.5
= control target key start
LH: loop header
LB: loop body
LE: loop exit
PB: predicated region body
PF: predicated region fallthrough
CT: control target
= control target key end

     0   :  { %s1293_s15 = smov 0   ;;  %s1295_s16 = smov 0   ;;  %s1436_s0 = inlined_call_operand.vmem [shape: bf16[64,1024], index: 0, kind: input, shape index: {}]   ;;  %s1437_s1 = inlined_call_operand.vmem [shape: bf16[1024,128], index: 1, kind: input, shape index: {}]   ;;  %s1438_s2 = inlined_call_operand.vmem [shape: f32[1,128], index: 2, kind: input, shape index: {}]   ;;  %s1439_s3 = inlined_call_operand.vmem [shape: f32[1,128], index: 3, kind: input, shape index: {}]   ;;  %s1440_s4 = inlined_call_operand.vmem [shape: bf16[64,128], index: 4, kind: output, shape index: {}]  }
   0x1   :  { %s1297_s17 = smov 0  }
   0x2 LB: > { %s1309_s18 = sadd.s32 4294967295, %s1265_s17   ;;  %s1312_s19 = sadd.s32 1, %s1265_s17   ;;  %s1265_s17 = sphi %s1297_s17, %s1443_s17   ;;  %s1261_s16 = sphi %s1295_s16, %s1442_s16   ;;  %s1257_s15 = sphi %s1293_s15, %s1441_s15  }
   0x3   : > { %s18_s20 = ssub.s32 %s1265_s17, %s1312_s19  ;;  %s21_s21 = sadd.s32 1, %s1261_s16 }
   0x4   : > { %p19_p0 = scmp.eq.s32.totalorder %s18_s20, 0  ;;  %p28_p1 = scmp.ne.s32.totalorder %s1261_s16, %s1257_s15 }
   0x5   : > { %p29_p2 = scmp.eq.s32.totalorder %s1265_s17, 0  ;;  %p978_p4 = scmp.ge.s32.totalorder %s1265_s17, 2 }
   0x6   : > { %s1321_s22 = scalar_select %p19_p0, %s1261_s16, %s21_s21  }
   0x7   : > { %p30_p3 = por %p29_p2, %p28_p1  ;;  %149 = sbr.rel (%p978_p4) target bundleno = 24 (0x18), region = 24 }
   0xc   : > { %152 = sbr.rel (!%p30_p3) target bundleno = 24 (0x18), region = 28  ;;  %s154_s23 = sand.u32 (%p30_p3), 1, %s1261_s16  }
   0xd   : > { %s1048_s24 = sshll.u32 (%p30_p3), %s1265_s17, 4  ;;  %s979_s25 = sshll.u32 (%p30_p3), %s154_s23, 7 }
   0xe   : > { %s1329_s28 = scalar_lea.vmem (%p30_p3), %s1436_s0, %s1048_s24  ;;  %s156_s29 = scalar_lea.vmem (%p30_p3), [#allocation3], %s979_s25 }
   0xf   : > { %v172_v0 = vld [vmem:[%s1329_s28] sm:$0xff] (%p30_p3)  ;;  %v174_v1 = vld [vmem:[%s1329_s28 + $0x8] sm:$0xff] (%p30_p3) }
  0x10   : > { %v176_v2 = vld [vmem:[%s1329_s28 + $0x20] sm:$0xff] (%p30_p3)  ;;  %173 = vst [vmem:[%s156_s29] sm:$0xff] (%p30_p3), %v172_v0  ;;  %175 = vst [vmem:[%s156_s29 + $0x8] sm:$0xff] (%p30_p3), %v174_v1  ;;  %v178_v3 = vld [vmem:[%s1329_s28 + $0x28] sm:$0xff] (%p30_p3) }
  0x11   : > { %177 = vst [vmem:[%s156_s29 + $0x10] sm:$0xff] %v176_v2  ;;  %v180_v4 = vld [vmem:[%s1329_s28 + $0x40] sm:$0xff]  ;;  %v182_v5 = vld [vmem:[%s1329_s28 + $0x48] sm:$0xff]  ;;  %179 = vst [vmem:[%s156_s29 + $0x18] sm:$0xff] %v178_v3 }
  0x12   : > { %181 = vst [vmem:[%s156_s29 + $0x20] sm:$0xff] %v180_v4  ;;  %183 = vst [vmem:[%s156_s29 + $0x28] sm:$0xff] %v182_v5  ;;  %v184_v6 = vld [vmem:[%s1329_s28 + $0x60] sm:$0xff]  ;;  %v186_v7 = vld [vmem:[%s1329_s28 + $0x68] sm:$0xff] }
  0x13   : > { %v188_v8 = vld [vmem:[%s1329_s28 + $0x80] sm:$0xff]  ;;  %185 = vst [vmem:[%s156_s29 + $0x30] sm:$0xff] %v184_v6  ;;  %187 = vst [vmem:[%s156_s29 + $0x38] sm:$0xff] %v186_v7  ;;  %v190_v9 = vld [vmem:[%s1329_s28 + $0x88] sm:$0xff] }
  0x14   : > { %189 = vst [vmem:[%s156_s29 + $0x40] sm:$0xff] %v188_v8  ;;  %v192_v10 = vld [vmem:[%s1329_s28 + $0xa0] sm:$0xff]  ;;  %v194_v11 = vld [vmem:[%s1329_s28 + $0xa8] sm:$0xff]  ;;  %191 = vst [vmem:[%s156_s29 + $0x48] sm:$0xff] %v190_v9 }
  0x15   : > { %193 = vst [vmem:[%s156_s29 + $0x50] sm:$0xff] %v192_v10  ;;  %195 = vst [vmem:[%s156_s29 + $0x58] sm:$0xff] %v194_v11  ;;  %v196_v12 = vld [vmem:[%s1329_s28 + $0xc0] sm:$0xff]  ;;  %v198_v13 = vld [vmem:[%s1329_s28 + $0xc8] sm:$0xff] }
  0x16   : > { %v200_v14 = vld [vmem:[%s1329_s28 + $0xe0] sm:$0xff]  ;;  %197 = vst [vmem:[%s156_s29 + $0x60] sm:$0xff] %v196_v12  ;;  %199 = vst [vmem:[%s156_s29 + $0x68] sm:$0xff] %v198_v13  ;;  %v202_v15 = vld [vmem:[%s1329_s28 + $0xe8] sm:$0xff] }
  0x17   : > { %201 = vst [vmem:[%s156_s29 + $0x70] sm:$0xff] %v200_v14  ;;  %203 = vst [vmem:[%s156_s29 + $0x78] sm:$0xff] %v202_v15 }
  0x18 PF: > { %p982_p5 = scmp.ge.s32.totalorder %s1265_s17, 1  ;;  %p217_p6 = scmp.lt.s32.totalorder %s1265_s17, 3 }
  0x1a   : > { %p218_p7 = pnand %p982_p5, %p217_p6 }
  0x1b   : > { %s224_s30 = sand.u32 (!%p218_p7), 1, %s1257_s15   ;;  %s984_s5 = sshll.u32 (!%p218_p7), %s1309_s18, 6 }
  0x1c   : > { %221 = sbr.rel (%p218_p7) target bundleno = 375 (0x177), region = 55  ;;  %s983_s6 = sshll.u32 (!%p218_p7), %s224_s30, 7 }
  0x1d   : > { %p251_p8 = scmp.lt.s32.totalorder (!%p218_p7), %s984_s5, 127  ;;  %s1356_s11 = scalar_lea.vmem (!%p218_p7), [#allocation3], %s983_s6 }
  0x1e   : > { %p986_p9 = scmp.ne.s32.totalorder (!%p218_p7), %s1309_s18, 0 }
  0x21   : > { %s1445_s5 = smov (!%p251_p8, %s984_s5), 127  ;;  %260 = sbr.rel (%p986_p9) target bundleno = 43 (0x2b), region = 63 }
  0x22   : > { %s985_s7 = sshll.u32 %s1445_s5, 2 }
  0x23   : > { %s1354_s10 = scalar_lea.vmem %s1437_s1, %s985_s7 }
  0x26   : > { %v1267_v16 = vmov 0.0  }
  0x27   : > { %261 = vst [vmem:[#allocation2 + $0x30] sm:$0xff] %v1267_v16  ;;  %262 = vst [vmem:[#allocation2] sm:$0xff] %v1267_v16 }
  0x28   : > { %263 = vst [vmem:[#allocation2 + $0x18] sm:$0xff] %v1267_v16  ;;  %264 = vst [vmem:[#allocation2 + $0x10] sm:$0xff] %v1267_v16 }
  0x29   : > { %265 = vst [vmem:[#allocation2 + $0x8] sm:$0xff] %v1267_v16  ;;  %266 = vst [vmem:[#allocation2 + $0x20] sm:$0xff] %v1267_v16 }
  0x2a   : > { %267 = vst [vmem:[#allocation2 + $0x28] sm:$0xff] %v1267_v16  ;;  %268 = vst [vmem:[#allocation2 + $0x38] sm:$0xff] %v1267_v16 }
  0x2b PF: > { %v1185_v17 = vld [vmem:[%s1354_s10 + $0x78] sm:$0xff]   ;;  %v1189_v21 = vld [vmem:[%s1354_s10 + $0x70] sm:$0xff]   ;;  %v1193_v25 = vld [vmem:[%s1354_s10 + $0x68] sm:$0xff]   ;;  %p1035_p10 = scmp.ne.s32.totalorder %s1309_s18, 1 }
  0x2c   : > { %v1186_v18 = vld [vmem:[%s1354_s10 + $0xf8] sm:$0xff]   ;;  %1080 = vmatprep.subr.bf16.mxu0 %v1185_v17  ;;  %v1190_v22 = vld [vmem:[%s1354_s10 + $0xf0] sm:$0xff]   ;;  %v1194_v26 = vld [vmem:[%s1354_s10 + $0xe8] sm:$0xff]  }
  0x2d   : > { %v1187_v19 = vld [vmem:[%s1354_s10 + $0x38] sm:$0xff]   ;;  %1120 = vmatprep.subr.bf16.mxu1 %v1186_v18  ;;  %v1191_v23 = vld [vmem:[%s1354_s10 + $0x30] sm:$0xff]   ;;  %v1195_v27 = vld [vmem:[%s1354_s10 + $0x28] sm:$0xff]  }
  0x2e   : > { %v1188_v20 = vld [vmem:[%s1354_s10 + $0xb8] sm:$0xff]   ;;  %1081 = vmatpush3.bf16.msra.mxu0 %v1187_v19  ;;  %v1192_v24 = vld [vmem:[%s1354_s10 + $0xb0] sm:$0xff]   ;;  %v1196_v28 = vld [vmem:[%s1354_s10 + $0xa8] sm:$0xff]  }
  0x2f   : > { %1121 = vmatpush3.bf16.msra.mxu1 %v1188_v20  ;;  %1082 = vmatprep.subr.bf16.mxu0 %v1189_v21  ;;  %v1197_v29 = vld [vmem:[%s1354_s10 + $0x60] sm:$0xff]   ;;  %v1201_v33 = vld [vmem:[%s1354_s10 + $0x58] sm:$0xff]   ;;  %v1205_v37 = vld [vmem:[%s1354_s10 + $0x50] sm:$0xff]  }
  0x30   : > { %1122 = vmatprep.subr.bf16.mxu1 %v1190_v22  ;;  %v1198_v30 = vld [vmem:[%s1354_s10 + $0xe0] sm:$0xff]   ;;  %v1202_v34 = vld [vmem:[%s1354_s10 + $0xd8] sm:$0xff]   ;;  %v1206_v38 = vld [vmem:[%s1354_s10 + $0xd0] sm:$0xff]  }
  0x31   : > { %v1199_v31 = vld [vmem:[%s1354_s10 + $0x20] sm:$0xff]   ;;  %v1203_v35 = vld [vmem:[%s1354_s10 + $0x18] sm:$0xff]   ;;  %v1207_v39 = vld [vmem:[%s1354_s10 + $0x10] sm:$0xff]  }
  0x32   : > { %1083 = vmatpush3.bf16.msra.mxu0 %v1191_v23  ;;  %v1200_v32 = vld [vmem:[%s1354_s10 + $0xa0] sm:$0xff]   ;;  %v1204_v36 = vld [vmem:[%s1354_s10 + $0x98] sm:$0xff]   ;;  %v1208_v40 = vld [vmem:[%s1354_s10 + $0x90] sm:$0xff]  }
  0x33   : > { %1123 = vmatpush3.bf16.msra.mxu1 %v1192_v24  ;;  %1084 = vmatprep.subr.bf16.mxu0 %v1193_v25  ;;  %v1209_v41 = vld [vmem:[%s1354_s10 + $0x48] sm:$0xff]   ;;  %v1213_v45 = vld [vmem:[%s1354_s10 + $0x40] sm:$0xff]   ;;  %v269_v8 = vld [vmem:[#allocation2 + $0x30] sm:$0xff] }
  0x34   : > { %1124 = vmatprep.subr.bf16.mxu1 %v1194_v26  ;;  %v1210_v42 = vld [vmem:[%s1354_s10 + $0xc8] sm:$0xff]   ;;  %v1214_v46 = vld [vmem:[%s1354_s10 + $0xc0] sm:$0xff]   ;;  %v271_v26 = vld [vmem:[#allocation2 + $0x18] sm:$0xff] }
  0x35   : > { %v1211_v43 = vld [vmem:[%s1354_s10 + $0x8] sm:$0xff]   ;;  %v1215_v47 = vld [vmem:[%s1354_s10] sm:$0xff]  }
  0x36   : > { %1085 = vmatpush3.bf16.msra.mxu0 %v1195_v27  ;;  %v1212_v44 = vld [vmem:[%s1354_s10 + $0x88] sm:$0xff]   ;;  %v1216_v48 = vld [vmem:[%s1354_s10 + $0x80] sm:$0xff]  }
  0x37   : > { %1125 = vmatpush3.bf16.msra.mxu1 %v1196_v28  ;;  %1086 = vmatprep.subr.bf16.mxu0 %v1197_v29  ;;  %v1217_v49 = vld [vmem:[%s1356_s11] ss:$16 sps:$4 sm:$0xff]   ;;  %v1219_v50 = vld [vmem:[%s1356_s11 + $0x4] ss:$16 sps:$4 sm:$0xff]   ;;  %v1220_v51 = vld [vmem:[%s1356_s11 + $0x8] ss:$16 sps:$4 sm:$0xff]  }
  0x38   : > { %1126 = vmatprep.subr.bf16.mxu1 %v1198_v30  ;;  %v1222_v52 = vld [vmem:[%s1356_s11 + $0xc] ss:$16 sps:$4 sm:$0xff]   ;;  %661 = vmatprep.mubr.bf16.mxu0 %v1219_v50  ;;  %v1223_v53 = vld [vmem:[%s1356_s11 + $0x24] ss:$16 sps:$4 sm:$0xff]   ;;  %v1227_v55 = vld [vmem:[%s1356_s11 + $0x20] ss:$16 sps:$4 sm:$0xff]  }
  0x39   : > { %726 = vmatprep.mubr.bf16.mxu1 %v1222_v52  ;;  %v1225_v54 = vld [vmem:[%s1356_s11 + $0x2c] ss:$16 sps:$4 sm:$0xff]   ;;  %v1228_v56 = vld [vmem:[%s1356_s11 + $0x28] ss:$16 sps:$4 sm:$0xff]   ;;  %v1229_v57 = vld [vmem:[%s1356_s11 + $0x44] ss:$16 sps:$4 sm:$0xff]  }
  0x3a   : > { %1087 = vmatpush3.bf16.msra.mxu0 %v1199_v31  ;;  %v1231_v58 = vld [vmem:[%s1356_s11 + $0x4c] ss:$16 sps:$4 sm:$0xff]   ;;  %v1233_v59 = vld [vmem:[%s1356_s11 + $0x40] ss:$16 sps:$4 sm:$0xff]   ;;  %v1234_v60 = vld [vmem:[%s1356_s11 + $0x48] ss:$16 sps:$4 sm:$0xff]  }
  0x3b   : > { %1127 = vmatpush3.bf16.msra.mxu1 %v1200_v32  ;;  %1088 = vmatprep.subr.bf16.mxu0 %v1201_v33  ;;  %v1235_v61 = vld [vmem:[%s1356_s11 + $0x64] ss:$16 sps:$4 sm:$0xff]   ;;  %v1237_v62 = vld [vmem:[%s1356_s11 + $0x6c] ss:$16 sps:$4 sm:$0xff]   ;;  %v1239_v63 = vld [vmem:[%s1356_s11 + $0x60] ss:$16 sps:$4 sm:$0xff]  }
  0x3c   : > { %1128 = vmatprep.subr.bf16.mxu1 %v1202_v34  ;;  %v1240_v0 = vld [vmem:[%s1356_s11 + $0x68] ss:$16 sps:$4 sm:$0xff]   ;;  %v270_v17 = vld [vmem:[#allocation2] sm:$0xff] }
  0x3e   : > { %1089 = vmatpush3.bf16.msra.mxu0 %v1203_v35  ;;  %v272_v35 = vld [vmem:[#allocation2 + $0x10] sm:$0xff] }
  0x3f   : > { %1129 = vmatpush3.bf16.msra.mxu1 %v1204_v36  ;;  %1090 = vmatprep.subr.bf16.mxu0 %v1205_v37 }
  0x40   : > { %1130 = vmatprep.subr.bf16.mxu1 %v1206_v38 }
  0x42   : > { %1091 = vmatpush3.bf16.msra.mxu0 %v1207_v39 }
  0x43   : > { %1131 = vmatpush3.bf16.msra.mxu1 %v1208_v40  ;;  %1092 = vmatprep.subr.bf16.mxu0 %v1209_v41 }
  0x44   : > { %1132 = vmatprep.subr.bf16.mxu1 %v1210_v42 }
  0x46   : > { %1093 = vmatpush3.bf16.msra.mxu0 %v1211_v43 }
  0x47   : > { %1133 = vmatpush3.bf16.msra.mxu1 %v1212_v44  ;;  %1094 = vmatprep.subr.bf16.mxu0 %v1213_v45  ;;  %v273_v44 = vld [vmem:[#allocation2 + $0x8] sm:$0xff] }
  0x48   : > { %1134 = vmatprep.subr.bf16.mxu1 %v1214_v46 }
  0x4a   : > { %1095 = vmatpush3.bf16.msra.mxu0 %v1215_v47 }
  0x4b   : > { %1135 = vmatpush3.bf16.msra.mxu1 %v1216_v48 }
  0x4d   : > { %662 = vmatmul.mubr.bf16.vlgmr.msra.gmra.mxu0 %v1217_v49 }
  0x4e   : > { %727 = vmatmul.mubr.bf16.vlgmr.msra.gmra.mxu1 %v1220_v51  ;;  %669 = vmatprep.mubr.bf16.mxu0 %v1223_v53  ;;  %v274_v53 = vld [vmem:[#allocation2 + $0x20] sm:$0xff] }
  0x4f   : > { %734 = vmatprep.mubr.bf16.mxu1 %v1225_v54 }
  0x55   : > { %670 = vmatmul.mubr.bf16.gmra.mxu0 %v1227_v55 }
  0x56   : > { %735 = vmatmul.mubr.bf16.gmra.mxu1 %v1228_v56  ;;  %677 = vmatprep.mubr.bf16.mxu0 %v1229_v57 }
  0x57   : > { %742 = vmatprep.mubr.bf16.mxu1 %v1231_v58 }
  0x5d   : > { %678 = vmatmul.mubr.bf16.gmra.mxu0 %v1233_v59 }
  0x5e   : > { %743 = vmatmul.mubr.bf16.gmra.mxu1 %v1234_v60  ;;  %685 = vmatprep.mubr.bf16.mxu0 %v1235_v61 }
  0x5f   : > { %750 = vmatprep.mubr.bf16.mxu1 %v1237_v62  ;;  %v275_v62 = vld [vmem:[#allocation2 + $0x28] sm:$0xff] }
  0x65   : > { %686 = vmatmul.mubr.bf16.gmra.mxu0 %v1239_v63 }
  0x66   : > { %751 = vmatmul.mubr.bf16.gmra.mxu1 %v1240_v0 }
 0x10d   : > { %v1096_v1 = vpop.f32.mrf.mxu0 }
 0x10e   : > { %v1136_v2 = vpop.f32.mrf.mxu1 }
 0x10f   : > { %v1097_v3 = vpop.f32.mrf.mxu0 }
 0x110   : > { %v1098_v4 = vadd.f32 %v1097_v3, %v1096_v1  ;;  %v1137_v5 = vpop.f32.mrf.mxu1 }
 0x111   : > { %v1138_v6 = vadd.f32 %v1137_v5, %v1136_v2  ;;  %v1099_v7 = vpop.f32.mrf.mxu0 }
 0x112   : > { %v1139_v9 = vpop.f32.mrf.mxu1 }
 0x113   : > { %v729_v10 = vadd.f32 %v1138_v6, %v1098_v4  ;;  %v1100_v11 = vpop.f32.mrf.mxu0  ;;  %v276_v6 = vld [vmem:[#allocation2 + $0x38] sm:$0xff] }
 0x114   : > { %v1101_v12 = vadd.f32 %v1100_v11, %v1099_v7  ;;  %v1140_v13 = vpop.f32.mrf.mxu1 }
 0x115   : > { %v759_v14 = vadd.f32 %v729_v10, %v269_v8  ;;  %v1141_v15 = vadd.f32 %v1140_v13, %v1139_v9  ;;  %v1102_v16 = vpop.f32.mrf.mxu0 }
 0x116   : > { %v1142_v18 = vpop.f32.mrf.mxu1 }
 0x117   : > { %767 = vst [vmem:[#allocation2 + $0x30] sm:$0xff] %v759_v14  ;;  %v732_v19 = vadd.f32 %v1141_v15, %v1101_v12  ;;  %v1103_v20 = vpop.f32.mrf.mxu0 }
 0x118   : > { %v1104_v21 = vadd.f32 %v1103_v20, %v1102_v16  ;;  %v1143_v22 = vpop.f32.mrf.mxu1 }
 0x119   : > { %v760_v23 = vadd.f32 %v732_v19, %v270_v17  ;;  %v1144_v24 = vadd.f32 %v1143_v22, %v1142_v18  ;;  %v1105_v25 = vpop.f32.mrf.mxu0 }
 0x11a   : > { %v1145_v27 = vpop.f32.mrf.mxu1 }
 0x11b   : > { %768 = vst [vmem:[#allocation2] sm:$0xff] %v760_v23  ;;  %v737_v28 = vadd.f32 %v1144_v24, %v1104_v21  ;;  %v1106_v29 = vpop.f32.mrf.mxu0 }
 0x11c   : > { %v1107_v30 = vadd.f32 %v1106_v29, %v1105_v25  ;;  %v1146_v31 = vpop.f32.mrf.mxu1 }
 0x11d   : > { %v761_v32 = vadd.f32 %v737_v28, %v271_v26  ;;  %v1147_v33 = vadd.f32 %v1146_v31, %v1145_v27  ;;  %v1108_v34 = vpop.f32.mrf.mxu0 }
 0x11e   : > { %v1148_v36 = vpop.f32.mrf.mxu1 }
 0x11f   : > { %769 = vst [vmem:[#allocation2 + $0x18] sm:$0xff] %v761_v32  ;;  %v740_v37 = vadd.f32 %v1147_v33, %v1107_v30  ;;  %v1109_v38 = vpop.f32.mrf.mxu0 }
 0x120   : > { %v1110_v39 = vadd.f32 %v1109_v38, %v1108_v34  ;;  %v1149_v40 = vpop.f32.mrf.mxu1 }
 0x121   : > { %v762_v41 = vadd.f32 %v740_v37, %v272_v35  ;;  %v1150_v42 = vadd.f32 %v1149_v40, %v1148_v36  ;;  %v1111_v43 = vpop.f32.mrf.mxu0 }
 0x122   : > { %v1151_v45 = vpop.f32.mrf.mxu1 }
 0x123   : > { %770 = vst [vmem:[#allocation2 + $0x10] sm:$0xff] %v762_v41  ;;  %v745_v46 = vadd.f32 %v1150_v42, %v1110_v39  ;;  %v1112_v47 = vpop.f32.mrf.mxu0 }
 0x124   : > { %v1113_v48 = vadd.f32 %v1112_v47, %v1111_v43  ;;  %v1152_v49 = vpop.f32.mrf.mxu1 }
 0x125   : > { %v763_v50 = vadd.f32 %v745_v46, %v273_v44  ;;  %v1153_v51 = vadd.f32 %v1152_v49, %v1151_v45  ;;  %v1114_v52 = vpop.f32.mrf.mxu0 }
 0x126   : > { %v1154_v54 = vpop.f32.mrf.mxu1 }
 0x127   : > { %771 = vst [vmem:[#allocation2 + $0x8] sm:$0xff] %v763_v50  ;;  %v748_v55 = vadd.f32 %v1153_v51, %v1113_v48  ;;  %v1115_v56 = vpop.f32.mrf.mxu0 }
 0x128   : > { %v1116_v57 = vadd.f32 %v1115_v56, %v1114_v52  ;;  %v1155_v58 = vpop.f32.mrf.mxu1 }
 0x129   : > { %v764_v59 = vadd.f32 %v748_v55, %v274_v53  ;;  %v1156_v60 = vadd.f32 %v1155_v58, %v1154_v54  ;;  %v1117_v61 = vpop.f32.mrf.mxu0 }
 0x12a   : > { %v1157_v63 = vpop.f32.mrf.mxu1 }
 0x12b   : > { %772 = vst [vmem:[#allocation2 + $0x20] sm:$0xff] %v764_v59  ;;  %v753_v0 = vadd.f32 %v1156_v60, %v1116_v57  ;;  %v1118_v1 = vpop.f32.mrf.mxu0 }
 0x12c   : > { %v1119_v2 = vadd.f32 %v1118_v1, %v1117_v61  ;;  %v1158_v3 = vpop.f32.mrf.mxu1 }
 0x12d   : > { %v765_v4 = vadd.f32 %v753_v0, %v275_v62  ;;  %v1159_v5 = vadd.f32 %v1158_v3, %v1157_v63 }
 0x12f   : > { %773 = vst [vmem:[#allocation2 + $0x28] sm:$0xff] %v765_v4  ;;  %v756_v7 = vadd.f32 %v1159_v5, %v1119_v2  ;;  %778 = sbr.rel (%p1035_p10) target bundleno = 375 (0x177), region = 67 }
 0x131   : > { %v766_v8 = vadd.f32 %v756_v7, %v276_v6 }
 0x133   : > { %774 = vst [vmem:[#allocation2 + $0x38] sm:$0xff] %v766_v8 }
 0x134   : > { %v779_v9 = vld [vmem:[#allocation2 + $0x30] sm:$0xff]  ;;  %v780_v10 = vld [vmem:[#allocation2] sm:$0xff]  ;;  %v781_v11 = vld [vmem:[#allocation2 + $0x18] sm:$0xff] }
 0x135   : > { %v782_v12 = vld [vmem:[#allocation2 + $0x10] sm:$0xff]  ;;  %v787_v13 = vadd.f32 %v780_v10, %v779_v9  ;;  %v800_v14 = vmul.f32 %v779_v9, %v779_v9  ;;  %v801_v15 = vmul.f32 %v780_v10, %v780_v10  ;;  %v802_v16 = vmul.f32 %v781_v11, %v781_v11  ;;  %v783_v17 = vld [vmem:[#allocation2 + $0x8] sm:$0xff]  ;;  %v784_v21 = vld [vmem:[#allocation2 + $0x20] sm:$0xff] }
 0x136   : > { %v803_v19 = vmul.f32 %v782_v12, %v782_v12  ;;  %v804_v23 = vmul.f32 %v783_v17, %v783_v17  ;;  %v785_v25 = vld [vmem:[#allocation2 + $0x28] sm:$0xff]  ;;  %v805_v27 = vmul.f32 %v784_v21, %v784_v21  ;;  %v1036_v2 = vld [vmem:[%s1438_s2] ss:$0 sm:$0xff] }
 0x137   : > { %v788_v18 = vadd.f32 %v787_v13, %v781_v11  ;;  %v808_v20 = vadd.f32 %v801_v15, %v800_v14  ;;  %v806_v31 = vmul.f32 %v785_v25, %v785_v25  ;;  %v1037_v7 = vld [vmem:[%s1439_s3] ss:$0 sm:$0xff] }
 0x139   : > { %v789_v22 = vadd.f32 %v788_v18, %v782_v12  ;;  %v809_v24 = vadd.f32 %v808_v20, %v802_v16 }
 0x13a   : > { %v786_v29 = vld [vmem:[#allocation2 + $0x38] sm:$0xff] }
 0x13b   : > { %v790_v26 = vadd.f32 %v789_v22, %v783_v17  ;;  %v810_v28 = vadd.f32 %v809_v24, %v803_v19  ;;  %v807_v34 = vmul.f32 %v786_v29, %v786_v29 }
 0x13d   : > { %v791_v30 = vadd.f32 %v790_v26, %v784_v21  ;;  %v811_v32 = vadd.f32 %v810_v28, %v804_v23 }
 0x13f   : > { %v792_v33 = vadd.f32 %v791_v30, %v785_v25  ;;  %v812_v35 = vadd.f32 %v811_v32, %v805_v27 }
 0x141   : > { %v793_v36 = vadd.f32 %v792_v33, %v786_v29  ;;  %v813_v37 = vadd.f32 %v812_v35, %v806_v31 }
 0x143   : > { %v794_v38 = vrot.slane %v793_v36, 4  ;;  %v814_v39 = vadd.f32 %v813_v37, %v807_v34 }
 0x145   : > { %v795_v40 = vadd.f32 %v794_v38, %v793_v36  ;;  %v815_v41 = vrot.slane %v814_v39, 4 }
 0x147   : > { %v796_v42 = vrot.slane %v795_v40, 2  ;;  %v816_v43 = vadd.f32 %v815_v41, %v814_v39 }
 0x149   : > { %v797_v44 = vadd.f32 %v796_v42, %v795_v40  ;;  %v817_v45 = vrot.slane %v816_v43, 2 }
 0x14b   : > { %v798_v46 = vrot.slane %v797_v44, 1  ;;  %v818_v47 = vadd.f32 %v817_v45, %v816_v43 }
 0x14d   : > { %v799_v48 = vadd.f32 %v798_v46, %v797_v44  ;;  %v819_v49 = vrot.slane %v818_v47, 1 }
 0x14f   : > { %v820_v50 = vadd.f32 %v819_v49, %v818_v47  ;;  %v821_v51 = vmul.f32 0.015625, %v799_v48 }
 0x151   : > { %v822_v52 = vmul.f32 0.015625, %v820_v50  ;;  %v823_v53 = vmul.f32 %v821_v51, %v821_v51  ;;  %v826_v57 = vsub.f32 %v779_v9, %v821_v51  ;;  %v827_v58 = vsub.f32 %v780_v10, %v821_v51 }
 0x152   : > { %v828_v59 = vsub.f32 %v781_v11, %v821_v51  ;;  %v829_v60 = vsub.f32 %v782_v12, %v821_v51  ;;  %v830_v61 = vsub.f32 %v783_v17, %v821_v51  ;;  %v831_v62 = vsub.f32 %v784_v21, %v821_v51 }
 0x153   : > { %v824_v54 = vsub.f32 %v822_v52, %v823_v53  ;;  %v832_v63 = vsub.f32 %v785_v25, %v821_v51  ;;  %v833_v0 = vsub.f32 %v786_v29, %v821_v51 }
 0x155   : > { %v825_v55 = vmax.f32 %v824_v54, 0.0 }
 0x157   : > { %v834_v56 = vadd.f32 1e-05, %v825_v55 }
 0x159   : > { %1241 = vrsqrt.f32 %v834_v56 }
 0x166   : > { %v1242_v1 = vpop.eup %1241 }
 0x167   : > { %v836_v3 = vmul.f32 %v1242_v1, %v826_v57  ;;  %v837_v4 = vmul.f32 %v1242_v1, %v827_v58  ;;  %v838_v5 = vmul.f32 %v1242_v1, %v828_v59  ;;  %v839_v6 = vmul.f32 %v1242_v1, %v829_v60 }
 0x168   : > { %v840_v8 = vmul.f32 %v1242_v1, %v830_v61  ;;  %v841_v9 = vmul.f32 %v1242_v1, %v831_v62  ;;  %v842_v10 = vmul.f32 %v1242_v1, %v832_v63  ;;  %v843_v11 = vmul.f32 %v1242_v1, %v833_v0 }
 0x169   : > { %v851_v12 = vmul.f32 %v1036_v2, %v836_v3  ;;  %v852_v13 = vmul.f32 %v1036_v2, %v837_v4  ;;  %v853_v14 = vmul.f32 %v1036_v2, %v838_v5  ;;  %v854_v15 = vmul.f32 %v1036_v2, %v839_v6 }
 0x16a   : > { %v855_v16 = vmul.f32 %v1036_v2, %v840_v8  ;;  %v856_v17 = vmul.f32 %v1036_v2, %v841_v9  ;;  %v857_v18 = vmul.f32 %v1036_v2, %v842_v10  ;;  %v858_v19 = vmul.f32 %v1036_v2, %v843_v11 }
 0x16b   : > { %v866_v20 = vadd.f32 %v1037_v7, %v851_v12  ;;  %v867_v21 = vadd.f32 %v1037_v7, %v852_v13  ;;  %v868_v22 = vadd.f32 %v1037_v7, %v853_v14  ;;  %v869_v23 = vadd.f32 %v1037_v7, %v854_v15 }
 0x16c   : > { %v870_v24 = vadd.f32 %v1037_v7, %v855_v16  ;;  %v871_v25 = vadd.f32 %v1037_v7, %v856_v17  ;;  %v872_v26 = vadd.f32 %v1037_v7, %v857_v18  ;;  %v873_v27 = vadd.f32 %v1037_v7, %v858_v19 }
 0x16d   : > { %v874_v28 = vmul.f32 0.2, %v866_v20  ;;  %v875_v29 = vmul.f32 0.2, %v867_v21  ;;  %v876_v30 = vmul.f32 0.2, %v868_v22 }
 0x16e   : > { %v877_v31 = vmul.f32 0.2, %v869_v23  ;;  %v878_v32 = vmul.f32 0.2, %v870_v24  ;;  %v879_v33 = vmul.f32 0.2, %v871_v25 }
 0x16f   : > { %v882_v34 = vmax.f32 %v866_v20, %v874_v28  ;;  %v883_v35 = vmax.f32 %v867_v21, %v875_v29  ;;  %v884_v36 = vmax.f32 %v868_v22, %v876_v30  ;;  %v880_v37 = vmul.f32 0.2, %v872_v26 }
 0x170   : > { %v885_v38 = vmax.f32 %v869_v23, %v877_v31  ;;  %v886_v39 = vmax.f32 %v870_v24, %v878_v32  ;;  %v887_v40 = vmax.f32 %v871_v25, %v879_v33  ;;  %v881_v41 = vmul.f32 0.2, %v873_v27 }
 0x171   : > { %v1060_v42 = vpack.c.bf16 %v883_v35, %v882_v34  ;;  %v888_v43 = vmax.f32 %v872_v26, %v880_v37 }
 0x172   : > { %v1065_v44 = vpack.c.bf16 %v885_v38, %v884_v36  ;;  %v1070_v45 = vpack.c.bf16 %v887_v40, %v886_v39  ;;  %v889_v46 = vmax.f32 %v873_v27, %v881_v41 }
 0x173   : > { %1061 = vst [vmem:[%s1440_s4] sm:$0xff] %v1060_v42  }
 0x174   : > { %1077 = vst [vmem:[%s1440_s4 + $0x8] sm:$0xff] %v1065_v44   ;;  %1078 = vst [vmem:[%s1440_s4 + $0x10] sm:$0xff] %v1070_v45   ;;  %v1075_v47 = vpack.c.bf16 %v889_v46, %v888_v43 }
 0x176   : > { %1079 = vst [vmem:[%s1440_s4 + $0x18] sm:$0xff] %v1075_v47  }
 0x177 PF: > { %p11_p11 = scmp.ge.s32.totalorder %s1312_s19, 4   ;;  %s1441_s15 = smov %s1261_s16 }
 0x178   : > { %s1442_s16 = smov %s1321_s22  ;;  %s1443_s17 = smov %s1312_s19 }
 0x179   :  { %13 = sbr.rel (!%p11_p11) target bundleno = 2 (0x2), region = 101 }

// kernel: discriminator_forward.6
= control target key start
LH: loop header
LB: loop body
LE: loop exit
PB: predicated region body
PF: predicated region fallthrough
CT: control target
= control target key end

     0   :  { %s2924_s15 = smov 0   ;;  %s3376_s0 = inlined_call_operand.vmem [shape: bf16[4,2048], index: 0, kind: input, shape index: {}]   ;;  %s3377_s1 = inlined_call_operand.vmem [shape: bf16[2048,1024], index: 1, kind: input, shape index: {}]   ;;  %s3378_s2 = inlined_call_operand.vmem [shape: f32[1,1024], index: 2, kind: input, shape index: {}]   ;;  %s3379_s3 = inlined_call_operand.vmem [shape: f32[1,1024], index: 3, kind: input, shape index: {}]   ;;  %s3380_s4 = inlined_call_operand.vmem [shape: bf16[4,1024], index: 4, kind: output, shape index: {}]  }
   0x1 LB: > { %s2930_s16 = sadd.s32 4294967295, %s2895_s15   ;;  %p2587_p0 = scmp.ge.s32.totalorder %s2895_s15, 1  ;;  %s2895_s15 = sphi %s2924_s15, %s14_s15  }
   0x2   : > { %p170_p1 = scmp.lt.s32.totalorder %s2895_s15, 5 }
   0x4   : > { %p171_p2 = pnand %p2587_p0, %p170_p1 }
   0x5   : > { %s2588_s17 = sshll.u32 (!%p171_p2), %s2930_s16, 2  ;;  %s2590_s18 = sshll.u32 (!%p171_p2), %s2930_s16, 6 }
   0x6   : > { %174 = sbr.rel (%p171_p2) target bundleno = 573 (0x23d), region = 36  ;;  %p198_p3 = scmp.lt.s32.totalorder (!%p171_p2), %s2588_s17, 15 }
   0x7   : > { %p204_p4 = scmp.lt.s32.totalorder (!%p171_p2), %s2590_s18, 255  ;;  %p2593_p5 = scmp.ne.s32.totalorder (!%p171_p2), %s2930_s16, 0 }
   0xb   : > { %s3382_s17 = smov (!%p198_p3, %s2588_s17), 15  ;;  %s3384_s18 = smov (!%p204_p4, %s2590_s18), 255 }
   0xc   : > { %s2589_s19 = sshll.u32 %s3382_s17, 1  ;;  %s2857_s23 = sshll.u32 %s3384_s18, 5 }
   0xd   : > { %s2939_s22 = scalar_lea.vmem %s3376_s0, %s2589_s19  ;;  %s2944_s26 = scalar_lea.vmem %s3377_s1, %s2857_s23 }
   0xe   : > { %213 = sbr.rel (%p2593_p5) target bundleno = 22 (0x16), region = 40 }
  0x13   : > { %v2897_v0 = vmov 0.0  }
  0x14   : > { %214 = vst [vmem:[#allocation2 + $0x10] sm:$0xff] %v2897_v0  ;;  %215 = vst [vmem:[#allocation2] sm:$0xff] %v2897_v0 }
  0x15   : > { %216 = vst [vmem:[#allocation2 + $0x18] sm:$0xff] %v2897_v0  ;;  %217 = vst [vmem:[#allocation2 + $0x8] sm:$0xff] %v2897_v0 }
  0x16 PF: > { %v279_v1 = vld [vmem:[%s2944_s26 + $0x1c0] sm:$0xff]  ;;  %v2898_v33 = vmov 1983009808   ;;  %v484_v35 = vlaneseq  ;;  %p2850_p6 = scmp.ne.s32.totalorder %s2930_s16, 3 }
  0x17   : > { %v283_v2 = vld [vmem:[%s2944_s26 + $0x1e0] sm:$0xff]  ;;  %v482_v34 = vunpack.c.l.s4 %v2898_v33 }
  0x18   : > { %v407_v3 = vld [vmem:[%s2944_s26 + $0x5c0] sm:$0xff]  ;;  %v2651_v4 = vcombine.high %v279_v1, %v283_v2  ;;  %v2650_v6 = vcombine.low %v279_v1, %v283_v2  ;;  %v2969_v45 = vshrl.u32 %v484_v35, 7 }
  0x19   : > { %v411_v5 = vld [vmem:[%s2944_s26 + $0x5e0] sm:$0xff]  ;;  %v483_v44 = vunpack.c.0.s8 %v482_v34 }
  0x1a   : > { %v271_v7 = vld [vmem:[%s2944_s26 + $0x180] sm:$0xff]  ;;  %v2779_v9 = vcombine.high %v407_v3, %v411_v5  ;;  %v2778_v10 = vcombine.low %v407_v3, %v411_v5  ;;  %1781 = vmatprep.subr.bf16.mxu0 %v2651_v4 }
  0x1b   : > { %v275_v8 = vld [vmem:[%s2944_s26 + $0x1a0] sm:$0xff]  ;;  %1782 = vmatpush1.bf16.msra.mxu0 %v2650_v6  ;;  %v2976_v54 = vsub.s32 %v483_v44, %v2969_v45 }
  0x1c   : > { %v2643_v11 = vcombine.high %v271_v7, %v275_v8  ;;  %v399_v12 = vld [vmem:[%s2944_s26 + $0x580] sm:$0xff]  ;;  %1822 = vmatprep.subr.bf16.mxu1 %v2779_v9  ;;  %v2642_v19 = vcombine.low %v271_v7, %v275_v8 }
  0x1d   : > { %v403_v13 = vld [vmem:[%s2944_s26 + $0x5a0] sm:$0xff]  ;;  %1823 = vmatpush1.bf16.msra.mxu1 %v2778_v10 }
  0x1e   : > { %v263_v14 = vld [vmem:[%s2944_s26 + $0x140] sm:$0xff]  ;;  %v2771_v15 = vcombine.high %v399_v12, %v403_v13  ;;  %1783 = vmatprep.subr.bf16.mxu0 %v2643_v11  ;;  %v2770_v20 = vcombine.low %v399_v12, %v403_v13 }
  0x1f   : > { %v267_v16 = vld [vmem:[%s2944_s26 + $0x160] sm:$0xff]  ;;  %1784 = vmatpush1.bf16.msra.mxu0 %v2642_v19 }
  0x20   : > { %v391_v17 = vld [vmem:[%s2944_s26 + $0x540] sm:$0xff]  ;;  %v2635_v21 = vcombine.high %v263_v14, %v267_v16  ;;  %1824 = vmatprep.subr.bf16.mxu1 %v2771_v15  ;;  %v2634_v27 = vcombine.low %v263_v14, %v267_v16 }
  0x21   : > { %v395_v18 = vld [vmem:[%s2944_s26 + $0x560] sm:$0xff]  ;;  %1825 = vmatpush1.bf16.msra.mxu1 %v2770_v20 }
  0x22   : > { %v2763_v22 = vcombine.high %v391_v17, %v395_v18  ;;  %v255_v23 = vld [vmem:[%s2944_s26 + $0x100] sm:$0xff]  ;;  %1785 = vmatprep.subr.bf16.mxu0 %v2635_v21  ;;  %v2762_v28 = vcombine.low %v391_v17, %v395_v18 }
  0x23   : > { %v259_v24 = vld [vmem:[%s2944_s26 + $0x120] sm:$0xff]  ;;  %1786 = vmatpush1.bf16.msra.mxu0 %v2634_v27 }
  0x24   : > { %v383_v25 = vld [vmem:[%s2944_s26 + $0x500] sm:$0xff]  ;;  %v2627_v29 = vcombine.high %v255_v23, %v259_v24  ;;  %1826 = vmatprep.subr.bf16.mxu1 %v2763_v22  ;;  %v2626_v38 = vcombine.low %v255_v23, %v259_v24 }
  0x25   : > { %v387_v26 = vld [vmem:[%s2944_s26 + $0x520] sm:$0xff]  ;;  %1827 = vmatpush1.bf16.msra.mxu1 %v2762_v28 }
  0x26   : > { %v2755_v30 = vcombine.high %v383_v25, %v387_v26  ;;  %v247_v31 = vld [vmem:[%s2944_s26 + $0xc0] sm:$0xff]  ;;  %1787 = vmatprep.subr.bf16.mxu0 %v2627_v29  ;;  %v2754_v39 = vcombine.low %v383_v25, %v387_v26 }
  0x27   : > { %v251_v32 = vld [vmem:[%s2944_s26 + $0xe0] sm:$0xff]  ;;  %1788 = vmatpush1.bf16.msra.mxu0 %v2626_v38 }
  0x28   : > { %v375_v36 = vld [vmem:[%s2944_s26 + $0x4c0] sm:$0xff]  ;;  %v2619_v40 = vcombine.high %v247_v31, %v251_v32  ;;  %1828 = vmatprep.subr.bf16.mxu1 %v2755_v30  ;;  %v2618_v48 = vcombine.low %v247_v31, %v251_v32 }
  0x29   : > { %v379_v37 = vld [vmem:[%s2944_s26 + $0x4e0] sm:$0xff]  ;;  %1829 = vmatpush1.bf16.msra.mxu1 %v2754_v39 }
  0x2a   : > { %v2747_v41 = vcombine.high %v375_v36, %v379_v37  ;;  %v239_v42 = vld [vmem:[%s2944_s26 + $0x80] sm:$0xff]  ;;  %1789 = vmatprep.subr.bf16.mxu0 %v2619_v40  ;;  %v2746_v49 = vcombine.low %v375_v36, %v379_v37 }
  0x2b   : > { %v243_v43 = vld [vmem:[%s2944_s26 + $0xa0] sm:$0xff]  ;;  %1790 = vmatpush1.bf16.msra.mxu0 %v2618_v48 }
  0x2c   : > { %v367_v46 = vld [vmem:[%s2944_s26 + $0x480] sm:$0xff]  ;;  %v2611_v50 = vcombine.high %v239_v42, %v243_v43  ;;  %1830 = vmatprep.subr.bf16.mxu1 %v2747_v41  ;;  %v2610_v57 = vcombine.low %v239_v42, %v243_v43 }
  0x2d   : > { %v371_v47 = vld [vmem:[%s2944_s26 + $0x4a0] sm:$0xff]  ;;  %1831 = vmatpush1.bf16.msra.mxu1 %v2746_v49 }
  0x2e   : > { %v2739_v51 = vcombine.high %v367_v46, %v371_v47  ;;  %v231_v52 = vld [vmem:[%s2944_s26 + $0x40] sm:$0xff]  ;;  %1791 = vmatprep.subr.bf16.mxu0 %v2611_v50  ;;  %v2738_v58 = vcombine.low %v367_v46, %v371_v47 }
  0x2f   : > { %v235_v53 = vld [vmem:[%s2944_s26 + $0x60] sm:$0xff]  ;;  %1792 = vmatpush1.bf16.msra.mxu0 %v2610_v57 }
  0x30   : > { %v359_v55 = vld [vmem:[%s2944_s26 + $0x440] sm:$0xff]  ;;  %v2603_v59 = vcombine.high %v231_v52, %v235_v53  ;;  %1832 = vmatprep.subr.bf16.mxu1 %v2739_v51  ;;  %v2602_v4 = vcombine.low %v231_v52, %v235_v53 }
  0x31   : > { %v363_v56 = vld [vmem:[%s2944_s26 + $0x460] sm:$0xff]  ;;  %1833 = vmatpush1.bf16.msra.mxu1 %v2738_v58 }
  0x32   : > { %v222_v60 = vld [vmem:[%s2939_s22] sm:$0xff]  ;;  %v2731_v61 = vcombine.high %v359_v55, %v363_v56  ;;  %1793 = vmatprep.subr.bf16.mxu0 %v2603_v59  ;;  %v2730_v7 = vcombine.low %v359_v55, %v363_v56 }
  0x33   : > { %v223_v62 = vld [vmem:[%s2944_s26] sm:$0xff]  ;;  %v2984_v0 = vrot.slane %v222_v60, %v2976_v54  ;;  %v480_v1 = vcombine.high %v222_v60, %v222_v60  ;;  %1794 = vmatpush1.bf16.msra.mxu0 %v2602_v4 }
  0x34   : > { %v227_v63 = vld [vmem:[%s2944_s26 + $0x20] sm:$0xff]  ;;  %1834 = vmatprep.subr.bf16.mxu1 %v2731_v61 }
  0x35   : > { %v351_v2 = vld [vmem:[%s2944_s26 + $0x400] sm:$0xff]  ;;  %v2990_v5 = vcombine.high %v2984_v0, %v2984_v0  ;;  %v2993_v6 = vrot.slane %v480_v1, %v2976_v54  ;;  %v2595_v8 = vcombine.high %v223_v62, %v227_v63  ;;  %v2594_v15 = vcombine.low %v223_v62, %v227_v63  ;;  %1835 = vmatpush1.bf16.msra.mxu1 %v2730_v7 }
  0x36   : > { %v355_v3 = vld [vmem:[%s2944_s26 + $0x420] sm:$0xff] }
  0x37   : > { %v2723_v9 = vcombine.high %v351_v2, %v355_v3  ;;  %v343_v10 = vld [vmem:[%s2944_s26 + $0x3c0] sm:$0xff]  ;;  %1813 = vmatprep.mubr.bf16.mxu0 %v2990_v5  ;;  %v3000_v12 = vcombine.high %v2993_v6, %v2993_v6  ;;  %1795 = vmatprep.subr.bf16.mxu0 %v2595_v8  ;;  %v2722_v16 = vcombine.low %v351_v2, %v355_v3 }
  0x38   : > { %v347_v11 = vld [vmem:[%s2944_s26 + $0x3e0] sm:$0xff]  ;;  %1796 = vmatpush1.bf16.msra.mxu0 %v2594_v15 }
  0x39   : > { %v471_v13 = vld [vmem:[%s2944_s26 + $0x7c0] sm:$0xff]  ;;  %1854 = vmatprep.mubr.bf16.mxu1 %v3000_v12  ;;  %v2715_v17 = vcombine.high %v343_v10, %v347_v11  ;;  %1836 = vmatprep.subr.bf16.mxu1 %v2723_v9  ;;  %v2714_v23 = vcombine.low %v343_v10, %v347_v11 }
  0x3a   : > { %v475_v14 = vld [vmem:[%s2944_s26 + $0x7e0] sm:$0xff]  ;;  %1837 = vmatpush1.bf16.msra.mxu1 %v2722_v16 }
  0x3b   : > { %v2843_v18 = vcombine.high %v471_v13, %v475_v14  ;;  %v335_v19 = vld [vmem:[%s2944_s26 + $0x380] sm:$0xff]  ;;  %1797 = vmatprep.subr.bf16.mxu0 %v2715_v17  ;;  %v2842_v24 = vcombine.low %v471_v13, %v475_v14  ;;  %v280_v17 = vld [vmem:[%s2944_s26 + $0x1c8] sm:$0xff] }
  0x3c   : > { %v339_v20 = vld [vmem:[%s2944_s26 + $0x3a0] sm:$0xff]  ;;  %1798 = vmatpush2.bf16.msra.mxu0 %v2714_v23 }
  0x3d   : > { %v463_v21 = vld [vmem:[%s2944_s26 + $0x780] sm:$0xff]  ;;  %v2707_v25 = vcombine.high %v335_v19, %v339_v20  ;;  %1838 = vmatprep.subr.bf16.mxu1 %v2843_v18  ;;  %v2706_v31 = vcombine.low %v335_v19, %v339_v20  ;;  %v284_v18 = vld [vmem:[%s2944_s26 + $0x1e8] sm:$0xff] }
  0x3e   : > { %v467_v22 = vld [vmem:[%s2944_s26 + $0x7a0] sm:$0xff]  ;;  %1839 = vmatpush2.bf16.msra.mxu1 %v2842_v24  ;;  %v408_v19 = vld [vmem:[%s2944_s26 + $0x5c8] sm:$0xff]  ;;  %v2653_v23 = vcombine.high %v280_v17, %v284_v18 }
  0x3f   : > { %v2835_v26 = vcombine.high %v463_v21, %v467_v22  ;;  %v327_v27 = vld [vmem:[%s2944_s26 + $0x340] sm:$0xff]  ;;  %1799 = vmatprep.subr.bf16.mxu0 %v2707_v25  ;;  %v2834_v32 = vcombine.low %v463_v21, %v467_v22  ;;  %v412_v20 = vld [vmem:[%s2944_s26 + $0x5e8] sm:$0xff] }
  0x40   : > { %v331_v28 = vld [vmem:[%s2944_s26 + $0x360] sm:$0xff]  ;;  %1800 = vmatpush2.bf16.msra.mxu0 %v2706_v31  ;;  %v2781_v24 = vcombine.high %v408_v19, %v412_v20  ;;  %v272_v25 = vld [vmem:[%s2944_s26 + $0x188] sm:$0xff] }
  0x41   : > { %v455_v29 = vld [vmem:[%s2944_s26 + $0x740] sm:$0xff]  ;;  %v2699_v33 = vcombine.high %v327_v27, %v331_v28  ;;  %1840 = vmatprep.subr.bf16.mxu1 %v2835_v26  ;;  %v2698_v39 = vcombine.low %v327_v27, %v331_v28  ;;  %v276_v26 = vld [vmem:[%s2944_s26 + $0x1a8] sm:$0xff] }
  0x42   : > { %v459_v30 = vld [vmem:[%s2944_s26 + $0x760] sm:$0xff]  ;;  %1841 = vmatpush2.bf16.msra.mxu1 %v2834_v32  ;;  %v400_v27 = vld [vmem:[%s2944_s26 + $0x588] sm:$0xff]  ;;  %v2645_v31 = vcombine.high %v272_v25, %v276_v26 }
  0x43   : > { %v2827_v34 = vcombine.high %v455_v29, %v459_v30  ;;  %v319_v35 = vld [vmem:[%s2944_s26 + $0x300] sm:$0xff]  ;;  %1801 = vmatprep.subr.bf16.mxu0 %v2699_v33  ;;  %v2826_v40 = vcombine.low %v455_v29, %v459_v30  ;;  %v404_v28 = vld [vmem:[%s2944_s26 + $0x5a8] sm:$0xff]  ;;  %v2652_v29 = vcombine.low %v280_v17, %v284_v18  ;;  %v2780_v30 = vcombine.low %v408_v19, %v412_v20 }
  0x44   : > { %v323_v36 = vld [vmem:[%s2944_s26 + $0x320] sm:$0xff]  ;;  %1802 = vmatpush2.bf16.msra.mxu0 %v2698_v39  ;;  %v2773_v32 = vcombine.high %v400_v27, %v404_v28  ;;  %v264_v33 = vld [vmem:[%s2944_s26 + $0x148] sm:$0xff] }
  0x45   : > { %v447_v37 = vld [vmem:[%s2944_s26 + $0x700] sm:$0xff]  ;;  %v2691_v41 = vcombine.high %v319_v35, %v323_v36  ;;  %1842 = vmatprep.subr.bf16.mxu1 %v2827_v34  ;;  %v2690_v48 = vcombine.low %v319_v35, %v323_v36  ;;  %v268_v34 = vld [vmem:[%s2944_s26 + $0x168] sm:$0xff] }
  0x46   : > { %v451_v38 = vld [vmem:[%s2944_s26 + $0x720] sm:$0xff]  ;;  %1843 = vmatpush2.bf16.msra.mxu1 %v2826_v40  ;;  %v392_v35 = vld [vmem:[%s2944_s26 + $0x548] sm:$0xff]  ;;  %v2637_v39 = vcombine.high %v264_v33, %v268_v34 }
  0x47   : > { %v2819_v42 = vcombine.high %v447_v37, %v451_v38  ;;  %v311_v43 = vld [vmem:[%s2944_s26 + $0x2c0] sm:$0xff]  ;;  %1803 = vmatprep.subr.bf16.mxu0 %v2691_v41  ;;  %v2818_v49 = vcombine.low %v447_v37, %v451_v38  ;;  %v396_v36 = vld [vmem:[%s2944_s26 + $0x568] sm:$0xff]  ;;  %v2644_v37 = vcombine.low %v272_v25, %v276_v26  ;;  %v2772_v38 = vcombine.low %v400_v27, %v404_v28 }
  0x48   : > { %v315_v44 = vld [vmem:[%s2944_s26 + $0x2e0] sm:$0xff]  ;;  %1804 = vmatpush2.bf16.msra.mxu0 %v2690_v48  ;;  %v2765_v40 = vcombine.high %v392_v35, %v396_v36  ;;  %v256_v41 = vld [vmem:[%s2944_s26 + $0x108] sm:$0xff] }
  0x49   : > { %v439_v46 = vld [vmem:[%s2944_s26 + $0x6c0] sm:$0xff]  ;;  %v2683_v50 = vcombine.high %v311_v43, %v315_v44  ;;  %1844 = vmatprep.subr.bf16.mxu1 %v2819_v42  ;;  %v2682_v57 = vcombine.low %v311_v43, %v315_v44  ;;  %v260_v42 = vld [vmem:[%s2944_s26 + $0x128] sm:$0xff] }
  0x4a   : > { %v443_v47 = vld [vmem:[%s2944_s26 + $0x6e0] sm:$0xff]  ;;  %1845 = vmatpush2.bf16.msra.mxu1 %v2818_v49  ;;  %v384_v43 = vld [vmem:[%s2944_s26 + $0x508] sm:$0xff]  ;;  %v2629_v48 = vcombine.high %v256_v41, %v260_v42 }
  0x4b   : > { %v2811_v51 = vcombine.high %v439_v46, %v443_v47  ;;  %v303_v52 = vld [vmem:[%s2944_s26 + $0x280] sm:$0xff]  ;;  %1805 = vmatprep.subr.bf16.mxu0 %v2683_v50  ;;  %v2810_v58 = vcombine.low %v439_v46, %v443_v47  ;;  %v388_v44 = vld [vmem:[%s2944_s26 + $0x528] sm:$0xff]  ;;  %v2636_v46 = vcombine.low %v264_v33, %v268_v34  ;;  %v2764_v47 = vcombine.low %v392_v35, %v396_v36 }
  0x4c   : > { %v307_v53 = vld [vmem:[%s2944_s26 + $0x2a0] sm:$0xff]  ;;  %1806 = vmatpush2.bf16.msra.mxu0 %v2682_v57  ;;  %v2757_v49 = vcombine.high %v384_v43, %v388_v44  ;;  %v248_v50 = vld [vmem:[%s2944_s26 + $0xc8] sm:$0xff] }
  0x4d   : > { %v431_v55 = vld [vmem:[%s2944_s26 + $0x680] sm:$0xff]  ;;  %v2675_v59 = vcombine.high %v303_v52, %v307_v53  ;;  %1846 = vmatprep.subr.bf16.mxu1 %v2811_v51  ;;  %v2674_v2 = vcombine.low %v303_v52, %v307_v53  ;;  %v252_v51 = vld [vmem:[%s2944_s26 + $0xe8] sm:$0xff] }
  0x4e   : > { %v435_v56 = vld [vmem:[%s2944_s26 + $0x6a0] sm:$0xff]  ;;  %1847 = vmatpush2.bf16.msra.mxu1 %v2810_v58  ;;  %v376_v52 = vld [vmem:[%s2944_s26 + $0x4c8] sm:$0xff]  ;;  %v2621_v57 = vcombine.high %v248_v50, %v252_v51 }
  0x4f   : > { %v2803_v60 = vcombine.high %v431_v55, %v435_v56  ;;  %v295_v61 = vld [vmem:[%s2944_s26 + $0x240] sm:$0xff]  ;;  %1807 = vmatprep.subr.bf16.mxu0 %v2675_v59  ;;  %v2802_v3 = vcombine.low %v431_v55, %v435_v56  ;;  %v380_v53 = vld [vmem:[%s2944_s26 + $0x4e8] sm:$0xff]  ;;  %v2628_v55 = vcombine.low %v256_v41, %v260_v42  ;;  %v2756_v56 = vcombine.low %v384_v43, %v388_v44 }
  0x50   : > { %v299_v62 = vld [vmem:[%s2944_s26 + $0x260] sm:$0xff]  ;;  %1808 = vmatpush2.bf16.msra.mxu0 %v2674_v2  ;;  %v2749_v58 = vcombine.high %v376_v52, %v380_v53  ;;  %v240_v59 = vld [vmem:[%s2944_s26 + $0x88] sm:$0xff] }
  0x51   : > { %v423_v63 = vld [vmem:[%s2944_s26 + $0x640] sm:$0xff]  ;;  %v2667_v4 = vcombine.high %v295_v61, %v299_v62  ;;  %1848 = vmatprep.subr.bf16.mxu1 %v2803_v60  ;;  %v2666_v13 = vcombine.low %v295_v61, %v299_v62  ;;  %v244_v60 = vld [vmem:[%s2944_s26 + $0xa8] sm:$0xff] }
  0x52   : > { %v427_v1 = vld [vmem:[%s2944_s26 + $0x660] sm:$0xff]  ;;  %1849 = vmatpush2.bf16.msra.mxu1 %v2802_v3  ;;  %v368_v61 = vld [vmem:[%s2944_s26 + $0x488] sm:$0xff]  ;;  %v2613_v2 = vcombine.high %v240_v59, %v244_v60 }
  0x53   : > { %v2795_v7 = vcombine.high %v423_v63, %v427_v1  ;;  %v287_v8 = vld [vmem:[%s2944_s26 + $0x200] sm:$0xff]  ;;  %1809 = vmatprep.subr.bf16.mxu0 %v2667_v4  ;;  %v2794_v14 = vcombine.low %v423_v63, %v427_v1  ;;  %v372_v62 = vld [vmem:[%s2944_s26 + $0x4a8] sm:$0xff]  ;;  %v2620_v63 = vcombine.low %v248_v50, %v252_v51  ;;  %v2748_v1 = vcombine.low %v376_v52, %v380_v53 }
  0x54   : > { %v291_v9 = vld [vmem:[%s2944_s26 + $0x220] sm:$0xff]  ;;  %1810 = vmatpush2.bf16.msra.mxu0 %v2666_v13  ;;  %v2741_v3 = vcombine.high %v368_v61, %v372_v62  ;;  %v232_v4 = vld [vmem:[%s2944_s26 + $0x48] sm:$0xff] }
  0x55   : > { %v415_v10 = vld [vmem:[%s2944_s26 + $0x600] sm:$0xff]  ;;  %v2659_v15 = vcombine.high %v287_v8, %v291_v9  ;;  %1850 = vmatprep.subr.bf16.mxu1 %v2795_v7  ;;  %v2658_v21 = vcombine.low %v287_v8, %v291_v9  ;;  %v236_v7 = vld [vmem:[%s2944_s26 + $0x68] sm:$0xff] }
  0x56   : > { %v419_v11 = vld [vmem:[%s2944_s26 + $0x620] sm:$0xff]  ;;  %1851 = vmatpush2.bf16.msra.mxu1 %v2794_v14  ;;  %v360_v8 = vld [vmem:[%s2944_s26 + $0x448] sm:$0xff]  ;;  %v2605_v13 = vcombine.high %v232_v4, %v236_v7  ;;  %v2604_v19 = vcombine.low %v232_v4, %v236_v7 }
  0x57   : > { %v2787_v16 = vcombine.high %v415_v10, %v419_v11  ;;  %1811 = vmatprep.subr.bf16.mxu0 %v2659_v15  ;;  %v2786_v22 = vcombine.low %v415_v10, %v419_v11  ;;  %v364_v9 = vld [vmem:[%s2944_s26 + $0x468] sm:$0xff]  ;;  %v2612_v10 = vcombine.low %v240_v59, %v244_v60  ;;  %v2740_v11 = vcombine.low %v368_v61, %v372_v62 }
  0x58   : > { %1812 = vmatpush2.bf16.msra.mxu0 %v2658_v21  ;;  %v2733_v14 = vcombine.high %v360_v8, %v364_v9  ;;  %v224_v15 = vld [vmem:[%s2944_s26 + $0x8] sm:$0xff]  ;;  %v2732_v20 = vcombine.low %v360_v8, %v364_v9 }
  0x59   : > { %1852 = vmatprep.subr.bf16.mxu1 %v2787_v16  ;;  %1863 = vmatprep.subr.bf16.mxu0 %v2653_v23  ;;  %v228_v16 = vld [vmem:[%s2944_s26 + $0x28] sm:$0xff] }
  0x5a   : > { %1853 = vmatpush2.bf16.msra.mxu1 %v2786_v22  ;;  %v352_v17 = vld [vmem:[%s2944_s26 + $0x408] sm:$0xff]  ;;  %v2597_v21 = vcombine.high %v224_v15, %v228_v16  ;;  %v2596_v27 = vcombine.low %v224_v15, %v228_v16 }
  0x5b   : > { %1904 = vmatprep.subr.bf16.mxu1 %v2781_v24  ;;  %1814 = vmatmul.mubr.bf16.vlgmr.msra.gmra.mxu0 %v2984_v0  ;;  %v356_v18 = vld [vmem:[%s2944_s26 + $0x428] sm:$0xff] }
  0x5c   : > { %1864 = vmatpush1.bf16.msra.mxu0 %v2652_v29  ;;  %1895 = vmatprep.mubr.bf16.mxu0 %v2990_v5  ;;  %v2725_v22 = vcombine.high %v352_v17, %v356_v18  ;;  %v344_v23 = vld [vmem:[%s2944_s26 + $0x3c8] sm:$0xff]  ;;  %v2724_v28 = vcombine.low %v352_v17, %v356_v18 }
  0x5d   : > { %1855 = vmatmul.mubr.bf16.vlgmr.msra.gmra.mxu1 %v2993_v6  ;;  %1865 = vmatprep.subr.bf16.mxu0 %v2645_v31  ;;  %v348_v24 = vld [vmem:[%s2944_s26 + $0x3e8] sm:$0xff] }
  0x5e   : > { %1905 = vmatpush1.bf16.msra.mxu1 %v2780_v30  ;;  %1936 = vmatprep.mubr.bf16.mxu1 %v3000_v12  ;;  %v472_v25 = vld [vmem:[%s2944_s26 + $0x7c8] sm:$0xff]  ;;  %v2717_v29 = vcombine.high %v344_v23, %v348_v24  ;;  %v2716_v35 = vcombine.low %v344_v23, %v348_v24 }
  0x5f   : > { %1906 = vmatprep.subr.bf16.mxu1 %v2773_v32  ;;  %v476_v26 = vld [vmem:[%s2944_s26 + $0x7e8] sm:$0xff] }
  0x60   : > { %1866 = vmatpush1.bf16.msra.mxu0 %v2644_v37  ;;  %v2845_v30 = vcombine.high %v472_v25, %v476_v26  ;;  %v336_v31 = vld [vmem:[%s2944_s26 + $0x388] sm:$0xff]  ;;  %v2844_v36 = vcombine.low %v472_v25, %v476_v26 }
  0x61   : > { %1867 = vmatprep.subr.bf16.mxu0 %v2637_v39  ;;  %v340_v32 = vld [vmem:[%s2944_s26 + $0x3a8] sm:$0xff] }
  0x62   : > { %1907 = vmatpush1.bf16.msra.mxu1 %v2772_v38  ;;  %v464_v33 = vld [vmem:[%s2944_s26 + $0x788] sm:$0xff]  ;;  %v2709_v37 = vcombine.high %v336_v31, %v340_v32  ;;  %v2708_v43 = vcombine.low %v336_v31, %v340_v32  ;;  %v409_v31 = vld [vmem:[%s2944_s26 + $0x5d0] sm:$0xff] }
  0x63   : > { %1908 = vmatprep.subr.bf16.mxu1 %v2765_v40  ;;  %v468_v34 = vld [vmem:[%s2944_s26 + $0x7a8] sm:$0xff]  ;;  %v413_v32 = vld [vmem:[%s2944_s26 + $0x5f0] sm:$0xff] }
  0x64   : > { %1868 = vmatpush1.bf16.msra.mxu0 %v2636_v46  ;;  %v2837_v38 = vcombine.high %v464_v33, %v468_v34  ;;  %v328_v39 = vld [vmem:[%s2944_s26 + $0x348] sm:$0xff]  ;;  %v2836_v44 = vcombine.low %v464_v33, %v468_v34 }
  0x65   : > { %1869 = vmatprep.subr.bf16.mxu0 %v2629_v48  ;;  %v332_v40 = vld [vmem:[%s2944_s26 + $0x368] sm:$0xff] }
  0x66   : > { %1909 = vmatpush1.bf16.msra.mxu1 %v2764_v47  ;;  %v456_v41 = vld [vmem:[%s2944_s26 + $0x748] sm:$0xff]  ;;  %v2701_v46 = vcombine.high %v328_v39, %v332_v40  ;;  %v2700_v52 = vcombine.low %v328_v39, %v332_v40  ;;  %v401_v39 = vld [vmem:[%s2944_s26 + $0x590] sm:$0xff] }
  0x67   : > { %1910 = vmatprep.subr.bf16.mxu1 %v2757_v49  ;;  %v460_v42 = vld [vmem:[%s2944_s26 + $0x768] sm:$0xff]  ;;  %v405_v40 = vld [vmem:[%s2944_s26 + $0x5b0] sm:$0xff] }
  0x68   : > { %1870 = vmatpush1.bf16.msra.mxu0 %v2628_v55  ;;  %v2829_v47 = vcombine.high %v456_v41, %v460_v42  ;;  %v320_v48 = vld [vmem:[%s2944_s26 + $0x308] sm:$0xff]  ;;  %v2828_v53 = vcombine.low %v456_v41, %v460_v42  ;;  %v2782_v42 = vcombine.low %v409_v31, %v413_v32 }
  0x69   : > { %1871 = vmatprep.subr.bf16.mxu0 %v2621_v57  ;;  %v324_v49 = vld [vmem:[%s2944_s26 + $0x328] sm:$0xff] }
  0x6a   : > { %1911 = vmatpush1.bf16.msra.mxu1 %v2756_v56  ;;  %v448_v50 = vld [vmem:[%s2944_s26 + $0x708] sm:$0xff]  ;;  %v2693_v55 = vcombine.high %v320_v48, %v324_v49  ;;  %v2692_v61 = vcombine.low %v320_v48, %v324_v49  ;;  %v393_v48 = vld [vmem:[%s2944_s26 + $0x550] sm:$0xff] }
  0x6b   : > { %1912 = vmatprep.subr.bf16.mxu1 %v2749_v58  ;;  %v452_v51 = vld [vmem:[%s2944_s26 + $0x728] sm:$0xff]  ;;  %v397_v49 = vld [vmem:[%s2944_s26 + $0x570] sm:$0xff] }
  0x6c   : > { %1872 = vmatpush1.bf16.msra.mxu0 %v2620_v63  ;;  %v2821_v56 = vcombine.high %v448_v50, %v452_v51  ;;  %v312_v57 = vld [vmem:[%s2944_s26 + $0x2c8] sm:$0xff]  ;;  %v2820_v62 = vcombine.low %v448_v50, %v452_v51  ;;  %v2774_v51 = vcombine.low %v401_v39, %v405_v40 }
  0x6d   : > { %1873 = vmatprep.subr.bf16.mxu0 %v2613_v2  ;;  %v316_v58 = vld [vmem:[%s2944_s26 + $0x2e8] sm:$0xff] }
  0x6e   : > { %1913 = vmatpush1.bf16.msra.mxu1 %v2748_v1  ;;  %v440_v59 = vld [vmem:[%s2944_s26 + $0x6c8] sm:$0xff]  ;;  %v2685_v63 = vcombine.high %v312_v57, %v316_v58  ;;  %v2684_v8 = vcombine.low %v312_v57, %v316_v58  ;;  %v385_v57 = vld [vmem:[%s2944_s26 + $0x510] sm:$0xff] }
  0x6f   : > { %1914 = vmatprep.subr.bf16.mxu1 %v2741_v3  ;;  %v444_v60 = vld [vmem:[%s2944_s26 + $0x6e8] sm:$0xff]  ;;  %v389_v58 = vld [vmem:[%s2944_s26 + $0x530] sm:$0xff] }
  0x70   : > { %1874 = vmatpush1.bf16.msra.mxu0 %v2612_v10  ;;  %v2813_v1 = vcombine.high %v440_v59, %v444_v60  ;;  %v304_v2 = vld [vmem:[%s2944_s26 + $0x288] sm:$0xff]  ;;  %v2812_v9 = vcombine.low %v440_v59, %v444_v60  ;;  %v2766_v60 = vcombine.low %v393_v48, %v397_v49 }
  0x71   : > { %1875 = vmatprep.subr.bf16.mxu0 %v2605_v13  ;;  %v308_v3 = vld [vmem:[%s2944_s26 + $0x2a8] sm:$0xff] }
  0x72   : > { %1915 = vmatpush1.bf16.msra.mxu1 %v2740_v11  ;;  %v432_v4 = vld [vmem:[%s2944_s26 + $0x688] sm:$0xff]  ;;  %v2677_v10 = vcombine.high %v304_v2, %v308_v3  ;;  %v2676_v17 = vcombine.low %v304_v2, %v308_v3  ;;  %v377_v2 = vld [vmem:[%s2944_s26 + $0x4d0] sm:$0xff] }
  0x73   : > { %1916 = vmatprep.subr.bf16.mxu1 %v2733_v14  ;;  %v436_v7 = vld [vmem:[%s2944_s26 + $0x6a8] sm:$0xff]  ;;  %v381_v3 = vld [vmem:[%s2944_s26 + $0x4f0] sm:$0xff] }
  0x74   : > { %1876 = vmatpush1.bf16.msra.mxu0 %v2604_v19  ;;  %v2805_v11 = vcombine.high %v432_v4, %v436_v7  ;;  %v296_v13 = vld [vmem:[%s2944_s26 + $0x248] sm:$0xff]  ;;  %v2804_v18 = vcombine.low %v432_v4, %v436_v7  ;;  %v2758_v7 = vcombine.low %v385_v57, %v389_v58 }
  0x75   : > { %1877 = vmatprep.subr.bf16.mxu0 %v2597_v21  ;;  %v300_v14 = vld [vmem:[%s2944_s26 + $0x268] sm:$0xff] }
  0x76   : > { %1917 = vmatpush1.bf16.msra.mxu1 %v2732_v20  ;;  %v424_v15 = vld [vmem:[%s2944_s26 + $0x648] sm:$0xff]  ;;  %v2669_v19 = vcombine.high %v296_v13, %v300_v14  ;;  %v2668_v25 = vcombine.low %v296_v13, %v300_v14  ;;  %v369_v13 = vld [vmem:[%s2944_s26 + $0x490] sm:$0xff] }
  0x77   : > { %1918 = vmatprep.subr.bf16.mxu1 %v2725_v22  ;;  %v428_v16 = vld [vmem:[%s2944_s26 + $0x668] sm:$0xff]  ;;  %v373_v14 = vld [vmem:[%s2944_s26 + $0x4b0] sm:$0xff] }
  0x78   : > { %1878 = vmatpush1.bf16.msra.mxu0 %v2596_v27  ;;  %v2797_v20 = vcombine.high %v424_v15, %v428_v16  ;;  %v288_v21 = vld [vmem:[%s2944_s26 + $0x208] sm:$0xff]  ;;  %v2796_v26 = vcombine.low %v424_v15, %v428_v16  ;;  %v2750_v16 = vcombine.low %v377_v2, %v381_v3 }
  0x79   : > { %1879 = vmatprep.subr.bf16.mxu0 %v2717_v29  ;;  %v292_v22 = vld [vmem:[%s2944_s26 + $0x228] sm:$0xff]  ;;  %v281_v29 = vld [vmem:[%s2944_s26 + $0x1d0] sm:$0xff] }
  0x7a   : > { %1919 = vmatpush1.bf16.msra.mxu1 %v2724_v28  ;;  %v416_v23 = vld [vmem:[%s2944_s26 + $0x608] sm:$0xff]  ;;  %v2661_v27 = vcombine.high %v288_v21, %v292_v22  ;;  %v2660_v33 = vcombine.low %v288_v21, %v292_v22  ;;  %v361_v21 = vld [vmem:[%s2944_s26 + $0x450] sm:$0xff] }
  0x7b   : > { %1920 = vmatprep.subr.bf16.mxu1 %v2845_v30  ;;  %v420_v24 = vld [vmem:[%s2944_s26 + $0x628] sm:$0xff]  ;;  %v285_v30 = vld [vmem:[%s2944_s26 + $0x1f0] sm:$0xff] }
  0x7c   : > { %1880 = vmatpush2.bf16.msra.mxu0 %v2716_v35  ;;  %v2789_v28 = vcombine.high %v416_v23, %v420_v24  ;;  %v2788_v34 = vcombine.low %v416_v23, %v420_v24  ;;  %v2655_v35 = vcombine.high %v281_v29, %v285_v30  ;;  %v2654_v41 = vcombine.low %v281_v29, %v285_v30  ;;  %v365_v22 = vld [vmem:[%s2944_s26 + $0x470] sm:$0xff] }
  0x7d   : > { %1881 = vmatprep.subr.bf16.mxu0 %v2709_v37  ;;  %v273_v37 = vld [vmem:[%s2944_s26 + $0x190] sm:$0xff]  ;;  %v2742_v24 = vcombine.low %v369_v13, %v373_v14 }
  0x7e   : > { %1921 = vmatpush2.bf16.msra.mxu1 %v2844_v36  ;;  %v2783_v36 = vcombine.high %v409_v31, %v413_v32  ;;  %v353_v29 = vld [vmem:[%s2944_s26 + $0x410] sm:$0xff]  ;;  %v2734_v32 = vcombine.low %v361_v21, %v365_v22 }
  0x7f   : > { %1922 = vmatprep.subr.bf16.mxu1 %v2837_v38  ;;  %v277_v38 = vld [vmem:[%s2944_s26 + $0x1b0] sm:$0xff] }
  0x80   : > { %1882 = vmatpush2.bf16.msra.mxu0 %v2708_v43  ;;  %v2647_v43 = vcombine.high %v273_v37, %v277_v38  ;;  %v2646_v50 = vcombine.low %v273_v37, %v277_v38  ;;  %v357_v30 = vld [vmem:[%s2944_s26 + $0x430] sm:$0xff] }
  0x81   : > { %1883 = vmatprep.subr.bf16.mxu0 %v2701_v46  ;;  %v265_v46 = vld [vmem:[%s2944_s26 + $0x150] sm:$0xff] }
  0x82   : > { %1923 = vmatpush2.bf16.msra.mxu1 %v2836_v44  ;;  %v2775_v44 = vcombine.high %v401_v39, %v405_v40  ;;  %v473_v37 = vld [vmem:[%s2944_s26 + $0x7d0] sm:$0xff]  ;;  %v2726_v40 = vcombine.low %v353_v29, %v357_v30 }
  0x83   : > { %1924 = vmatprep.subr.bf16.mxu1 %v2829_v47  ;;  %v269_v47 = vld [vmem:[%s2944_s26 + $0x170] sm:$0xff] }
  0x84   : > { %1884 = vmatpush2.bf16.msra.mxu0 %v2700_v52  ;;  %v2639_v52 = vcombine.high %v265_v46, %v269_v47  ;;  %v2638_v59 = vcombine.low %v265_v46, %v269_v47  ;;  %v477_v38 = vld [vmem:[%s2944_s26 + $0x7f0] sm:$0xff] }
  0x85   : > { %1885 = vmatprep.subr.bf16.mxu0 %v2693_v55  ;;  %v257_v55 = vld [vmem:[%s2944_s26 + $0x110] sm:$0xff] }
  0x86   : > { %1925 = vmatpush2.bf16.msra.mxu1 %v2828_v53  ;;  %v2767_v53 = vcombine.high %v393_v48, %v397_v49  ;;  %v465_v46 = vld [vmem:[%s2944_s26 + $0x790] sm:$0xff]  ;;  %v2846_v49 = vcombine.low %v473_v37, %v477_v38 }
  0x87   : > { %1926 = vmatprep.subr.bf16.mxu1 %v2821_v56  ;;  %v261_v56 = vld [vmem:[%s2944_s26 + $0x130] sm:$0xff] }
  0x88   : > { %1886 = vmatpush2.bf16.msra.mxu0 %v2692_v61  ;;  %v2631_v61 = vcombine.high %v257_v55, %v261_v56  ;;  %v2630_v4 = vcombine.low %v257_v55, %v261_v56  ;;  %v469_v47 = vld [vmem:[%s2944_s26 + $0x7b0] sm:$0xff] }
  0x89   : > { %1887 = vmatprep.subr.bf16.mxu0 %v2685_v63  ;;  %v249_v63 = vld [vmem:[%s2944_s26 + $0xd0] sm:$0xff] }
  0x8a   : > { %1927 = vmatpush2.bf16.msra.mxu1 %v2820_v62  ;;  %v2759_v62 = vcombine.high %v385_v57, %v389_v58  ;;  %v457_v55 = vld [vmem:[%s2944_s26 + $0x750] sm:$0xff]  ;;  %v2838_v58 = vcombine.low %v465_v46, %v469_v47 }
  0x8b   : > { %1928 = vmatprep.subr.bf16.mxu1 %v2813_v1  ;;  %v253_v1 = vld [vmem:[%s2944_s26 + $0xf0] sm:$0xff] }
  0x8c   : > { %1888 = vmatpush2.bf16.msra.mxu0 %v2684_v8  ;;  %v2623_v8 = vcombine.high %v249_v63, %v253_v1  ;;  %v2622_v15 = vcombine.low %v249_v63, %v253_v1  ;;  %v461_v56 = vld [vmem:[%s2944_s26 + $0x770] sm:$0xff] }
  0x8d   : > { %1889 = vmatprep.subr.bf16.mxu0 %v2677_v10  ;;  %v241_v10 = vld [vmem:[%s2944_s26 + $0x90] sm:$0xff] }
  0x8e   : > { %1929 = vmatpush2.bf16.msra.mxu1 %v2812_v9  ;;  %v2751_v9 = vcombine.high %v377_v2, %v381_v3  ;;  %v449_v63 = vld [vmem:[%s2944_s26 + $0x710] sm:$0xff]  ;;  %v2830_v3 = vcombine.low %v457_v55, %v461_v56 }
  0x8f   : > { %1930 = vmatprep.subr.bf16.mxu1 %v2805_v11  ;;  %v245_v11 = vld [vmem:[%s2944_s26 + $0xb0] sm:$0xff] }
  0x90   : > { %1890 = vmatpush2.bf16.msra.mxu0 %v2676_v17  ;;  %v2615_v17 = vcombine.high %v241_v10, %v245_v11  ;;  %v2614_v23 = vcombine.low %v241_v10, %v245_v11  ;;  %v453_v1 = vld [vmem:[%s2944_s26 + $0x730] sm:$0xff] }
  0x91   : > { %1891 = vmatprep.subr.bf16.mxu0 %v2669_v19  ;;  %v233_v19 = vld [vmem:[%s2944_s26 + $0x50] sm:$0xff] }
  0x92   : > { %1931 = vmatpush2.bf16.msra.mxu1 %v2804_v18  ;;  %v2743_v18 = vcombine.high %v369_v13, %v373_v14  ;;  %v441_v10 = vld [vmem:[%s2944_s26 + $0x6d0] sm:$0xff]  ;;  %v2822_v14 = vcombine.low %v449_v63, %v453_v1 }
  0x93   : > { %1932 = vmatprep.subr.bf16.mxu1 %v2797_v20  ;;  %v237_v20 = vld [vmem:[%s2944_s26 + $0x70] sm:$0xff] }
  0x94   : > { %1892 = vmatpush2.bf16.msra.mxu0 %v2668_v25  ;;  %v2607_v25 = vcombine.high %v233_v19, %v237_v20  ;;  %v2606_v31 = vcombine.low %v233_v19, %v237_v20  ;;  %v445_v11 = vld [vmem:[%s2944_s26 + $0x6f0] sm:$0xff] }
  0x95   : > { %1893 = vmatprep.subr.bf16.mxu0 %v2661_v27  ;;  %v225_v27 = vld [vmem:[%s2944_s26 + $0x10] sm:$0xff] }
  0x96   : > { %1933 = vmatpush2.bf16.msra.mxu1 %v2796_v26  ;;  %v2735_v26 = vcombine.high %v361_v21, %v365_v22  ;;  %v433_v19 = vld [vmem:[%s2944_s26 + $0x690] sm:$0xff]  ;;  %v2814_v22 = vcombine.low %v441_v10, %v445_v11 }
  0x97   : > { %1934 = vmatprep.subr.bf16.mxu1 %v2789_v28  ;;  %v229_v28 = vld [vmem:[%s2944_s26 + $0x30] sm:$0xff] }
  0x98   : > { %1894 = vmatpush2.bf16.msra.mxu0 %v2660_v33  ;;  %v2599_v33 = vcombine.high %v225_v27, %v229_v28  ;;  %v2598_v39 = vcombine.low %v225_v27, %v229_v28  ;;  %v437_v20 = vld [vmem:[%s2944_s26 + $0x6b0] sm:$0xff] }
  0x99   : > { %1945 = vmatprep.subr.bf16.mxu0 %v2655_v35  ;;  %v345_v35 = vld [vmem:[%s2944_s26 + $0x3d0] sm:$0xff] }
  0x9a   : > { %1935 = vmatpush2.bf16.msra.mxu1 %v2788_v34  ;;  %v2727_v34 = vcombine.high %v353_v29, %v357_v30  ;;  %v425_v27 = vld [vmem:[%s2944_s26 + $0x650] sm:$0xff]  ;;  %v2806_v30 = vcombine.low %v433_v19, %v437_v20 }
  0x9b   : > { %1986 = vmatprep.subr.bf16.mxu1 %v2783_v36  ;;  %1896 = vmatmul.mubr.bf16.vlgmr.msra.gmra.mxu0 %v2984_v0  ;;  %v349_v36 = vld [vmem:[%s2944_s26 + $0x3f0] sm:$0xff] }
  0x9c   : > { %1946 = vmatpush1.bf16.msra.mxu0 %v2654_v41  ;;  %1977 = vmatprep.mubr.bf16.mxu0 %v2990_v5  ;;  %v2719_v41 = vcombine.high %v345_v35, %v349_v36  ;;  %v2718_v48 = vcombine.low %v345_v35, %v349_v36  ;;  %v429_v28 = vld [vmem:[%s2944_s26 + $0x670] sm:$0xff] }
  0x9d   : > { %1937 = vmatmul.mubr.bf16.vlgmr.msra.gmra.mxu1 %v2993_v6  ;;  %1947 = vmatprep.subr.bf16.mxu0 %v2647_v43  ;;  %v337_v43 = vld [vmem:[%s2944_s26 + $0x390] sm:$0xff] }
  0x9e   : > { %1987 = vmatpush1.bf16.msra.mxu1 %v2782_v42  ;;  %2018 = vmatprep.mubr.bf16.mxu1 %v3000_v12  ;;  %v2847_v42 = vcombine.high %v473_v37, %v477_v38  ;;  %v417_v35 = vld [vmem:[%s2944_s26 + $0x610] sm:$0xff]  ;;  %v2798_v38 = vcombine.low %v425_v27, %v429_v28 }
  0x9f   : > { %1988 = vmatprep.subr.bf16.mxu1 %v2775_v44  ;;  %v341_v44 = vld [vmem:[%s2944_s26 + $0x3b0] sm:$0xff] }
  0xa0   : > { %1948 = vmatpush1.bf16.msra.mxu0 %v2646_v50  ;;  %v2711_v50 = vcombine.high %v337_v43, %v341_v44  ;;  %v2710_v57 = vcombine.low %v337_v43, %v341_v44  ;;  %v421_v36 = vld [vmem:[%s2944_s26 + $0x630] sm:$0xff]  ;;  %v410_v43 = vld [vmem:[%s2944_s26 + $0x5d8] sm:$0xff] }
  0xa1   : > { %1949 = vmatprep.subr.bf16.mxu0 %v2639_v52  ;;  %v329_v52 = vld [vmem:[%s2944_s26 + $0x350] sm:$0xff]  ;;  %v414_v44 = vld [vmem:[%s2944_s26 + $0x5f8] sm:$0xff] }
  0xa2   : > { %1989 = vmatpush1.bf16.msra.mxu1 %v2774_v51  ;;  %v2839_v51 = vcombine.high %v465_v46, %v469_v47  ;;  %v2790_v47 = vcombine.low %v417_v35, %v421_v36 }
  0xa3   : > { %1990 = vmatprep.subr.bf16.mxu1 %v2767_v53  ;;  %v333_v53 = vld [vmem:[%s2944_s26 + $0x370] sm:$0xff] }
  0xa4   : > { %1950 = vmatpush1.bf16.msra.mxu0 %v2638_v59  ;;  %v2703_v59 = vcombine.high %v329_v52, %v333_v53  ;;  %v2702_v2 = vcombine.low %v329_v52, %v333_v53  ;;  %v402_v52 = vld [vmem:[%s2944_s26 + $0x598] sm:$0xff] }
  0xa5   : > { %1951 = vmatprep.subr.bf16.mxu0 %v2631_v61  ;;  %v321_v61 = vld [vmem:[%s2944_s26 + $0x310] sm:$0xff]  ;;  %v406_v53 = vld [vmem:[%s2944_s26 + $0x5b8] sm:$0xff] }
  0xa6   : > { %1991 = vmatpush1.bf16.msra.mxu1 %v2766_v60  ;;  %v2831_v60 = vcombine.high %v457_v55, %v461_v56  ;;  %v2784_v56 = vcombine.low %v410_v43, %v414_v44 }
  0xa7   : > { %1992 = vmatprep.subr.bf16.mxu1 %v2759_v62  ;;  %v325_v62 = vld [vmem:[%s2944_s26 + $0x330] sm:$0xff] }
  0xa8   : > { %1952 = vmatpush1.bf16.msra.mxu0 %v2630_v4  ;;  %v2695_v4 = vcombine.high %v321_v61, %v325_v62  ;;  %v2694_v13 = vcombine.low %v321_v61, %v325_v62  ;;  %v394_v61 = vld [vmem:[%s2944_s26 + $0x558] sm:$0xff] }
  0xa9   : > { %1953 = vmatprep.subr.bf16.mxu0 %v2623_v8  ;;  %v313_v8 = vld [vmem:[%s2944_s26 + $0x2d0] sm:$0xff]  ;;  %v398_v62 = vld [vmem:[%s2944_s26 + $0x578] sm:$0xff] }
  0xaa   : > { %1993 = vmatpush1.bf16.msra.mxu1 %v2758_v7  ;;  %v2823_v7 = vcombine.high %v449_v63, %v453_v1  ;;  %v2776_v1 = vcombine.low %v402_v52, %v406_v53 }
  0xab   : > { %1994 = vmatprep.subr.bf16.mxu1 %v2751_v9  ;;  %v317_v9 = vld [vmem:[%s2944_s26 + $0x2f0] sm:$0xff] }
  0xac   : > { %1954 = vmatpush1.bf16.msra.mxu0 %v2622_v15  ;;  %v2687_v15 = vcombine.high %v313_v8, %v317_v9  ;;  %v2686_v21 = vcombine.low %v313_v8, %v317_v9  ;;  %v386_v8 = vld [vmem:[%s2944_s26 + $0x518] sm:$0xff] }
  0xad   : > { %1955 = vmatprep.subr.bf16.mxu0 %v2615_v17  ;;  %v305_v17 = vld [vmem:[%s2944_s26 + $0x290] sm:$0xff]  ;;  %v390_v9 = vld [vmem:[%s2944_s26 + $0x538] sm:$0xff] }
  0xae   : > { %1995 = vmatpush1.bf16.msra.mxu1 %v2750_v16  ;;  %v2815_v16 = vcombine.high %v441_v10, %v445_v11  ;;  %v2768_v11 = vcombine.low %v394_v61, %v398_v62 }
  0xaf   : > { %1996 = vmatprep.subr.bf16.mxu1 %v2743_v18  ;;  %v309_v18 = vld [vmem:[%s2944_s26 + $0x2b0] sm:$0xff] }
  0xb0   : > { %1956 = vmatpush1.bf16.msra.mxu0 %v2614_v23  ;;  %v2679_v23 = vcombine.high %v305_v17, %v309_v18  ;;  %v2678_v29 = vcombine.low %v305_v17, %v309_v18  ;;  %v378_v17 = vld [vmem:[%s2944_s26 + $0x4d8] sm:$0xff] }
  0xb1   : > { %1957 = vmatprep.subr.bf16.mxu0 %v2607_v25  ;;  %v297_v25 = vld [vmem:[%s2944_s26 + $0x250] sm:$0xff] }
  0xb2   : > { %1997 = vmatpush1.bf16.msra.mxu1 %v2742_v24  ;;  %v2807_v24 = vcombine.high %v433_v19, %v437_v20 }
  0xb3   : > { %1998 = vmatprep.subr.bf16.mxu1 %v2735_v26  ;;  %v301_v26 = vld [vmem:[%s2944_s26 + $0x270] sm:$0xff] }
  0xb4   : > { %1958 = vmatpush1.bf16.msra.mxu0 %v2606_v31  ;;  %v2671_v31 = vcombine.high %v297_v25, %v301_v26  ;;  %v2670_v37 = vcombine.low %v297_v25, %v301_v26 }
  0xb5   : > { %1959 = vmatprep.subr.bf16.mxu0 %v2599_v33  ;;  %v289_v33 = vld [vmem:[%s2944_s26 + $0x210] sm:$0xff] }
  0xb6   : > { %1999 = vmatpush1.bf16.msra.mxu1 %v2734_v32  ;;  %v2799_v32 = vcombine.high %v425_v27, %v429_v28 }
  0xb7   : > { %2000 = vmatprep.subr.bf16.mxu1 %v2727_v34  ;;  %v293_v34 = vld [vmem:[%s2944_s26 + $0x230] sm:$0xff] }
  0xb8   : > { %1960 = vmatpush1.bf16.msra.mxu0 %v2598_v39  ;;  %v2663_v39 = vcombine.high %v289_v33, %v293_v34  ;;  %v2662_v46 = vcombine.low %v289_v33, %v293_v34 }
  0xb9   : > { %1961 = vmatprep.subr.bf16.mxu0 %v2719_v41  ;;  %v282_v41 = vld [vmem:[%s2944_s26 + $0x1d8] sm:$0xff] }
  0xba   : > { %2001 = vmatpush1.bf16.msra.mxu1 %v2726_v40  ;;  %v2791_v40 = vcombine.high %v417_v35, %v421_v36 }
  0xbb   : > { %2002 = vmatprep.subr.bf16.mxu1 %v2847_v42  ;;  %v286_v42 = vld [vmem:[%s2944_s26 + $0x1f8] sm:$0xff] }
  0xbc   : > { %1962 = vmatpush2.bf16.msra.mxu0 %v2718_v48  ;;  %v2657_v48 = vcombine.high %v282_v41, %v286_v42  ;;  %v2656_v55 = vcombine.low %v282_v41, %v286_v42 }
  0xbd   : > { %1963 = vmatprep.subr.bf16.mxu0 %v2711_v50  ;;  %v274_v50 = vld [vmem:[%s2944_s26 + $0x198] sm:$0xff] }
  0xbe   : > { %2003 = vmatpush2.bf16.msra.mxu1 %v2846_v49  ;;  %v2785_v49 = vcombine.high %v410_v43, %v414_v44 }
  0xbf   : > { %2004 = vmatprep.subr.bf16.mxu1 %v2839_v51  ;;  %v278_v51 = vld [vmem:[%s2944_s26 + $0x1b8] sm:$0xff] }
  0xc0   : > { %1964 = vmatpush2.bf16.msra.mxu0 %v2710_v57  ;;  %v2649_v57 = vcombine.high %v274_v50, %v278_v51  ;;  %v2648_v63 = vcombine.low %v274_v50, %v278_v51 }
  0xc1   : > { %1965 = vmatprep.subr.bf16.mxu0 %v2703_v59  ;;  %v266_v59 = vld [vmem:[%s2944_s26 + $0x158] sm:$0xff] }
  0xc2   : > { %2005 = vmatpush2.bf16.msra.mxu1 %v2838_v58  ;;  %v2777_v58 = vcombine.high %v402_v52, %v406_v53 }
  0xc3   : > { %2006 = vmatprep.subr.bf16.mxu1 %v2831_v60  ;;  %v270_v60 = vld [vmem:[%s2944_s26 + $0x178] sm:$0xff] }
  0xc4   : > { %1966 = vmatpush2.bf16.msra.mxu0 %v2702_v2  ;;  %v2641_v2 = vcombine.high %v266_v59, %v270_v60  ;;  %v2640_v10 = vcombine.low %v266_v59, %v270_v60 }
  0xc5   : > { %1967 = vmatprep.subr.bf16.mxu0 %v2695_v4  ;;  %v258_v4 = vld [vmem:[%s2944_s26 + $0x118] sm:$0xff] }
  0xc6   : > { %2007 = vmatpush2.bf16.msra.mxu1 %v2830_v3  ;;  %v2769_v3 = vcombine.high %v394_v61, %v398_v62 }
  0xc7   : > { %2008 = vmatprep.subr.bf16.mxu1 %v2823_v7  ;;  %v262_v7 = vld [vmem:[%s2944_s26 + $0x138] sm:$0xff] }
  0xc8   : > { %1968 = vmatpush2.bf16.msra.mxu0 %v2694_v13  ;;  %v2633_v13 = vcombine.high %v258_v4, %v262_v7  ;;  %v2632_v18 = vcombine.low %v258_v4, %v262_v7 }
  0xc9   : > { %1969 = vmatprep.subr.bf16.mxu0 %v2687_v15  ;;  %v250_v15 = vld [vmem:[%s2944_s26 + $0xd8] sm:$0xff] }
  0xca   : > { %2009 = vmatpush2.bf16.msra.mxu1 %v2822_v14  ;;  %v2761_v14 = vcombine.high %v386_v8, %v390_v9 }
  0xcb   : > { %2010 = vmatprep.subr.bf16.mxu1 %v2815_v16  ;;  %v254_v16 = vld [vmem:[%s2944_s26 + $0xf8] sm:$0xff] }
  0xcc   : > { %1970 = vmatpush2.bf16.msra.mxu0 %v2686_v21  ;;  %v2625_v19 = vcombine.high %v250_v15, %v254_v16  ;;  %v242_v21 = vld [vmem:[%s2944_s26 + $0x98] sm:$0xff]  ;;  %v2624_v25 = vcombine.low %v250_v15, %v254_v16 }
  0xcd   : > { %1971 = vmatprep.subr.bf16.mxu0 %v2679_v23  ;;  %v370_v23 = vld [vmem:[%s2944_s26 + $0x498] sm:$0xff] }
  0xce   : > { %2011 = vmatpush2.bf16.msra.mxu1 %v2814_v22  ;;  %v246_v22 = vld [vmem:[%s2944_s26 + $0xb8] sm:$0xff] }
  0xcf   : > { %2012 = vmatprep.subr.bf16.mxu1 %v2807_v24  ;;  %v374_v24 = vld [vmem:[%s2944_s26 + $0x4b8] sm:$0xff]  ;;  %v2617_v27 = vcombine.high %v242_v21, %v246_v22  ;;  %v2616_v33 = vcombine.low %v242_v21, %v246_v22 }
  0xd0   : > { %1972 = vmatpush2.bf16.msra.mxu0 %v2678_v29  ;;  %v2745_v28 = vcombine.high %v370_v23, %v374_v24  ;;  %v234_v29 = vld [vmem:[%s2944_s26 + $0x58] sm:$0xff]  ;;  %v2744_v34 = vcombine.low %v370_v23, %v374_v24 }
  0xd1   : > { %1973 = vmatprep.subr.bf16.mxu0 %v2671_v31  ;;  %v362_v31 = vld [vmem:[%s2944_s26 + $0x458] sm:$0xff] }
  0xd2   : > { %2013 = vmatpush2.bf16.msra.mxu1 %v2806_v30  ;;  %v238_v30 = vld [vmem:[%s2944_s26 + $0x78] sm:$0xff] }
  0xd3   : > { %2014 = vmatprep.subr.bf16.mxu1 %v2799_v32  ;;  %v366_v32 = vld [vmem:[%s2944_s26 + $0x478] sm:$0xff]  ;;  %v2609_v35 = vcombine.high %v234_v29, %v238_v30  ;;  %v2608_v41 = vcombine.low %v234_v29, %v238_v30 }
  0xd4   : > { %1974 = vmatpush2.bf16.msra.mxu0 %v2670_v37  ;;  %v2737_v36 = vcombine.high %v362_v31, %v366_v32  ;;  %v226_v37 = vld [vmem:[%s2944_s26 + $0x18] sm:$0xff]  ;;  %v2736_v42 = vcombine.low %v362_v31, %v366_v32 }
  0xd5   : > { %1975 = vmatprep.subr.bf16.mxu0 %v2663_v39  ;;  %v354_v39 = vld [vmem:[%s2944_s26 + $0x418] sm:$0xff] }
  0xd6   : > { %2015 = vmatpush2.bf16.msra.mxu1 %v2798_v38  ;;  %v230_v38 = vld [vmem:[%s2944_s26 + $0x38] sm:$0xff] }
  0xd7   : > { %2016 = vmatprep.subr.bf16.mxu1 %v2791_v40  ;;  %v358_v40 = vld [vmem:[%s2944_s26 + $0x438] sm:$0xff]  ;;  %v2601_v43 = vcombine.high %v226_v37, %v230_v38  ;;  %v2600_v50 = vcombine.low %v226_v37, %v230_v38 }
  0xd8   : > { %1976 = vmatpush2.bf16.msra.mxu0 %v2662_v46  ;;  %v2729_v44 = vcombine.high %v354_v39, %v358_v40  ;;  %v346_v46 = vld [vmem:[%s2944_s26 + $0x3d8] sm:$0xff]  ;;  %v2728_v51 = vcombine.low %v354_v39, %v358_v40 }
  0xd9   : > { %2027 = vmatprep.subr.bf16.mxu0 %v2657_v48  ;;  %v474_v48 = vld [vmem:[%s2944_s26 + $0x7d8] sm:$0xff] }
  0xda   : > { %2017 = vmatpush2.bf16.msra.mxu1 %v2790_v47  ;;  %v350_v47 = vld [vmem:[%s2944_s26 + $0x3f8] sm:$0xff] }
  0xdb   : > { %2068 = vmatprep.subr.bf16.mxu1 %v2785_v49  ;;  %1978 = vmatmul.mubr.bf16.vlgmr.msra.gmra.mxu0 %v2984_v0  ;;  %v478_v49 = vld [vmem:[%s2944_s26 + $0x7f8] sm:$0xff]  ;;  %v2721_v52 = vcombine.high %v346_v46, %v350_v47  ;;  %v2720_v59 = vcombine.low %v346_v46, %v350_v47 }
  0xdc   : > { %2028 = vmatpush1.bf16.msra.mxu0 %v2656_v55  ;;  %2059 = vmatprep.mubr.bf16.mxu0 %v2990_v5  ;;  %v382_v5 = vld [vmem:[%s2944_s26 + $0x4f8] sm:$0xff]  ;;  %v2849_v53 = vcombine.high %v474_v48, %v478_v49  ;;  %v2848_v60 = vcombine.low %v474_v48, %v478_v49 }
  0xdd   : > { %2019 = vmatmul.mubr.bf16.vlgmr.msra.gmra.mxu1 %v2993_v6  ;;  %2029 = vmatprep.subr.bf16.mxu0 %v2649_v57  ;;  %v2753_v20 = vcombine.high %v378_v17, %v382_v5  ;;  %v2752_v26 = vcombine.low %v378_v17, %v382_v5  ;;  %v338_v55 = vld [vmem:[%s2944_s26 + $0x398] sm:$0xff] }
  0xde   : > { %2069 = vmatpush1.bf16.msra.mxu1 %v2784_v56  ;;  %2100 = vmatprep.mubr.bf16.mxu1 %v3000_v12  ;;  %v2760_v12 = vcombine.low %v386_v8, %v390_v9  ;;  %v342_v56 = vld [vmem:[%s2944_s26 + $0x3b8] sm:$0xff] }
  0xdf   : > { %2070 = vmatprep.subr.bf16.mxu1 %v2777_v58  ;;  %v466_v57 = vld [vmem:[%s2944_s26 + $0x798] sm:$0xff]  ;;  %v2713_v61 = vcombine.high %v338_v55, %v342_v56  ;;  %v2712_v4 = vcombine.low %v338_v55, %v342_v56 }
  0xe0   : > { %2030 = vmatpush1.bf16.msra.mxu0 %v2648_v63  ;;  %v470_v58 = vld [vmem:[%s2944_s26 + $0x7b8] sm:$0xff] }
  0xe1   : > { %2031 = vmatprep.subr.bf16.mxu0 %v2641_v2  ;;  %v2841_v62 = vcombine.high %v466_v57, %v470_v58  ;;  %v330_v63 = vld [vmem:[%s2944_s26 + $0x358] sm:$0xff]  ;;  %v2840_v7 = vcombine.low %v466_v57, %v470_v58 }
  0xe2   : > { %2071 = vmatpush1.bf16.msra.mxu1 %v2776_v1  ;;  %v334_v1 = vld [vmem:[%s2944_s26 + $0x378] sm:$0xff] }
  0xe3   : > { %2072 = vmatprep.subr.bf16.mxu1 %v2769_v3  ;;  %v458_v2 = vld [vmem:[%s2944_s26 + $0x758] sm:$0xff]  ;;  %v2705_v8 = vcombine.high %v330_v63, %v334_v1  ;;  %v2704_v15 = vcombine.low %v330_v63, %v334_v1 }
  0xe4   : > { %2032 = vmatpush1.bf16.msra.mxu0 %v2640_v10  ;;  %v462_v3 = vld [vmem:[%s2944_s26 + $0x778] sm:$0xff] }
  0xe5   : > { %2033 = vmatprep.subr.bf16.mxu0 %v2633_v13  ;;  %v2833_v9 = vcombine.high %v458_v2, %v462_v3  ;;  %v322_v10 = vld [vmem:[%s2944_s26 + $0x318] sm:$0xff]  ;;  %v2832_v16 = vcombine.low %v458_v2, %v462_v3 }
  0xe6   : > { %2073 = vmatpush1.bf16.msra.mxu1 %v2768_v11  ;;  %v326_v11 = vld [vmem:[%s2944_s26 + $0x338] sm:$0xff] }
  0xe7   : > { %2074 = vmatprep.subr.bf16.mxu1 %v2761_v14  ;;  %v450_v13 = vld [vmem:[%s2944_s26 + $0x718] sm:$0xff]  ;;  %v2697_v17 = vcombine.high %v322_v10, %v326_v11  ;;  %v2696_v21 = vcombine.low %v322_v10, %v326_v11 }
  0xe8   : > { %2034 = vmatpush1.bf16.msra.mxu0 %v2632_v18  ;;  %v454_v14 = vld [vmem:[%s2944_s26 + $0x738] sm:$0xff] }
  0xe9   : > { %2035 = vmatprep.subr.bf16.mxu0 %v2625_v19  ;;  %v2825_v5 = vcombine.high %v450_v13, %v454_v14  ;;  %v314_v18 = vld [vmem:[%s2944_s26 + $0x2d8] sm:$0xff]  ;;  %v2824_v22 = vcombine.low %v450_v13, %v454_v14 }
  0xea   : > { %2075 = vmatpush1.bf16.msra.mxu1 %v2760_v12  ;;  %v318_v12 = vld [vmem:[%s2944_s26 + $0x2f8] sm:$0xff] }
  0xeb   : > { %2076 = vmatprep.subr.bf16.mxu1 %v2753_v20  ;;  %v442_v19 = vld [vmem:[%s2944_s26 + $0x6d8] sm:$0xff]  ;;  %v2689_v23 = vcombine.high %v314_v18, %v318_v12  ;;  %v2688_v29 = vcombine.low %v314_v18, %v318_v12 }
  0xec   : > { %2036 = vmatpush1.bf16.msra.mxu0 %v2624_v25  ;;  %v446_v20 = vld [vmem:[%s2944_s26 + $0x6f8] sm:$0xff] }
  0xed   : > { %2037 = vmatprep.subr.bf16.mxu0 %v2617_v27  ;;  %v2817_v24 = vcombine.high %v442_v19, %v446_v20  ;;  %v306_v25 = vld [vmem:[%s2944_s26 + $0x298] sm:$0xff]  ;;  %v2816_v30 = vcombine.low %v442_v19, %v446_v20 }
  0xee   : > { %2077 = vmatpush1.bf16.msra.mxu1 %v2752_v26  ;;  %v310_v26 = vld [vmem:[%s2944_s26 + $0x2b8] sm:$0xff] }
  0xef   : > { %2078 = vmatprep.subr.bf16.mxu1 %v2745_v28  ;;  %v434_v27 = vld [vmem:[%s2944_s26 + $0x698] sm:$0xff]  ;;  %v2681_v31 = vcombine.high %v306_v25, %v310_v26  ;;  %v2680_v37 = vcombine.low %v306_v25, %v310_v26 }
  0xf0   : > { %2038 = vmatpush1.bf16.msra.mxu0 %v2616_v33  ;;  %v438_v28 = vld [vmem:[%s2944_s26 + $0x6b8] sm:$0xff] }
  0xf1   : > { %2039 = vmatprep.subr.bf16.mxu0 %v2609_v35  ;;  %v2809_v32 = vcombine.high %v434_v27, %v438_v28  ;;  %v298_v33 = vld [vmem:[%s2944_s26 + $0x258] sm:$0xff]  ;;  %v2808_v38 = vcombine.low %v434_v27, %v438_v28 }
  0xf2   : > { %2079 = vmatpush1.bf16.msra.mxu1 %v2744_v34  ;;  %v302_v34 = vld [vmem:[%s2944_s26 + $0x278] sm:$0xff] }
  0xf3   : > { %2080 = vmatprep.subr.bf16.mxu1 %v2737_v36  ;;  %v426_v35 = vld [vmem:[%s2944_s26 + $0x658] sm:$0xff]  ;;  %v2673_v39 = vcombine.high %v298_v33, %v302_v34  ;;  %v2672_v46 = vcombine.low %v298_v33, %v302_v34 }
  0xf4   : > { %2040 = vmatpush1.bf16.msra.mxu0 %v2608_v41  ;;  %v430_v36 = vld [vmem:[%s2944_s26 + $0x678] sm:$0xff] }
  0xf5   : > { %2041 = vmatprep.subr.bf16.mxu0 %v2601_v43  ;;  %v2801_v40 = vcombine.high %v426_v35, %v430_v36  ;;  %v290_v41 = vld [vmem:[%s2944_s26 + $0x218] sm:$0xff]  ;;  %v2800_v47 = vcombine.low %v426_v35, %v430_v36  ;;  %v221_v35 = vld [vmem:[#allocation2 + $0x8] sm:$0xff] }
  0xf6   : > { %2081 = vmatpush1.bf16.msra.mxu1 %v2736_v42  ;;  %v294_v42 = vld [vmem:[%s2944_s26 + $0x238] sm:$0xff] }
  0xf7   : > { %2082 = vmatprep.subr.bf16.mxu1 %v2729_v44  ;;  %v418_v43 = vld [vmem:[%s2944_s26 + $0x618] sm:$0xff]  ;;  %v2665_v48 = vcombine.high %v290_v41, %v294_v42 }
  0xf8   : > { %2042 = vmatpush1.bf16.msra.mxu0 %v2600_v50  ;;  %v422_v44 = vld [vmem:[%s2944_s26 + $0x638] sm:$0xff]  ;;  %v2664_v50 = vcombine.low %v290_v41, %v294_v42 }
  0xf9   : > { %2043 = vmatprep.subr.bf16.mxu0 %v2721_v52  ;;  %v2793_v49 = vcombine.high %v418_v43, %v422_v44 }
  0xfa   : > { %2083 = vmatpush1.bf16.msra.mxu1 %v2728_v51  ;;  %v2792_v51 = vcombine.low %v418_v43, %v422_v44 }
  0xfb   : > { %2084 = vmatprep.subr.bf16.mxu1 %v2849_v53 }
  0xfc   : > { %2044 = vmatpush2.bf16.msra.mxu0 %v2720_v59 }
  0xfd   : > { %2045 = vmatprep.subr.bf16.mxu0 %v2713_v61 }
  0xfe   : > { %2085 = vmatpush2.bf16.msra.mxu1 %v2848_v60  ;;  %v218_v60 = vld [vmem:[#allocation2 + $0x10] sm:$0xff] }
  0xff   : > { %2086 = vmatprep.subr.bf16.mxu1 %v2841_v62 }
 0x100   : > { %2046 = vmatpush2.bf16.msra.mxu0 %v2712_v4 }
 0x101   : > { %2047 = vmatprep.subr.bf16.mxu0 %v2705_v8 }
 0x102   : > { %2087 = vmatpush2.bf16.msra.mxu1 %v2840_v7 }
 0x103   : > { %2088 = vmatprep.subr.bf16.mxu1 %v2833_v9 }
 0x104   : > { %2048 = vmatpush2.bf16.msra.mxu0 %v2704_v15 }
 0x105   : > { %2049 = vmatprep.subr.bf16.mxu0 %v2697_v17 }
 0x106   : > { %2089 = vmatpush2.bf16.msra.mxu1 %v2832_v16 }
 0x107   : > { %2090 = vmatprep.subr.bf16.mxu1 %v2825_v5 }
 0x108   : > { %2050 = vmatpush2.bf16.msra.mxu0 %v2696_v21 }
 0x109   : > { %2051 = vmatprep.subr.bf16.mxu0 %v2689_v23 }
 0x10a   : > { %2091 = vmatpush2.bf16.msra.mxu1 %v2824_v22  ;;  %v220_v22 = vld [vmem:[#allocation2 + $0x18] sm:$0xff] }
 0x10b   : > { %2092 = vmatprep.subr.bf16.mxu1 %v2817_v24 }
 0x10c   : > { %2052 = vmatpush2.bf16.msra.mxu0 %v2688_v29 }
 0x10d   : > { %2053 = vmatprep.subr.bf16.mxu0 %v2681_v31 }
 0x10e   : > { %2093 = vmatpush2.bf16.msra.mxu1 %v2816_v30 }
 0x10f   : > { %2094 = vmatprep.subr.bf16.mxu1 %v2809_v32 }
 0x110   : > { %2054 = vmatpush2.bf16.msra.mxu0 %v2680_v37 }
 0x111   : > { %2055 = vmatprep.subr.bf16.mxu0 %v2673_v39 }
 0x112   : > { %2095 = vmatpush2.bf16.msra.mxu1 %v2808_v38 }
 0x113   : > { %2096 = vmatprep.subr.bf16.mxu1 %v2801_v40 }
 0x114   : > { %2056 = vmatpush2.bf16.msra.mxu0 %v2672_v46 }
 0x115   : > { %2057 = vmatprep.subr.bf16.mxu0 %v2665_v48 }
 0x116   : > { %2097 = vmatpush2.bf16.msra.mxu1 %v2800_v47 }
 0x117   : > { %2098 = vmatprep.subr.bf16.mxu1 %v2793_v49 }
 0x118   : > { %2058 = vmatpush2.bf16.msra.mxu0 %v2664_v50 }
 0x11a   : > { %2099 = vmatpush2.bf16.msra.mxu1 %v2792_v51 }
 0x11b   : > { %v1815_v52 = vpop.f32.mrf.mxu0  ;;  %2060 = vmatmul.mubr.bf16.vlgmr.msra.gmra.mxu0 %v2984_v0 }
 0x11d   : > { %v1856_v53 = vpop.f32.mrf.mxu1  ;;  %2101 = vmatmul.mubr.bf16.vlgmr.msra.gmra.mxu1 %v2993_v6  ;;  %v1817_v56 = vpop.f32.mrf.mxu0  ;;  %v219_v6 = vld [vmem:[#allocation2] sm:$0xff] }
 0x11e   : > { %v1857_v55 = vadd.f32 %v1856_v53, %v1815_v52 }
 0x11f   : > { %v1858_v57 = vpop.f32.mrf.mxu1  ;;  %v1819_v59 = vpop.f32.mrf.mxu0 }
 0x120   : > { %v1859_v58 = vadd.f32 %v1858_v57, %v1817_v56 }
 0x121   : > { %v1860_v61 = vpop.f32.mrf.mxu1  ;;  %v1820_v63 = vpop.f32.mrf.mxu0 }
 0x122   : > { %v2117_v62 = vcombine.low %v1857_v55, %v1859_v58 }
 0x123   : > { %v1861_v1 = vpop.f32.mrf.mxu1 }
 0x124   : > { %v2125_v2 = vadd.f32 %v2117_v62, %v218_v60 }
 0x126   : > { %2129 = vst [vmem:[#allocation2 + $0x10] sm:$0xff] %v2125_v2 }
 0x15b   : > { %v1897_v3 = vpop.f32.mrf.mxu0 }
 0x15d   : > { %v1938_v4 = vpop.f32.mrf.mxu1  ;;  %v1899_v8 = vpop.f32.mrf.mxu0 }
 0x15e   : > { %v1939_v7 = vadd.f32 %v1938_v4, %v1897_v3 }
 0x15f   : > { %v1940_v0 = vpop.f32.mrf.mxu1  ;;  %v1901_v10 = vpop.f32.mrf.mxu0 }
 0x160   : > { %v1941_v9 = vadd.f32 %v1940_v0, %v1899_v8 }
 0x161   : > { %v1942_v11 = vpop.f32.mrf.mxu1  ;;  %v1902_v14 = vpop.f32.mrf.mxu0 }
 0x162   : > { %v2118_v13 = vcombine.low %v1939_v7, %v1941_v9 }
 0x163   : > { %v1943_v15 = vpop.f32.mrf.mxu1 }
 0x164   : > { %v2126_v16 = vadd.f32 %v2118_v13, %v219_v6 }
 0x166   : > { %2130 = vst [vmem:[#allocation2] sm:$0xff] %v2126_v16 }
 0x19b   : > { %v1979_v17 = vpop.f32.mrf.mxu0 }
 0x19d   : > { %v2020_v5 = vpop.f32.mrf.mxu1  ;;  %v1981_v12 = vpop.f32.mrf.mxu0 }
 0x19e   : > { %v2021_v18 = vadd.f32 %v2020_v5, %v1979_v17 }
 0x19f   : > { %v2022_v19 = vpop.f32.mrf.mxu1  ;;  %v1983_v21 = vpop.f32.mrf.mxu0 }
 0x1a0   : > { %v2023_v20 = vadd.f32 %v2022_v19, %v1981_v12 }
 0x1a1   : > { %v2024_v23 = vpop.f32.mrf.mxu1  ;;  %v1984_v25 = vpop.f32.mrf.mxu0 }
 0x1a2   : > { %v2119_v24 = vcombine.low %v2021_v18, %v2023_v20 }
 0x1a3   : > { %v2025_v26 = vpop.f32.mrf.mxu1 }
 0x1a4   : > { %v2127_v27 = vadd.f32 %v2119_v24, %v220_v22 }
 0x1a6   : > { %2131 = vst [vmem:[#allocation2 + $0x18] sm:$0xff] %v2127_v27 }
 0x1db   : > { %v2061_v28 = vpop.f32.mrf.mxu0 }
 0x1dd   : > { %v2102_v29 = vpop.f32.mrf.mxu1  ;;  %v2063_v30 = vpop.f32.mrf.mxu0 }
 0x1de   : > { %v2103_v32 = vadd.f32 %v2102_v29, %v2061_v28 }
 0x1df   : > { %v2104_v31 = vpop.f32.mrf.mxu1  ;;  %v2065_v34 = vpop.f32.mrf.mxu0 }
 0x1e0   : > { %v2105_v33 = vadd.f32 %v2104_v31, %v2063_v30 }
 0x1e1   : > { %v2106_v36 = vpop.f32.mrf.mxu1  ;;  %v2066_v38 = vpop.f32.mrf.mxu0 }
 0x1e2   : > { %v2120_v37 = vcombine.low %v2103_v32, %v2105_v33  ;;  %2136 = sbr.rel (%p2850_p6) target bundleno = 573 (0x23d), region = 44 }
 0x1e3   : > { %v2107_v39 = vpop.f32.mrf.mxu1 }
 0x1e4   : > { %v2128_v40 = vadd.f32 %v2120_v37, %v221_v35 }
 0x1e6   : > { %2132 = vst [vmem:[#allocation2 + $0x8] sm:$0xff] %v2128_v40 }
 0x1e7   : > { %v3240_v41 = vld [vmem:[#allocation2 + $0x10] sm:$0xff]  ;;  %v3242_v42 = vld [vmem:[#allocation2] sm:$0xff]  ;;  %v3244_v43 = vld [vmem:[#allocation2 + $0x18] sm:$0xff]  ;;  %vm2153_vm0 = vcmask 1043456  }
 0x1e8   : > { %v2145_v46 = vcombine.high %v3240_v41, %v3240_v41  ;;  %v2146_v47 = vcombine.high %v3242_v42, %v3242_v42  ;;  %v2147_v48 = vcombine.high %v3244_v43, %v3244_v43  ;;  %v2154_v49 = vsel %vm2153_vm0, %v3240_v41, 0.0 }
 0x1e9   : > { %v2155_v51 = vrot.slane %v2154_v49, 4  ;;  %v2168_v52 = vsel %vm2153_vm0, %v3242_v42, 0.0  ;;  %v2182_v53 = vsel %vm2153_vm0, %v3244_v43, 0.0  ;;  %v2210_v38 = vmul.f32 %v3240_v41, %v3240_v41 }
 0x1ea   : > { %v2161_v55 = vsel %vm2153_vm0, %v2145_v46, 0.0  ;;  %v2169_v56 = vrot.slane %v2168_v52, 4  ;;  %v2175_v57 = vsel %vm2153_vm0, %v2146_v47, 0.0  ;;  %v2183_v58 = vrot.slane %v2182_v53, 4 }
 0x1eb   : > { %v2156_v59 = vadd.f32 %v2155_v51, %v2154_v49  ;;  %v2162_v60 = vrot.slane %v2161_v55, 4  ;;  %v2176_v61 = vrot.slane %v2175_v57, 4  ;;  %v2189_v62 = vsel %vm2153_vm0, %v2147_v48, 0.0 }
 0x1ec   : > { %v2170_v63 = vadd.f32 %v2169_v56, %v2168_v52  ;;  %v2184_v1 = vadd.f32 %v2183_v58, %v2182_v53  ;;  %v2190_v2 = vrot.slane %v2189_v62, 4  ;;  %v2211_v46 = vmul.f32 %v3242_v42, %v3242_v42 }
 0x1ed   : > { %v3246_v44 = vld [vmem:[#allocation2 + $0x8] sm:$0xff]  ;;  %v2157_v4 = vrot.slane %v2156_v59, 2  ;;  %v2163_v7 = vadd.f32 %v2162_v60, %v2161_v55  ;;  %v2177_v8 = vadd.f32 %v2176_v61, %v2175_v57  ;;  %v2212_v47 = vmul.f32 %v3244_v43, %v3244_v43 }
 0x1ee   : > { %v2148_v50 = vcombine.high %v3246_v44, %v3246_v44  ;;  %v2196_v3 = vsel %vm2153_vm0, %v3246_v44, 0.0  ;;  %v2171_v9 = vrot.slane %v2170_v63, 2  ;;  %v2185_v10 = vrot.slane %v2184_v1, 2 }
 0x1ef   : > { %v2197_v0 = vrot.slane %v2196_v3, 4  ;;  %v2191_v6 = vadd.f32 %v2190_v2, %v2189_v62  ;;  %v2158_v13 = vadd.f32 %v2157_v4, %v2156_v59  ;;  %v2164_v14 = vrot.slane %v2163_v7, 2 }
 0x1f0   : > { %v2203_v11 = vsel %vm2153_vm0, %v2148_v50, 0.0  ;;  %v2178_v15 = vrot.slane %v2177_v8, 2  ;;  %v2172_v17 = vadd.f32 %v2171_v9, %v2170_v63  ;;  %v2186_v5 = vadd.f32 %v2185_v10, %v2184_v1 }
 0x1f1   : > { %v2198_v16 = vadd.f32 %v2197_v0, %v2196_v3  ;;  %v2192_v18 = vrot.slane %v2191_v6, 2  ;;  %v2204_v12 = vrot.slane %v2203_v11, 4  ;;  %v2159_v19 = vrot.slane %v2158_v13, 1 }
 0x1f2   : > { %v2165_v20 = vadd.f32 %v2164_v14, %v2163_v7  ;;  %v2179_v21 = vadd.f32 %v2178_v15, %v2177_v8  ;;  %v2173_v23 = vrot.slane %v2172_v17, 1  ;;  %v2187_v24 = vrot.slane %v2186_v5, 1 }
 0x1f3   : > { %v2199_v22 = vrot.slane %v2198_v16, 2  ;;  %v2193_v25 = vadd.f32 %v2192_v18, %v2191_v6  ;;  %v2205_v26 = vadd.f32 %v2204_v12, %v2203_v11  ;;  %v3268_v27 = vadd.f32 %v2159_v19, %v2158_v13 }
 0x1f4   : > { %v2166_v28 = vrot.slane %v2165_v20, 1  ;;  %v2180_v29 = vrot.slane %v2179_v21, 1  ;;  %v3270_v31 = vadd.f32 %v2173_v23, %v2172_v17  ;;  %v3272_v32 = vadd.f32 %v2187_v24, %v2186_v5 }
 0x1f5   : > { %v2200_v30 = vadd.f32 %v2199_v22, %v2198_v16  ;;  %v2194_v33 = vrot.slane %v2193_v25, 1  ;;  %v2206_v34 = vrot.slane %v2205_v26, 2  ;;  %v2213_v49 = vmul.f32 %v3246_v44, %v3246_v44 }
 0x1f6   : > { %v3274_v35 = vadd.f32 %v2166_v28, %v2165_v20  ;;  %v3276_v36 = vadd.f32 %v2180_v29, %v2179_v21  ;;  %v2218_v50 = vcombine.high %v2210_v38, %v2210_v38  ;;  %v2226_v51 = vsel %vm2153_vm0, %v2210_v38, 0.0 }
 0x1f7   : > { %v2201_v37 = vrot.slane %v2200_v30, 1  ;;  %v3280_v39 = vadd.f32 %v2194_v33, %v2193_v25  ;;  %v2207_v40 = vadd.f32 %v2206_v34, %v2205_v26  ;;  %v2219_v53 = vcombine.high %v2211_v46, %v2211_v46 }
 0x1f8   : > { %v2220_v55 = vcombine.high %v2212_v47, %v2212_v47  ;;  %v2227_v56 = vrot.slane %v2226_v51, 4  ;;  %v2221_v57 = vcombine.high %v2213_v49, %v2213_v49  ;;  %v2233_v58 = vsel %vm2153_vm0, %v2218_v50, 0.0 }
 0x1f9   : > { %v3286_v48 = vadd.f32 %v2201_v37, %v2200_v30  ;;  %v2208_v52 = vrot.slane %v2207_v40, 1  ;;  %v2240_v59 = vsel %vm2153_vm0, %v2211_v46, 0.0  ;;  %v2254_v60 = vsel %vm2153_vm0, %v2212_v47, 0.0 }
 0x1fa   : > { %v2228_v62 = vadd.f32 %v2227_v56, %v2226_v51  ;;  %v2234_v63 = vrot.slane %v2233_v58, 4  ;;  %v2241_v1 = vrot.slane %v2240_v59, 4  ;;  %v2247_v2 = vsel %vm2153_vm0, %v2219_v53, 0.0 }
 0x1fb   : > { %v2209_v61 = vadd.f32 %v2208_v52, %v2207_v40  ;;  %v2255_v3 = vrot.slane %v2254_v60, 4  ;;  %v2261_v4 = vsel %vm2153_vm0, %v2220_v55, 0.0  ;;  %v2268_v7 = vsel %vm2153_vm0, %v2213_v49, 0.0 }
 0x1fc   : > { %v2229_v8 = vrot.slane %v2228_v62, 2  ;;  %v2235_v0 = vadd.f32 %v2234_v63, %v2233_v58  ;;  %v2242_v9 = vadd.f32 %v2241_v1, %v2240_v59  ;;  %v2248_v10 = vrot.slane %v2247_v2, 4 }
 0x1fd   : > { %v2256_v6 = vadd.f32 %v2255_v3, %v2254_v60  ;;  %v2262_v11 = vrot.slane %v2261_v4, 4  ;;  %v2269_v13 = vrot.slane %v2268_v7, 4  ;;  %v2275_v14 = vsel %vm2153_vm0, %v2221_v57, 0.0 }
 0x1fe   : > { %v2230_v15 = vadd.f32 %v2229_v8, %v2228_v62  ;;  %v2236_v16 = vrot.slane %v2235_v0, 2  ;;  %v2243_v17 = vrot.slane %v2242_v9, 2  ;;  %v2249_v5 = vadd.f32 %v2248_v10, %v2247_v2 }
 0x1ff   : > { %v2257_v18 = vrot.slane %v2256_v6, 2  ;;  %v2263_v12 = vadd.f32 %v2262_v11, %v2261_v4  ;;  %v2270_v19 = vadd.f32 %v2269_v13, %v2268_v7  ;;  %v2276_v20 = vrot.slane %v2275_v14, 4 }
 0x200   : > { %v2231_v21 = vrot.slane %v2230_v15, 1  ;;  %v2237_v22 = vadd.f32 %v2236_v16, %v2235_v0  ;;  %v2244_v23 = vadd.f32 %v2243_v17, %v2242_v9  ;;  %v2250_v24 = vrot.slane %v2249_v5, 2 }
 0x201   : > { %v2258_v25 = vadd.f32 %v2257_v18, %v2256_v6  ;;  %v2264_v26 = vrot.slane %v2263_v12, 2  ;;  %v2271_v28 = vrot.slane %v2270_v19, 2  ;;  %v2277_v29 = vadd.f32 %v2276_v20, %v2275_v14 }
 0x202   : > { %v2232_v30 = vadd.f32 %v2231_v21, %v2230_v15  ;;  %v2238_v33 = vrot.slane %v2237_v22, 1  ;;  %v2245_v34 = vrot.slane %v2244_v23, 1  ;;  %v2251_v37 = vadd.f32 %v2250_v24, %v2249_v5 }
 0x203   : > { %v2259_v38 = vrot.slane %v2258_v25, 1  ;;  %v2265_v40 = vadd.f32 %v2264_v26, %v2263_v12  ;;  %v2272_v46 = vadd.f32 %v2271_v28, %v2270_v19  ;;  %v2278_v47 = vrot.slane %v2277_v29, 2 }
 0x204   : > { %v2239_v49 = vadd.f32 %v2238_v33, %v2237_v22  ;;  %v2246_v50 = vadd.f32 %v2245_v34, %v2244_v23  ;;  %v2252_v51 = vrot.slane %v2251_v37, 1  ;;  %v3299_v52 = vmul.f32 0.25, %v3268_v27 }
 0x205   : > { %v2260_v53 = vadd.f32 %v2259_v38, %v2258_v25  ;;  %v2266_v55 = vrot.slane %v2265_v40, 1  ;;  %v2273_v56 = vrot.slane %v2272_v46, 1  ;;  %v2279_v57 = vadd.f32 %v2278_v47, %v2277_v29 }
 0x206   : > { %v2253_v58 = vadd.f32 %v2252_v51, %v2251_v37  ;;  %v3302_v59 = vmul.f32 0.25, %v3274_v35  ;;  %v3305_v60 = vmul.f32 0.25, %v3270_v31  ;;  %v3308_v62 = vmul.f32 0.25, %v3276_v36 }
 0x207   : > { %v2267_v63 = vadd.f32 %v2266_v55, %v2265_v40  ;;  %v2274_v1 = vadd.f32 %v2273_v56, %v2272_v46  ;;  %v2280_v2 = vrot.slane %v2279_v57, 1  ;;  %v3311_v27 = vmul.f32 0.25, %v3272_v32  ;;  %v2378_v56 = vld [vmem:[%s3378_s2] sm:$0xff] }
 0x208   : > { %v3314_v3 = vmul.f32 0.25, %v3280_v39  ;;  %v3317_v4 = vmul.f32 0.25, %v3286_v48  ;;  %v3319_v35 = vmul.f32 0.25, %v2209_v61  ;;  %v2290_v7 = vmul.f32 0.25, %v2232_v30 }
 0x209   : > { %v2281_v31 = vadd.f32 %v2280_v2, %v2279_v57  ;;  %v2291_v8 = vmul.f32 0.25, %v2239_v49  ;;  %v2292_v0 = vmul.f32 0.25, %v2246_v50  ;;  %v2293_v36 = vmul.f32 0.25, %v2253_v58 }
 0x20a   : > { %v2294_v9 = vmul.f32 0.25, %v2260_v53  ;;  %v2295_v10 = vmul.f32 0.25, %v2267_v63  ;;  %v2296_v6 = vmul.f32 0.25, %v2274_v1  ;;  %v2298_v32 = vmul.f32 %v3299_v52, %v3299_v52 }
 0x20b   : > { %v2297_v11 = vmul.f32 0.25, %v2281_v31  ;;  %v2299_v39 = vmul.f32 %v3302_v59, %v3302_v59  ;;  %v2300_v48 = vmul.f32 %v3305_v60, %v3305_v60  ;;  %v2301_v61 = vmul.f32 %v3308_v62, %v3308_v62 }
 0x20c   : > { %v2302_v13 = vmul.f32 %v3311_v27, %v3311_v27  ;;  %v2303_v14 = vmul.f32 %v3314_v3, %v3314_v3  ;;  %v2304_v15 = vmul.f32 %v3317_v4, %v3317_v4  ;;  %v2305_v16 = vmul.f32 %v3319_v35, %v3319_v35 }
 0x20d   : > { %v2306_v17 = vsub.f32 %v2290_v7, %v2298_v32  ;;  %v2307_v5 = vsub.f32 %v2291_v8, %v2299_v39  ;;  %v2308_v18 = vsub.f32 %v2292_v0, %v2300_v48  ;;  %v2309_v12 = vsub.f32 %v2293_v36, %v2301_v61 }
 0x20e   : > { %v2310_v19 = vsub.f32 %v2294_v9, %v2302_v13  ;;  %v2311_v20 = vsub.f32 %v2295_v10, %v2303_v14  ;;  %v2312_v21 = vsub.f32 %v2296_v6, %v2304_v15  ;;  %v2313_v22 = vsub.f32 %v2297_v11, %v2305_v16 }
 0x20f   : > { %v2314_v23 = vmax.f32 %v2306_v17, 0.0  ;;  %v2315_v24 = vmax.f32 %v2307_v5, 0.0  ;;  %v2316_v25 = vmax.f32 %v2308_v18, 0.0  ;;  %v2317_v26 = vmax.f32 %v2309_v12, 0.0 }
 0x210   : > { %v2318_v28 = vmax.f32 %v2310_v19, 0.0  ;;  %v2319_v29 = vmax.f32 %v2311_v20, 0.0  ;;  %v2320_v30 = vmax.f32 %v2312_v21, 0.0  ;;  %v2321_v38 = vmax.f32 %v2313_v22, 0.0 }
 0x211   : > { %v2342_v33 = vadd.f32 1e-05, %v2314_v23  ;;  %v2343_v34 = vadd.f32 1e-05, %v2315_v24  ;;  %v2344_v37 = vadd.f32 1e-05, %v2316_v25  ;;  %v2330_v55 = vcombine.low %v3299_v52, %v3302_v59 }
 0x212   : > { %v2345_v40 = vadd.f32 1e-05, %v2317_v26  ;;  %v2346_v46 = vadd.f32 1e-05, %v2318_v28  ;;  %v2347_v47 = vadd.f32 1e-05, %v2319_v29  ;;  %v2331_v63 = vcombine.low %v3305_v60, %v3308_v62 }
 0x213   : > { %2873 = vrsqrt.f32 %v2342_v33  ;;  %v2348_v49 = vadd.f32 1e-05, %v2320_v30  ;;  %v2349_v50 = vadd.f32 1e-05, %v2321_v38  ;;  %v2382_v51 = vsub.s32 0, %v2969_v45  ;;  %v2424_v52 = vld [vmem:[%s3379_s3] sm:$0xff] }
 0x214   : > { %2875 = vrsqrt.f32 %v2343_v34  ;;  %v2386_v53 = vsub.s32 1, %v2969_v45  ;;  %v2390_v57 = vsub.s32 2, %v2969_v45  ;;  %v2394_v58 = vsub.s32 3, %v2969_v45 }
 0x215   : > { %2877 = vrsqrt.f32 %v2344_v37  ;;  %v2332_v1 = vcombine.low %v3311_v27, %v3314_v3  ;;  %v2398_v2 = vsub.s32 4, %v2969_v45  ;;  %v2402_v7 = vsub.s32 5, %v2969_v45 }
 0x216   : > { %2879 = vrsqrt.f32 %v2345_v40  ;;  %v2383_v59 = vrot.slane %v2378_v56, %v2382_v51  ;;  %v2387_v31 = vrot.slane %v2378_v56, %v2386_v53  ;;  %v2333_v8 = vcombine.low %v3317_v4, %v3319_v35 }
 0x217   : > { %2881 = vrsqrt.f32 %v2346_v46  ;;  %v2338_v0 = vsub.f32 %v3240_v41, %v2330_v55  ;;  %v2406_v60 = vsub.s32 6, %v2969_v45  ;;  %v2410_v62 = vsub.s32 7, %v2969_v45 }
 0x218   : > { %2883 = vrsqrt.f32 %v2347_v47  ;;  %v2391_v3 = vrot.slane %v2378_v56, %v2390_v57  ;;  %v2395_v36 = vrot.slane %v2378_v56, %v2394_v58  ;;  %v2429_v9 = vrot.slane %v2424_v52, %v2382_v51 }
 0x219   : > { %2885 = vrsqrt.f32 %v2348_v49  ;;  %v2433_v10 = vrot.slane %v2424_v52, %v2386_v53  ;;  %v2339_v32 = vsub.f32 %v3242_v42, %v2331_v63  ;;  %v2340_v11 = vsub.f32 %v3244_v43, %v2332_v1 }
 0x21a   : > { %2887 = vrsqrt.f32 %v2349_v50  ;;  %v2399_v39 = vrot.slane %v2378_v56, %v2398_v2  ;;  %v2403_v48 = vrot.slane %v2378_v56, %v2402_v7  ;;  %v2412_v35 = vcombine.low %v2383_v59, %v2387_v31 }
 0x21b   : > { %v2437_v41 = vrot.slane %v2424_v52, %v2390_v57  ;;  %v2441_v13 = vrot.slane %v2424_v52, %v2394_v58  ;;  %v2407_v15 = vrot.slane %v2378_v56, %v2406_v60  ;;  %v2411_v45 = vrot.slane %v2378_v56, %v2410_v62 }
 0x21c   : > { %v2445_v16 = vrot.slane %v2424_v52, %v2398_v2  ;;  %v2449_v17 = vrot.slane %v2424_v52, %v2402_v7  ;;  %v2413_v19 = vcombine.low %v2391_v3, %v2395_v36  ;;  %v2458_v20 = vcombine.low %v2429_v9, %v2433_v10 }
 0x21d   : > { %v2341_v43 = vsub.f32 %v3246_v44, %v2333_v8  ;;  %v2414_v21 = vcombine.low %v2399_v39, %v2403_v48  ;;  %v2453_v22 = vrot.slane %v2424_v52, %v2406_v60  ;;  %v2457_v23 = vrot.slane %v2424_v52, %v2410_v62 }
 0x21e   : > { %v2459_v29 = vcombine.low %v2437_v41, %v2441_v13  ;;  %v2415_v33 = vcombine.low %v2407_v15, %v2411_v45  ;;  %v2460_v34 = vcombine.low %v2445_v16, %v2449_v17 }
 0x21f   : > { %v2461_v47 = vcombine.low %v2453_v22, %v2457_v23 }
 0x220   : > { %v2874_v27 = vpop.eup %2873 }
 0x221   : > { %v2876_v6 = vpop.eup %2875 }
 0x222   : > { %v2878_v61 = vpop.eup %2877  ;;  %v2366_v4 = vcombine.low %v2874_v27, %v2876_v6 }
 0x223   : > { %v2880_v14 = vpop.eup %2879 }
 0x224   : > { %v2882_v5 = vpop.eup %2881  ;;  %v2367_v18 = vcombine.low %v2878_v61, %v2880_v14  ;;  %v2374_v12 = vmul.f32 %v2366_v4, %v2338_v0 }
 0x225   : > { %v2884_v42 = vpop.eup %2883 }
 0x226   : > { %v2886_v24 = vpop.eup %2885  ;;  %v2368_v25 = vcombine.low %v2882_v5, %v2884_v42  ;;  %v2375_v26 = vmul.f32 %v2367_v18, %v2339_v32  ;;  %v2420_v28 = vmul.f32 %v2412_v35, %v2374_v12 }
 0x227   : > { %v2888_v30 = vpop.eup %2887 }
 0x228   : > { %v2369_v37 = vcombine.low %v2886_v24, %v2888_v30  ;;  %v2376_v38 = vmul.f32 %v2368_v25, %v2340_v11  ;;  %v2421_v40 = vmul.f32 %v2413_v19, %v2375_v26  ;;  %v2466_v46 = vadd.f32 %v2458_v20, %v2420_v28 }
 0x22a   : > { %v2377_v49 = vmul.f32 %v2369_v37, %v2341_v43  ;;  %v2422_v50 = vmul.f32 %v2414_v21, %v2376_v38  ;;  %v2467_v51 = vadd.f32 %v2459_v29, %v2421_v40  ;;  %v2470_v44 = vmul.f32 0.2, %v2466_v46 }
 0x22c   : > { %v2423_v53 = vmul.f32 %v2415_v33, %v2377_v49  ;;  %v2468_v55 = vadd.f32 %v2460_v34, %v2422_v50  ;;  %v2471_v56 = vmul.f32 0.2, %v2467_v51  ;;  %v2474_v57 = vmax.f32 %v2466_v46, %v2470_v44 }
 0x22e   : > { %v2469_v58 = vadd.f32 %v2461_v47, %v2423_v53  ;;  %v2472_v63 = vmul.f32 0.2, %v2468_v55  ;;  %v2475_v1 = vmax.f32 %v2467_v51, %v2471_v56  ;;  %v2482_v2 = vcombine.high %v2474_v57, %v2474_v57 }
 0x230   : > { %v2473_v7 = vmul.f32 0.2, %v2469_v58  ;;  %v2476_v52 = vmax.f32 %v2468_v55, %v2472_v63  ;;  %v2483_v59 = vcombine.high %v2475_v1, %v2475_v1  ;;  %v2851_v31 = vpack.c.bf16 %v2482_v2, %v2474_v57 }
 0x232   : > { %v2477_v8 = vmax.f32 %v2469_v58, %v2473_v7  ;;  %v2484_v0 = vcombine.high %v2476_v52, %v2476_v52  ;;  %v2852_v60 = vpack.c.bf16 %v2483_v59, %v2475_v1  ;;  %v2514_v62 = vrot.slane %v2851_v31, %v2976_v54 }
 0x234   : > { %v2485_v27 = vcombine.high %v2477_v8, %v2477_v8  ;;  %v2521_v3 = vrot.slane %v2852_v60, %v2976_v54  ;;  %v2853_v36 = vpack.c.bf16 %v2484_v0, %v2476_v52 }
 0x236   : > { %v2522_v9 = vcombine.low %v2514_v62, %v2521_v3  ;;  %v2854_v10 = vpack.c.bf16 %v2485_v27, %v2477_v8  ;;  %v2531_v6 = vrot.slane %v2853_v36, %v2976_v54 }
 0x238   : > { %v2538_v32 = vrot.slane %v2854_v10, %v2976_v54  ;;  %2542 = vst [vmem:[%s3380_s4] sm:$0xff] %v2522_v9 }
 0x23a   : > { %v2539_v11 = vcombine.low %v2531_v6, %v2538_v32 }
 0x23c   : > { %2543 = vst [vmem:[%s3380_s4 + $0x8] sm:$0xff] %v2539_v11 }
 0x23d PF: > { %s14_s15 = sadd.s32 1, %s2895_s15  }
 0x23e   : > { %p11_p7 = scmp.ge.s32.totalorder %s14_s15, 6  }
 0x240   :  { %13 = sbr.rel (!%p11_p7) target bundleno = 1 (0x1), region = 73 }

// kernel: discriminator_forward.7
= control target key start
LH: loop header
LB: loop body
LE: loop exit
PB: predicated region body
PF: predicated region fallthrough
CT: control target
= control target key end

     0   :  { %s958_s14 = smov 0   ;;  %s960_s15 = smov 0   ;;  %s1039_s0 = inlined_call_operand.vmem [shape: bf16[4,1024], index: 0, kind: input, shape index: {}]   ;;  %s1040_s1 = inlined_call_operand.vmem [shape: bf16[1024,1], index: 1, kind: input, shape index: {}]   ;;  %s1041_s2 = inlined_call_operand.<no memory space> [shape: f32[1,1], index: 2, kind: input, shape index: {}]   ;;  %s1042_s3 = inlined_call_operand.vmem [shape: f32[4,1], index: 3, kind: output, shape index: {}]  }
   0x1   :  { %v8_v0 = vstv %s1041_s2  ;;  %s962_s16 = smov 0  }
   0x2   :  { %9 = vst [vmem:[#allocation3] sm:$0x1] %v8_v0 }
   0x3 LB: > { %s27_s2 = sadd.s32 1, %s927_s15  ;;  %p759_p0 = scmp.ge.s32.totalorder %s931_s16, 1  ;;  %s931_s16 = sphi %s962_s16, %s15_s16   ;;  %s927_s15 = sphi %s960_s15, %s1044_s15   ;;  %s923_s14 = sphi %s958_s14, %s1043_s14  }
   0x4   : > { %p28_p1 = scmp.ge.s32.totalorder %s27_s2, 2  ;;  %p191_p2 = scmp.lt.s32.totalorder %s931_s16, 3 }
   0x6   : > { %s1046_s2 = smov (%p28_p1, %s27_s2), 0  ;;  %p192_p3 = pnand %p759_p0, %p191_p2 }
   0x7   : > { %s760_s17 = sshll.u32 (!%p192_p3), %s923_s14, 2  ;;  %s762_s18 = sshll.u32 (!%p192_p3), %s923_s14, 6 }
   0x8   : > { %195 = sbr.rel (%p192_p3) target bundleno = 304 (0x130), region = 32  ;;  %p235_p4 = scmp.lt.s32.totalorder (!%p192_p3), %s760_s17, 7 }
   0x9   : > { %p243_p5 = scmp.lt.s32.totalorder (!%p192_p3), %s762_s18, 127  ;;  %p764_p6 = scmp.ne.s32.totalorder (!%p192_p3), %s923_s14, 0 }
   0xd   : > { %s1048_s17 = smov (!%p235_p4, %s760_s17), 7  ;;  %s1050_s18 = smov (!%p243_p5, %s762_s18), 127 }
   0xe   : > { %s761_s19 = sshll.u32 %s1048_s17, 1  ;;  %s763_s23 = sshll.u32 %s1050_s18, 2 }
   0xf   : > { %s983_s22 = scalar_lea.vmem %s1039_s0, %s761_s19  ;;  %s988_s26 = scalar_lea.vmem %s1040_s1, %s763_s23 }
  0x10   : > { %265 = sbr.rel (%p764_p6) target bundleno = 23 (0x17), region = 36 }
  0x15   : > { %vm266_vm0 = vcmask 3072   ;;  %v933_v1 = vmov 0.0  }
  0x16   : > { %267 = vst.msk [vmem:[#allocation2] sm:$0xf] %vm266_vm0, %v933_v1 }
  0x17 PF: > { %v872_v2 = vld [vmem:[%s988_s26 + $0x78] sm:$0xff]   ;;  %v876_v6 = vld [vmem:[%s988_s26 + $0x70] sm:$0xff]   ;;  %v880_v10 = vld [vmem:[%s988_s26 + $0x68] sm:$0xff]   ;;  %v339_v32 = vlaneseq  ;;  %v934_v36 = vmov 1983009808   ;;  %vm629_vm1 = vcmask 3072  }
  0x18   : > { %v873_v3 = vld [vmem:[%s988_s26 + $0xf8] sm:$0xff]   ;;  %802 = vmatprep.subr.bf16.mxu0 %v872_v2  ;;  %v877_v7 = vld [vmem:[%s988_s26 + $0xf0] sm:$0xff]   ;;  %v881_v11 = vld [vmem:[%s988_s26 + $0xe8] sm:$0xff]   ;;  %v337_v37 = vunpack.c.l.s4 %v934_v36  ;;  %p797_p7 = scmp.ne.s32.totalorder %s923_s14, 1 }
  0x19   : > { %v874_v4 = vld [vmem:[%s988_s26 + $0x38] sm:$0xff]   ;;  %824 = vmatprep.subr.bf16.mxu1 %v873_v3  ;;  %v878_v8 = vld [vmem:[%s988_s26 + $0x30] sm:$0xff]   ;;  %v882_v12 = vld [vmem:[%s988_s26 + $0x28] sm:$0xff]   ;;  %v340_v38 = vshrl.u32 %v339_v32, 7 }
  0x1a   : > { %v875_v5 = vld [vmem:[%s988_s26 + $0xb8] sm:$0xff]   ;;  %803 = vmatpush3.bf16.msra.mxu0 %v874_v4  ;;  %v879_v9 = vld [vmem:[%s988_s26 + $0xb0] sm:$0xff]   ;;  %v883_v13 = vld [vmem:[%s988_s26 + $0xa8] sm:$0xff]   ;;  %v338_v39 = vunpack.c.0.s8 %v337_v37 }
  0x1b   : > { %825 = vmatpush3.bf16.msra.mxu1 %v875_v5  ;;  %804 = vmatprep.subr.bf16.mxu0 %v876_v6  ;;  %v884_v14 = vld [vmem:[%s988_s26 + $0x60] sm:$0xff]   ;;  %v888_v18 = vld [vmem:[%s988_s26 + $0x58] sm:$0xff]   ;;  %v892_v22 = vld [vmem:[%s988_s26 + $0x50] sm:$0xff]  }
  0x1c   : > { %826 = vmatprep.subr.bf16.mxu1 %v877_v7  ;;  %v885_v15 = vld [vmem:[%s988_s26 + $0xe0] sm:$0xff]   ;;  %v889_v19 = vld [vmem:[%s988_s26 + $0xd8] sm:$0xff]   ;;  %v893_v23 = vld [vmem:[%s988_s26 + $0xd0] sm:$0xff]   ;;  %v341_v41 = vsub.s32 %v338_v39, %v340_v38 }
  0x1d   : > { %v886_v16 = vld [vmem:[%s988_s26 + $0x20] sm:$0xff]   ;;  %v890_v20 = vld [vmem:[%s988_s26 + $0x18] sm:$0xff]   ;;  %v894_v24 = vld [vmem:[%s988_s26 + $0x10] sm:$0xff]  }
  0x1e   : > { %805 = vmatpush3.bf16.msra.mxu0 %v878_v8  ;;  %v887_v17 = vld [vmem:[%s988_s26 + $0xa0] sm:$0xff]   ;;  %v891_v21 = vld [vmem:[%s988_s26 + $0x98] sm:$0xff]   ;;  %v895_v25 = vld [vmem:[%s988_s26 + $0x90] sm:$0xff]  }
  0x1f   : > { %827 = vmatpush3.bf16.msra.mxu1 %v879_v9  ;;  %806 = vmatprep.subr.bf16.mxu0 %v880_v10  ;;  %v896_v26 = vld [vmem:[%s988_s26 + $0x48] sm:$0xff]   ;;  %v900_v30 = vld [vmem:[%s988_s26 + $0x40] sm:$0xff]  }
  0x20   : > { %828 = vmatprep.subr.bf16.mxu1 %v881_v11  ;;  %v897_v27 = vld [vmem:[%s988_s26 + $0xc8] sm:$0xff]   ;;  %v901_v31 = vld [vmem:[%s988_s26 + $0xc0] sm:$0xff]  }
  0x21   : > { %v898_v28 = vld [vmem:[%s988_s26 + $0x8] sm:$0xff]   ;;  %v902_v33 = vld [vmem:[%s988_s26] sm:$0xff]  }
  0x22   : > { %807 = vmatpush3.bf16.msra.mxu0 %v882_v12  ;;  %v899_v29 = vld [vmem:[%s988_s26 + $0x88] sm:$0xff]   ;;  %v903_v34 = vld [vmem:[%s988_s26 + $0x80] sm:$0xff]  }
  0x23   : > { %829 = vmatpush3.bf16.msra.mxu1 %v883_v13  ;;  %808 = vmatprep.subr.bf16.mxu0 %v884_v14  ;;  %v269_v35 = vld [vmem:[%s983_s22] sm:$0xff] }
  0x24   : > { %830 = vmatprep.subr.bf16.mxu1 %v885_v15  ;;  %v335_v40 = vcombine.high %v269_v35, %v269_v35  ;;  %v342_v42 = vrot.slane %v269_v35, %v341_v41  ;;  %v268_v52 = vld [vmem:[#allocation2] sm:$0xf] }
  0x26   : > { %809 = vmatpush3.bf16.msra.mxu0 %v886_v16  ;;  %v349_v43 = vrot.slane %v335_v40, %v341_v41  ;;  %v350_v44 = vcombine.high %v342_v42, %v342_v42 }
  0x27   : > { %831 = vmatpush3.bf16.msra.mxu1 %v887_v17  ;;  %810 = vmatprep.subr.bf16.mxu0 %v888_v18 }
  0x28   : > { %832 = vmatprep.subr.bf16.mxu1 %v889_v19  ;;  %v351_v45 = vcombine.high %v349_v43, %v349_v43  ;;  %580 = vmatprep.mubr.bf16.mxu0 %v350_v44 }
  0x2a   : > { %811 = vmatpush3.bf16.msra.mxu0 %v890_v20  ;;  %620 = vmatprep.mubr.bf16.mxu1 %v351_v45 }
  0x2b   : > { %833 = vmatpush3.bf16.msra.mxu1 %v891_v21  ;;  %812 = vmatprep.subr.bf16.mxu0 %v892_v22 }
  0x2c   : > { %834 = vmatprep.subr.bf16.mxu1 %v893_v23 }
  0x2e   : > { %813 = vmatpush3.bf16.msra.mxu0 %v894_v24 }
  0x2f   : > { %835 = vmatpush3.bf16.msra.mxu1 %v895_v25  ;;  %814 = vmatprep.subr.bf16.mxu0 %v896_v26 }
  0x30   : > { %836 = vmatprep.subr.bf16.mxu1 %v897_v27 }
  0x32   : > { %815 = vmatpush3.bf16.msra.mxu0 %v898_v28 }
  0x33   : > { %837 = vmatpush3.bf16.msra.mxu1 %v899_v29  ;;  %816 = vmatprep.subr.bf16.mxu0 %v900_v30 }
  0x34   : > { %838 = vmatprep.subr.bf16.mxu1 %v901_v31 }
  0x36   : > { %817 = vmatpush3.bf16.msra.mxu0 %v902_v33 }
  0x37   : > { %839 = vmatpush3.bf16.msra.mxu1 %v903_v34 }
  0x39   : > { %581 = vmatmul.mubr.bf16.vlgmr.msra.gmra.mxu0 %v342_v42 }
  0x3a   : > { %621 = vmatmul.mubr.bf16.vlgmr.msra.gmra.mxu1 %v349_v43 }
  0xf9   : > { %v818_v46 = vpop.f32.mrf.mxu0 }
  0xfa   : > { %v840_v47 = vpop.f32.mrf.mxu1 }
  0xfb   : > { %v819_v48 = vpop.f32.mrf.mxu0 }
  0xfc   : > { %v841_v49 = vpop.f32.mrf.mxu1  ;;  %v820_v50 = vadd.f32 %v819_v48, %v818_v46 }
  0xfd   : > { %v842_v51 = vadd.f32 %v841_v49, %v840_v47  ;;  %v821_v53 = vpop.f32.mrf.mxu0 }
  0xfe   : > { %v843_v54 = vpop.f32.mrf.mxu1 }
  0xff   : > { %v623_v55 = vadd.f32 %v842_v51, %v820_v50  ;;  %v822_v56 = vpop.f32.mrf.mxu0  ;;  %634 = sbr.rel (%p797_p7) target bundleno = 304 (0x130), region = 40 }
 0x100   : > { %v844_v57 = vpop.f32.mrf.mxu1 }
 0x101   : > { %v628_v58 = vadd.f32 %v623_v55, %v268_v52 }
 0x103   : > { %630 = vst.msk [vmem:[#allocation2] sm:$0xf] %vm629_vm1, %v628_v58 }
 0x104   : > { %v798_v60 = vld [vmem:[#allocation3] ss:$0 sm:$0xff] }
 0x10a   : > { %v635_v59 = vld [vmem:[#allocation2] sm:$0xf] }
 0x10b   : > { %v643_v61 = vadd.f32 %v798_v60, %v635_v59 }
 0x10d   : > { %v644_v62 = vsub.f32 0.0, %v643_v61 }
 0x10f   : > { %v645_v63 = vmul.f32 1.442695, %v644_v62 }
 0x111   : > { %905 = vpow2.f32 %v645_v63 }
 0x11e   : > { %v906_v0 = vpop.eup %905 }
 0x11f   : > { %v647_v1 = vadd.f32 1.0, %v906_v0 }
 0x121   : > { %907 = vrcp.f32 %v647_v1 }
 0x12e   : > { %v908_v2 = vpop.eup %907 }
 0x12f   : > { %649 = vst.msk [vmem:[%s1042_s3] sm:$0xf] %vm629_vm1, %v908_v2 }
 0x130 PF: > { %s15_s16 = sadd.s32 1, %s931_s16   ;;  %s1043_s14 = smov %s927_s15 }
 0x131   : > { %p12_p8 = scmp.ge.s32.totalorder %s15_s16, 4   ;;  %s1044_s15 = smov %s1046_s2 }
 0x133   :  { %14 = sbr.rel (!%p12_p8) target bundleno = 3 (0x3), region = 76 }

</bundles_post_ra>
